<compile_context>
chip_gen: v5e
topology: v5e:2x2
jax: 0.10.0
libtpu: 0.0.40
codegen_flags: <defaults>
</compile_context>

<pallas_src>
import jax
import jax.numpy as jnp
from jax.experimental import pallas as pl
from jax.experimental.pallas import tpu as pltpu


LANE = 128  # lane width: the tiny num_labels output path is padded to this


def agreement_kernel(hs1_ref, s1_ref, e1_ref,
                     hs2_ref, s2_ref, e2_ref,
                     w1a_ref, w1b_ref, w1c_ref, w1d_ref, b1_ref,
                     w2_ref, b2_ref, w3_ref, b3_ref,
                     o_ref):
    """One batch tile (TB rows) of the post-encoder head."""

    def pool(hs_ref, s_ref, e_ref):
        xb = hs_ref[...]                                   # (TB, S, H) source dtype (bf16)
        tb, s_len, _ = xb.shape
        cls = xb[:, 0, :].astype(jnp.float32)              # (TB, H) f32
        start = s_ref[...][:, None, :]                     # (TB, 1, 1) int32
        end = e_ref[...][:, None, :]                       # (TB, 1, 1) int32
        seq_ids = jax.lax.broadcasted_iota(jnp.int32, (tb, s_len, 1), 1)
        mask = (seq_ids >= start) & (seq_ids < end)        # (TB, S, 1)
        # Mask in the source dtype; upcast inside the reduction so no second
        # (TB, S, H) f32 tensor is ever live (halves VMEM/vreg pressure and
        # VALU traffic on bf16-VALU parts; f32 accumulation everywhere).
        masked = jnp.where(mask, xb, jnp.zeros((), xb.dtype))
        summed = jnp.sum(masked.astype(jnp.float32), axis=1)   # (TB, H) f32
        count = jnp.maximum(e_ref[...] - s_ref[...], 1).astype(jnp.float32)
        return cls, summed / count                          # exact span mean (TB, H)

    cls1, ind1 = pool(hs1_ref, s1_ref, e1_ref)
    cls2, ind2 = pool(hs2_ref, s2_ref, e2_ref)

    # self.linear: cat(cls1, ind1, cls2, ind2) @ W1 + b1 with the (B, 4H) concat
    # eliminated by splitting W1 row-wise into four HxH blocks (prepare_params).
    h = (jnp.dot(cls1, w1a_ref[...], preferred_element_type=jnp.float32)
         + jnp.dot(ind1, w1b_ref[...], preferred_element_type=jnp.float32)
         + jnp.dot(cls2, w1c_ref[...], preferred_element_type=jnp.float32)
         + jnp.dot(ind2, w1d_ref[...], preferred_element_type=jnp.float32)
         + b1_ref[...])
    h = jnp.maximum(h, 0.0)                                # ReLU; dropout = identity
    # self.dense + tanh
    h = jnp.dot(h, w2_ref[...], preferred_element_type=jnp.float32) + b2_ref[...]
    h = jnp.tanh(h)
    # self.out_proj (lane-padded to 128 output columns; sliced in wrapper)
    o_ref[...] = jnp.dot(h, w3_ref[...], preferred_element_type=jnp.float32) + b3_ref[...]


def prepare_params(params):
    """One-time weight prep, hoisted out of the per-call path: split W1 into four
    HxH row blocks (kills the in-kernel concat) and lane-pad out_proj to 128
    columns so the kernel's output stores are dense (unmasked) vst."""
    w1 = jnp.asarray(params["w1"], jnp.float32)
    H = w1.shape[1]
    L = params["b3"].shape[-1]
    w3p = jnp.zeros((H, LANE), jnp.float32).at[:, :L].set(params["w3"])
    b3p = jnp.zeros((1, LANE), jnp.float32).at[:, :L].set(params["b3"])
    return {
        "w1a": w1[0:H], "w1b": w1[H:2 * H],
        "w1c": w1[2 * H:3 * H], "w1d": w1[3 * H:4 * H],
        "b1": jnp.asarray(params["b1"], jnp.float32),
        "w2": jnp.asarray(params["w2"], jnp.float32),
        "b2": jnp.asarray(params["b2"], jnp.float32),
        "w3p": w3p, "b3p": b3p,
        "num_labels": int(L),
    }


def _vmem_capacity_bytes():
    """Per-TensorCore VMEM capacity; conservative (v7x = 64 MiB) if the query fails."""
    try:
        cap = getattr(pltpu.get_tpu_info(), "vmem_capacity_bytes", None)
        if cap:
            return int(cap)
    except Exception:
        pass
    return 64 << 20


def _pick_batch_tile(B, S, H, hs_itemsize, weight_bytes, vmem_budget):
    """Largest multiple-of-8 divisor of B whose double-buffered hidden-state blocks
    + resident weights + masking temporaries fit the VMEM budget, preferring a grid
    of >= 2 steps so the 'parallel' batch axis can shard across both v7x TCs."""
    candidates = [t for t in range(8, B + 1, 8) if B % t == 0]
    if not candidates:
        candidates = [B]  # single tile; block dims equal the full array dims

    def demand(t):
        hs_block = t * S * H * hs_itemsize          # one hidden-state input block
        out_block = t * LANE * 4
        # 2 hs inputs x 2 pipeline buffers + output buffers, 1.5x slack for the
        # in-kernel mask/upcast temporaries, plus the resident weights.
        return int((4 * hs_block + 2 * out_block) * 1.5) + weight_bytes

    fitting = [t for t in candidates if demand(t) <= vmem_budget]
    if not fitting:
        # Even the smallest legal tile exceeds the budget; take it anyway.
        # TODO(synk): at that point switch to the data-dependent CLS+span DMA path.
        return candidates[0]
    multi = [t for t in fitting if B // t >= 2]     # keep both v7x TCs busy
    return max(multi) if multi else max(fitting)


def agreement_forward(hs1, s1, e1, hs2, s2, e2, prepped, *, tb=None):
    B, S, H = hs1.shape
    L = prepped["num_labels"]

    # Leave ~25% headroom below physical per-TC VMEM for compiler internal
    # scratch / semaphores (48 MiB on v7x, 96 MiB on v5e/v6e).
    vmem_budget = (_vmem_capacity_bytes() * 3) // 4
    # Budget the resident weights at 2 buffers (the default) even though we
    # request single buffering below, in case pipeline_mode is unsupported.
    weight_bytes = 2 * 4 * (5 * H * H + 2 * H + H * LANE + LANE)

    if tb is None:
        tb = _pick_batch_tile(B, S, H, jnp.dtype(hs1.dtype).itemsize,
                              weight_bytes, vmem_budget)
    assert B % tb == 0, (B, tb)
    grid = (B // tb,)

    hs_spec = pl.BlockSpec((tb, S, H), lambda b: (b, 0, 0))
    idx_spec = pl.BlockSpec((tb, 1), lambda b: (b, 0))

    def call(single_buffer_weights):
        def pinned(shape):
            # Constant block index => weights DMA'd once and stay VMEM-resident.
            # A single buffer halves their footprint (matters at H=768 on v7x's
            # 64 MiB VMEM); fall back to default double buffering if this jax
            # build does not support pipeline_mode on BlockSpec.
            if single_buffer_weights:
                return pl.BlockSpec(shape, lambda b: (0, 0),
                                    pipeline_mode=pl.Buffered(1))
            return pl.BlockSpec(shape, lambda b: (0, 0))

        return pl.pallas_call(
            agreement_kernel,
            out_shape=jax.ShapeDtypeStruct((B, LANE), jnp.float32),
            grid=grid,
            in_specs=[hs_spec, idx_spec, idx_spec,
                      hs_spec, idx_spec, idx_spec,
                      pinned((H, H)), pinned((H, H)), pinned((H, H)), pinned((H, H)),
                      pinned((1, H)),
                      pinned((H, H)), pinned((1, H)),
                      pinned((H, LANE)), pinned((1, LANE))],
            out_specs=pl.BlockSpec((tb, LANE), lambda b: (b, 0)),
            compiler_params=pltpu.CompilerParams(
                dimension_semantics=("parallel",),
                vmem_limit_bytes=int(vmem_budget)),
        )(hs1, s1, e1, hs2, s2, e2,
          prepped["w1a"], prepped["w1b"], prepped["w1c"], prepped["w1d"], prepped["b1"],
          prepped["w2"], prepped["b2"], prepped["w3p"], prepped["b3p"])

    try:
        out = call(True)
    except Exception:
        # pipeline_mode=pl.Buffered(1) not supported here -> default double buffering.
        out = call(False)
    return out[:, :L]


def agreement_reference(hs1, s1, e1, hs2, s2, e2, params):
    """Pure-JAX reference mirroring the PyTorch forward (eval mode)."""
    def pool(hs, s, e):
        hs = hs.astype(jnp.float32)
        S = hs.shape[1]
        cls = hs[:, 0, :]
        ids = jnp.arange(S)[None, :, None]
        mask = (ids >= s[:, None, :]) & (ids < e[:, None, :])
        summed = jnp.sum(jnp.where(mask, hs, 0.0), axis=1)
        cnt = jnp.maximum(e - s, 1).astype(jnp.float32)
        return jnp.concatenate([cls, summed / cnt], axis=1)

    lin_in = jnp.concatenate([pool(hs1, s1, e1), pool(hs2, s2, e2)], axis=1)
    h = jnp.maximum(lin_in @ params["w1"] + params["b1"], 0.0)
    h = jnp.tanh(h @ params["w2"] + params["b2"])
    return h @ params["w3"] + params["b3"]


if __name__ == "__main__":
    # Small shapes consistent with the module's forward:
    B, S, H, L = 16, 16, 128, 4   # batch, seq, hidden_size, num_labels

    key = jax.random.PRNGKey(0)
    k = jax.random.split(key, 12)

    # Synthetic "RoBERTa last_hidden_state" for the two neighbors (bf16 at the
    # kernel boundary -> half the HBM read traffic; f32 accumulation in-kernel).
    hs1 = jax.random.normal(k[0], (B, S, H), dtype=jnp.float32).astype(jnp.bfloat16)
    hs2 = jax.random.normal(k[1], (B, S, H), dtype=jnp.float32).astype(jnp.bfloat16)

    # Span indices per example: 0 <= start < end <= S.
    s1 = jax.random.randint(k[2], (B, 1), 0, S // 2, dtype=jnp.int32)
    e1 = s1 + jax.random.randint(k[3], (B, 1), 1, S // 2, dtype=jnp.int32)
    s2 = jax.random.randint(k[4], (B, 1), 0, S // 2, dtype=jnp.int32)
    e2 = s2 + jax.random.randint(k[5], (B, 1), 1, S // 2, dtype=jnp.int32)

    # Deterministic parameter init (weights stored [in, out]).
    params = {
        "w1": 0.02 * jax.random.normal(k[6], (4 * H, H), dtype=jnp.float32),   # self.linear
        "b1": 0.01 * jax.random.normal(k[7], (1, H), dtype=jnp.float32),
        "w2": 0.02 * jax.random.normal(k[8], (H, H), dtype=jnp.float32),       # self.dense
        "b2": 0.01 * jax.random.normal(k[9], (1, H), dtype=jnp.float32),
        "w3": 0.02 * jax.random.normal(k[10], (H, L), dtype=jnp.float32),      # self.out_proj
        "b3": 0.01 * jax.random.normal(k[11], (1, L), dtype=jnp.float32),
    }

    # One-time weight prep (split W1, lane-pad out_proj) hoisted out of the call.
    prepped = prepare_params(params)

    # Tile picker chooses tb=8 -> grid=(2,), exercising the batch-tiled /
    # pinned-weight path and keeping >=2 grid steps for v7x megacore sharding.
    logits = agreement_forward(hs1, s1, e1, hs2, s2, e2, prepped)
    logits = jax.block_until_ready(logits)

    ref = agreement_reference(hs1, s1, e1, hs2, s2, e2, params)
    assert logits.shape == (B, L), logits.shape
    assert jnp.all(jnp.isfinite(logits)), "Logits contain NaN values"
    assert jnp.allclose(logits, ref, atol=1e-4, rtol=1e-4), (logits, ref)

    print("KERNEL_OK")
</pallas_src>

<mosaic_0001>
module attributes {stable_mosaic.version = 11 : i64} {
  func.func @agreement_kernel(%arg0: i32, %arg1: memref<8x16x128xbf16, #tpu.memory_space<vmem>>, %arg2: memref<8x1xi32, #tpu.memory_space<vmem>>, %arg3: memref<8x1xi32, #tpu.memory_space<vmem>>, %arg4: memref<8x16x128xbf16, #tpu.memory_space<vmem>>, %arg5: memref<8x1xi32, #tpu.memory_space<vmem>>, %arg6: memref<8x1xi32, #tpu.memory_space<vmem>>, %arg7: memref<128x128xf32, #tpu.memory_space<vmem>>, %arg8: memref<128x128xf32, #tpu.memory_space<vmem>>, %arg9: memref<128x128xf32, #tpu.memory_space<vmem>>, %arg10: memref<128x128xf32, #tpu.memory_space<vmem>>, %arg11: memref<1x128xf32, #tpu.memory_space<vmem>>, %arg12: memref<128x128xf32, #tpu.memory_space<vmem>>, %arg13: memref<1x128xf32, #tpu.memory_space<vmem>>, %arg14: memref<128x128xf32, #tpu.memory_space<vmem>>, %arg15: memref<1x128xf32, #tpu.memory_space<vmem>>, %arg16: memref<8x128xf32, #tpu.memory_space<vmem>>) attributes {dimension_semantics = [#tpu.dimension_semantics<parallel>], iteration_bounds = array<i64: 2>, scalar_prefetch = 0 : i64, scratch_operands = 0 : i64, tpu.core_type = #tpu.core_type<tc>, window_params = [{transform_indices = @transform_0, window_bounds = array<i64: 8, 16, 128>}, {transform_indices = @transform_1, window_bounds = array<i64: 8, 1>}, {transform_indices = @transform_2, window_bounds = array<i64: 8, 1>}, {transform_indices = @transform_3, window_bounds = array<i64: 8, 16, 128>}, {transform_indices = @transform_4, window_bounds = array<i64: 8, 1>}, {transform_indices = @transform_5, window_bounds = array<i64: 8, 1>}, {pipeline_mode = #tpu.pipeline_mode<synchronous>, transform_indices = @transform_6, window_bounds = array<i64: 128, 128>}, {pipeline_mode = #tpu.pipeline_mode<synchronous>, transform_indices = @transform_7, window_bounds = array<i64: 128, 128>}, {pipeline_mode = #tpu.pipeline_mode<synchronous>, transform_indices = @transform_8, window_bounds = array<i64: 128, 128>}, {pipeline_mode = #tpu.pipeline_mode<synchronous>, transform_indices = @transform_9, window_bounds = array<i64: 128, 128>}, {pipeline_mode = #tpu.pipeline_mode<synchronous>, transform_indices = @transform_10, window_bounds = array<i64: 1, 128>}, {pipeline_mode = #tpu.pipeline_mode<synchronous>, transform_indices = @transform_11, window_bounds = array<i64: 128, 128>}, {pipeline_mode = #tpu.pipeline_mode<synchronous>, transform_indices = @transform_12, window_bounds = array<i64: 1, 128>}, {pipeline_mode = #tpu.pipeline_mode<synchronous>, transform_indices = @transform_13, window_bounds = array<i64: 128, 128>}, {pipeline_mode = #tpu.pipeline_mode<synchronous>, transform_indices = @transform_14, window_bounds = array<i64: 1, 128>}, {transform_indices = @transform_15, window_bounds = array<i64: 8, 128>}]} {
    %c0 = arith.constant 0 : index
    %c0_0 = arith.constant 0 : index
    %c0_1 = arith.constant 0 : index
    %0 = vector.load %arg1[%c0, %c0_0, %c0_1] : memref<8x16x128xbf16, #tpu.memory_space<vmem>>, vector<8x16x128xbf16>
    %1 = vector.extract_strided_slice %0 {offsets = [0, 0, 0], sizes = [8, 1, 128], strides = [1, 1, 1]} : vector<8x16x128xbf16> to vector<8x1x128xbf16>
    %2 = vector.shape_cast %1 : vector<8x1x128xbf16> to vector<8x128xbf16>
    %3 = arith.extf %2 : vector<8x128xbf16> to vector<8x128xf32>
    %c0_2 = arith.constant 0 : index
    %c0_3 = arith.constant 0 : index
    %4 = vector.load %arg2[%c0_2, %c0_3] : memref<8x1xi32, #tpu.memory_space<vmem>>, vector<8x1xi32>
    %5 = vector.shape_cast %4 : vector<8x1xi32> to vector<8x1x1xi32>
    %c0_4 = arith.constant 0 : index
    %c0_5 = arith.constant 0 : index
    %6 = vector.load %arg3[%c0_4, %c0_5] : memref<8x1xi32, #tpu.memory_space<vmem>>, vector<8x1xi32>
    %7 = vector.shape_cast %6 : vector<8x1xi32> to vector<8x1x1xi32>
    %8 = tpu.iota {dimensions = array<i32: 1>} : vector<8x16x1xi32>
    %9 = vector.broadcast %5 : vector<8x1x1xi32> to vector<8x16x1xi32>
    %10 = arith.cmpi sge, %8, %9 : vector<8x16x1xi32>
    %11 = vector.broadcast %7 : vector<8x1x1xi32> to vector<8x16x1xi32>
    %12 = arith.cmpi slt, %8, %11 : vector<8x16x1xi32>
    %13 = arith.andi %10, %12 : vector<8x16x1xi1>
    %cst = arith.constant 0.000000e+00 : bf16
    %14 = vector.shape_cast %13 : vector<8x16x1xi1> to vector<8x16x1xi1>
    %15 = vector.broadcast %14 : vector<8x16x1xi1> to vector<8x16x128xi1>
    %16 = vector.broadcast %cst : bf16 to vector<8x16x128xbf16>
    %17 = arith.select %15, %0, %16 : vector<8x16x128xi1>, vector<8x16x128xbf16>
    %18 = arith.extf %17 : vector<8x16x128xbf16> to vector<8x16x128xf32>
    %cst_6 = arith.constant dense<0.000000e+00> : vector<8x128xf32>
    %19 = vector.multi_reduction <add>, %18, %cst_6 [1] : vector<8x16x128xf32> to vector<8x128xf32>
    %c0_7 = arith.constant 0 : index
    %c0_8 = arith.constant 0 : index
    %20 = vector.load %arg3[%c0_7, %c0_8] : memref<8x1xi32, #tpu.memory_space<vmem>>, vector<8x1xi32>
    %c0_9 = arith.constant 0 : index
    %c0_10 = arith.constant 0 : index
    %21 = vector.load %arg2[%c0_9, %c0_10] : memref<8x1xi32, #tpu.memory_space<vmem>>, vector<8x1xi32>
    %22 = arith.subi %20, %21 : vector<8x1xi32>
    %c1_i32 = arith.constant 1 : i32
    %23 = vector.broadcast %c1_i32 : i32 to vector<8x1xi32>
    %24 = arith.maxsi %22, %23 : vector<8x1xi32>
    %25 = arith.sitofp %24 : vector<8x1xi32> to vector<8x1xf32>
    %26 = vector.broadcast %25 : vector<8x1xf32> to vector<8x128xf32>
    %27 = arith.divf %19, %26 : vector<8x128xf32>
    %c0_11 = arith.constant 0 : index
    %c0_12 = arith.constant 0 : index
    %c0_13 = arith.constant 0 : index
    %28 = vector.load %arg4[%c0_11, %c0_12, %c0_13] : memref<8x16x128xbf16, #tpu.memory_space<vmem>>, vector<8x16x128xbf16>
    %29 = vector.extract_strided_slice %28 {offsets = [0, 0, 0], sizes = [8, 1, 128], strides = [1, 1, 1]} : vector<8x16x128xbf16> to vector<8x1x128xbf16>
    %30 = vector.shape_cast %29 : vector<8x1x128xbf16> to vector<8x128xbf16>
    %31 = arith.extf %30 : vector<8x128xbf16> to vector<8x128xf32>
    %c0_14 = arith.constant 0 : index
    %c0_15 = arith.constant 0 : index
    %32 = vector.load %arg5[%c0_14, %c0_15] : memref<8x1xi32, #tpu.memory_space<vmem>>, vector<8x1xi32>
    %33 = vector.shape_cast %32 : vector<8x1xi32> to vector<8x1x1xi32>
    %c0_16 = arith.constant 0 : index
    %c0_17 = arith.constant 0 : index
    %34 = vector.load %arg6[%c0_16, %c0_17] : memref<8x1xi32, #tpu.memory_space<vmem>>, vector<8x1xi32>
    %35 = vector.shape_cast %34 : vector<8x1xi32> to vector<8x1x1xi32>
    %36 = tpu.iota {dimensions = array<i32: 1>} : vector<8x16x1xi32>
    %37 = vector.broadcast %33 : vector<8x1x1xi32> to vector<8x16x1xi32>
    %38 = arith.cmpi sge, %36, %37 : vector<8x16x1xi32>
    %39 = vector.broadcast %35 : vector<8x1x1xi32> to vector<8x16x1xi32>
    %40 = arith.cmpi slt, %36, %39 : vector<8x16x1xi32>
    %41 = arith.andi %38, %40 : vector<8x16x1xi1>
    %cst_18 = arith.constant 0.000000e+00 : bf16
    %42 = vector.shape_cast %41 : vector<8x16x1xi1> to vector<8x16x1xi1>
    %43 = vector.broadcast %42 : vector<8x16x1xi1> to vector<8x16x128xi1>
    %44 = vector.broadcast %cst_18 : bf16 to vector<8x16x128xbf16>
    %45 = arith.select %43, %28, %44 : vector<8x16x128xi1>, vector<8x16x128xbf16>
    %46 = arith.extf %45 : vector<8x16x128xbf16> to vector<8x16x128xf32>
    %cst_19 = arith.constant dense<0.000000e+00> : vector<8x128xf32>
    %47 = vector.multi_reduction <add>, %46, %cst_19 [1] : vector<8x16x128xf32> to vector<8x128xf32>
    %c0_20 = arith.constant 0 : index
    %c0_21 = arith.constant 0 : index
    %48 = vector.load %arg6[%c0_20, %c0_21] : memref<8x1xi32, #tpu.memory_space<vmem>>, vector<8x1xi32>
    %c0_22 = arith.constant 0 : index
    %c0_23 = arith.constant 0 : index
    %49 = vector.load %arg5[%c0_22, %c0_23] : memref<8x1xi32, #tpu.memory_space<vmem>>, vector<8x1xi32>
    %50 = arith.subi %48, %49 : vector<8x1xi32>
    %c1_i32_24 = arith.constant 1 : i32
    %51 = vector.broadcast %c1_i32_24 : i32 to vector<8x1xi32>
    %52 = arith.maxsi %50, %51 : vector<8x1xi32>
    %53 = arith.sitofp %52 : vector<8x1xi32> to vector<8x1xf32>
    %54 = vector.broadcast %53 : vector<8x1xf32> to vector<8x128xf32>
    %55 = arith.divf %47, %54 : vector<8x128xf32>
    %c0_25 = arith.constant 0 : index
    %c0_26 = arith.constant 0 : index
    %56 = vector.load %arg7[%c0_25, %c0_26] : memref<128x128xf32, #tpu.memory_space<vmem>>, vector<128x128xf32>
    %cst_27 = arith.constant dense<0.000000e+00> : vector<8x128xf32>
    %57 = tpu.matmul %3, %56, %cst_27 {dimension_numbers = #tpu.dot_dimension_numbers<[1], [0], [0], [1], [0, 0, 1, 1], [], []>} : vector<8x128xf32>, vector<128x128xf32>, vector<8x128xf32> -> vector<8x128xf32>
    %c0_28 = arith.constant 0 : index
    %c0_29 = arith.constant 0 : index
    %58 = vector.load %arg8[%c0_28, %c0_29] : memref<128x128xf32, #tpu.memory_space<vmem>>, vector<128x128xf32>
    %cst_30 = arith.constant dense<0.000000e+00> : vector<8x128xf32>
    %59 = tpu.matmul %27, %58, %cst_30 {dimension_numbers = #tpu.dot_dimension_numbers<[1], [0], [0], [1], [0, 0, 1, 1], [], []>} : vector<8x128xf32>, vector<128x128xf32>, vector<8x128xf32> -> vector<8x128xf32>
    %60 = arith.addf %57, %59 : vector<8x128xf32>
    %c0_31 = arith.constant 0 : index
    %c0_32 = arith.constant 0 : index
    %61 = vector.load %arg9[%c0_31, %c0_32] : memref<128x128xf32, #tpu.memory_space<vmem>>, vector<128x128xf32>
    %cst_33 = arith.constant dense<0.000000e+00> : vector<8x128xf32>
    %62 = tpu.matmul %31, %61, %cst_33 {dimension_numbers = #tpu.dot_dimension_numbers<[1], [0], [0], [1], [0, 0, 1, 1], [], []>} : vector<8x128xf32>, vector<128x128xf32>, vector<8x128xf32> -> vector<8x128xf32>
    %63 = arith.addf %60, %62 : vector<8x128xf32>
    %c0_34 = arith.constant 0 : index
    %c0_35 = arith.constant 0 : index
    %64 = vector.load %arg10[%c0_34, %c0_35] : memref<128x128xf32, #tpu.memory_space<vmem>>, vector<128x128xf32>
    %cst_36 = arith.constant dense<0.000000e+00> : vector<8x128xf32>
    %65 = tpu.matmul %55, %64, %cst_36 {dimension_numbers = #tpu.dot_dimension_numbers<[1], [0], [0], [1], [0, 0, 1, 1], [], []>} : vector<8x128xf32>, vector<128x128xf32>, vector<8x128xf32> -> vector<8x128xf32>
    %66 = arith.addf %63, %65 : vector<8x128xf32>
    %c0_37 = arith.constant 0 : index
    %c0_38 = arith.constant 0 : index
    %67 = vector.load %arg11[%c0_37, %c0_38] : memref<1x128xf32, #tpu.memory_space<vmem>>, vector<1x128xf32>
    %68 = vector.broadcast %67 : vector<1x128xf32> to vector<8x128xf32>
    %69 = arith.addf %66, %68 : vector<8x128xf32>
    %cst_39 = arith.constant 0.000000e+00 : f32
    %70 = vector.broadcast %cst_39 : f32 to vector<8x128xf32>
    %71 = arith.maximumf %69, %70 : vector<8x128xf32>
    %c0_40 = arith.constant 0 : index
    %c0_41 = arith.constant 0 : index
    %72 = vector.load %arg12[%c0_40, %c0_41] : memref<128x128xf32, #tpu.memory_space<vmem>>, vector<128x128xf32>
    %cst_42 = arith.constant dense<0.000000e+00> : vector<8x128xf32>
    %73 = tpu.matmul %71, %72, %cst_42 {dimension_numbers = #tpu.dot_dimension_numbers<[1], [0], [0], [1], [0, 0, 1, 1], [], []>} : vector<8x128xf32>, vector<128x128xf32>, vector<8x128xf32> -> vector<8x128xf32>
    %c0_43 = arith.constant 0 : index
    %c0_44 = arith.constant 0 : index
    %74 = vector.load %arg13[%c0_43, %c0_44] : memref<1x128xf32, #tpu.memory_space<vmem>>, vector<1x128xf32>
    %75 = vector.broadcast %74 : vector<1x128xf32> to vector<8x128xf32>
    %76 = arith.addf %73, %75 : vector<8x128xf32>
    %77 = math.tanh %76 : vector<8x128xf32>
    %c0_45 = arith.constant 0 : index
    %c0_46 = arith.constant 0 : index
    %78 = vector.load %arg14[%c0_45, %c0_46] : memref<128x128xf32, #tpu.memory_space<vmem>>, vector<128x128xf32>
    %cst_47 = arith.constant dense<0.000000e+00> : vector<8x128xf32>
    %79 = tpu.matmul %77, %78, %cst_47 {dimension_numbers = #tpu.dot_dimension_numbers<[1], [0], [0], [1], [0, 0, 1, 1], [], []>} : vector<8x128xf32>, vector<128x128xf32>, vector<8x128xf32> -> vector<8x128xf32>
    %c0_48 = arith.constant 0 : index
    %c0_49 = arith.constant 0 : index
    %80 = vector.load %arg15[%c0_48, %c0_49] : memref<1x128xf32, #tpu.memory_space<vmem>>, vector<1x128xf32>
    %81 = vector.broadcast %80 : vector<1x128xf32> to vector<8x128xf32>
    %82 = arith.addf %79, %81 : vector<8x128xf32>
    %c0_50 = arith.constant 0 : index
    %c0_51 = arith.constant 0 : index
    %83 = vector.load %arg16[%c0_50, %c0_51] : memref<8x128xf32, #tpu.memory_space<vmem>>, vector<8x128xf32>
    tpu.vector_store %arg16[%c0_50, %c0_51], %82 {strides = array<i32>} : memref<8x128xf32, #tpu.memory_space<vmem>>, vector<8x128xf32>,
    return
  }
  func.func @transform_0(%arg0: i32) -> (i32, i32, i32) {
    %c0_i32 = arith.constant 0 : i32
    %c0_i32_0 = arith.constant 0 : i32
    %c0_i32_1 = arith.constant 0 : i32
    return %arg0, %c0_i32, %c0_i32_0 : i32, i32, i32
  }
  func.func @transform_1(%arg0: i32) -> (i32, i32) {
    %c0_i32 = arith.constant 0 : i32
    %c0_i32_0 = arith.constant 0 : i32
    return %arg0, %c0_i32 : i32, i32
  }
  func.func @transform_2(%arg0: i32) -> (i32, i32) {
    %c0_i32 = arith.constant 0 : i32
    %c0_i32_0 = arith.constant 0 : i32
    return %arg0, %c0_i32 : i32, i32
  }
  func.func @transform_3(%arg0: i32) -> (i32, i32, i32) {
    %c0_i32 = arith.constant 0 : i32
    %c0_i32_0 = arith.constant 0 : i32
    %c0_i32_1 = arith.constant 0 : i32
    return %arg0, %c0_i32, %c0_i32_0 : i32, i32, i32
  }
  func.func @transform_4(%arg0: i32) -> (i32, i32) {
    %c0_i32 = arith.constant 0 : i32
    %c0_i32_0 = arith.constant 0 : i32
    return %arg0, %c0_i32 : i32, i32
  }
  func.func @transform_5(%arg0: i32) -> (i32, i32) {
    %c0_i32 = arith.constant 0 : i32
    %c0_i32_0 = arith.constant 0 : i32
    return %arg0, %c0_i32 : i32, i32
  }
  func.func @transform_6(%arg0: i32) -> (i32, i32) {
    %c0_i32 = arith.constant 0 : i32
    %c0_i32_0 = arith.constant 0 : i32
    %c0_i32_1 = arith.constant 0 : i32
    return %c0_i32, %c0_i32_0 : i32, i32
  }
  func.func @transform_7(%arg0: i32) -> (i32, i32) {
    %c0_i32 = arith.constant 0 : i32
    %c0_i32_0 = arith.constant 0 : i32
    %c0_i32_1 = arith.constant 0 : i32
    return %c0_i32, %c0_i32_0 : i32, i32
  }
  func.func @transform_8(%arg0: i32) -> (i32, i32) {
    %c0_i32 = arith.constant 0 : i32
    %c0_i32_0 = arith.constant 0 : i32
    %c0_i32_1 = arith.constant 0 : i32
    return %c0_i32, %c0_i32_0 : i32, i32
  }
  func.func @transform_9(%arg0: i32) -> (i32, i32) {
    %c0_i32 = arith.constant 0 : i32
    %c0_i32_0 = arith.constant 0 : i32
    %c0_i32_1 = arith.constant 0 : i32
    return %c0_i32, %c0_i32_0 : i32, i32
  }
  func.func @transform_10(%arg0: i32) -> (i32, i32) {
    %c0_i32 = arith.constant 0 : i32
    %c0_i32_0 = arith.constant 0 : i32
    %c0_i32_1 = arith.constant 0 : i32
    return %c0_i32, %c0_i32_0 : i32, i32
  }
  func.func @transform_11(%arg0: i32) -> (i32, i32) {
    %c0_i32 = arith.constant 0 : i32
    %c0_i32_0 = arith.constant 0 : i32
    %c0_i32_1 = arith.constant 0 : i32
    return %c0_i32, %c0_i32_0 : i32, i32
  }
  func.func @transform_12(%arg0: i32) -> (i32, i32) {
    %c0_i32 = arith.constant 0 : i32
    %c0_i32_0 = arith.constant 0 : i32
    %c0_i32_1 = arith.constant 0 : i32
    return %c0_i32, %c0_i32_0 : i32, i32
  }
  func.func @transform_13(%arg0: i32) -> (i32, i32) {
    %c0_i32 = arith.constant 0 : i32
    %c0_i32_0 = arith.constant 0 : i32
    %c0_i32_1 = arith.constant 0 : i32
    return %c0_i32, %c0_i32_0 : i32, i32
  }
  func.func @transform_14(%arg0: i32) -> (i32, i32) {
    %c0_i32 = arith.constant 0 : i32
    %c0_i32_0 = arith.constant 0 : i32
    %c0_i32_1 = arith.constant 0 : i32
    return %c0_i32, %c0_i32_0 : i32, i32
  }
  func.func @transform_15(%arg0: i32) -> (i32, i32) {
    %c0_i32 = arith.constant 0 : i32
    %c0_i32_0 = arith.constant 0 : i32
    return %arg0, %c0_i32 : i32, i32
  }
}

module attributes {stable_mosaic.version = 11 : i64} {
  func.func @agreement_kernel(%arg0: i32, %arg1: memref<8x16x128xbf16, #tpu.memory_space<vmem>>, %arg2: memref<8x1xi32, #tpu.memory_space<vmem>>, %arg3: memref<8x1xi32, #tpu.memory_space<vmem>>, %arg4: memref<8x16x128xbf16, #tpu.memory_space<vmem>>, %arg5: memref<8x1xi32, #tpu.memory_space<vmem>>, %arg6: memref<8x1xi32, #tpu.memory_space<vmem>>, %arg7: memref<128x128xf32, #tpu.memory_space<vmem>>, %arg8: memref<128x128xf32, #tpu.memory_space<vmem>>, %arg9: memref<128x128xf32, #tpu.memory_space<vmem>>, %arg10: memref<128x128xf32, #tpu.memory_space<vmem>>, %arg11: memref<1x128xf32, #tpu.memory_space<vmem>>, %arg12: memref<128x128xf32, #tpu.memory_space<vmem>>, %arg13: memref<1x128xf32, #tpu.memory_space<vmem>>, %arg14: memref<128x128xf32, #tpu.memory_space<vmem>>, %arg15: memref<1x128xf32, #tpu.memory_space<vmem>>, %arg16: memref<8x128xf32, #tpu.memory_space<vmem>>) attributes {dimension_semantics = [#tpu.dimension_semantics<parallel>], iteration_bounds = array<i64: 2>, scalar_prefetch = 0 : i64, scratch_operands = 0 : i64, tpu.core_type = #tpu.core_type<tc>, window_params = [{transform_indices = @transform_0, window_bounds = array<i64: 8, 16, 128>}, {transform_indices = @transform_1, window_bounds = array<i64: 8, 1>}, {transform_indices = @transform_2, window_bounds = array<i64: 8, 1>}, {transform_indices = @transform_3, window_bounds = array<i64: 8, 16, 128>}, {transform_indices = @transform_4, window_bounds = array<i64: 8, 1>}, {transform_indices = @transform_5, window_bounds = array<i64: 8, 1>}, {pipeline_mode = #tpu.pipeline_mode<synchronous>, transform_indices = @transform_6, window_bounds = array<i64: 128, 128>}, {pipeline_mode = #tpu.pipeline_mode<synchronous>, transform_indices = @transform_7, window_bounds = array<i64: 128, 128>}, {pipeline_mode = #tpu.pipeline_mode<synchronous>, transform_indices = @transform_8, window_bounds = array<i64: 128, 128>}, {pipeline_mode = #tpu.pipeline_mode<synchronous>, transform_indices = @transform_9, window_bounds = array<i64: 128, 128>}, {pipeline_mode = #tpu.pipeline_mode<synchronous>, transform_indices = @transform_10, window_bounds = array<i64: 1, 128>}, {pipeline_mode = #tpu.pipeline_mode<synchronous>, transform_indices = @transform_11, window_bounds = array<i64: 128, 128>}, {pipeline_mode = #tpu.pipeline_mode<synchronous>, transform_indices = @transform_12, window_bounds = array<i64: 1, 128>}, {pipeline_mode = #tpu.pipeline_mode<synchronous>, transform_indices = @transform_13, window_bounds = array<i64: 128, 128>}, {pipeline_mode = #tpu.pipeline_mode<synchronous>, transform_indices = @transform_14, window_bounds = array<i64: 1, 128>}, {transform_indices = @transform_15, window_bounds = array<i64: 8, 128>}]} {
    %c0 = arith.constant 0 : index
    %c0_0 = arith.constant 0 : index
    %c0_1 = arith.constant 0 : index
    %0 = vector.load %arg1[%c0, %c0_0, %c0_1] : memref<8x16x128xbf16, #tpu.memory_space<vmem>>, vector<8x16x128xbf16>
    %1 = vector.extract_strided_slice %0 {offsets = [0, 0, 0], sizes = [8, 1, 128], strides = [1, 1, 1]} : vector<8x16x128xbf16> to vector<8x1x128xbf16>
    %2 = vector.shape_cast %1 : vector<8x1x128xbf16> to vector<8x128xbf16>
    %3 = arith.extf %2 : vector<8x128xbf16> to vector<8x128xf32>
    %c0_2 = arith.constant 0 : index
    %c0_3 = arith.constant 0 : index
    %4 = vector.load %arg2[%c0_2, %c0_3] : memref<8x1xi32, #tpu.memory_space<vmem>>, vector<8x1xi32>
    %5 = vector.shape_cast %4 : vector<8x1xi32> to vector<8x1x1xi32>
    %c0_4 = arith.constant 0 : index
    %c0_5 = arith.constant 0 : index
    %6 = vector.load %arg3[%c0_4, %c0_5] : memref<8x1xi32, #tpu.memory_space<vmem>>, vector<8x1xi32>
    %7 = vector.shape_cast %6 : vector<8x1xi32> to vector<8x1x1xi32>
    %8 = tpu.iota {dimensions = array<i32: 1>} : vector<8x16x1xi32>
    %9 = vector.broadcast %5 : vector<8x1x1xi32> to vector<8x16x1xi32>
    %10 = arith.cmpi sge, %8, %9 : vector<8x16x1xi32>
    %11 = vector.broadcast %7 : vector<8x1x1xi32> to vector<8x16x1xi32>
    %12 = arith.cmpi slt, %8, %11 : vector<8x16x1xi32>
    %13 = arith.andi %10, %12 : vector<8x16x1xi1>
    %cst = arith.constant 0.000000e+00 : bf16
    %14 = vector.shape_cast %13 : vector<8x16x1xi1> to vector<8x16x1xi1>
    %15 = vector.broadcast %14 : vector<8x16x1xi1> to vector<8x16x128xi1>
    %16 = vector.broadcast %cst : bf16 to vector<8x16x128xbf16>
    %17 = arith.select %15, %0, %16 : vector<8x16x128xi1>, vector<8x16x128xbf16>
    %18 = arith.extf %17 : vector<8x16x128xbf16> to vector<8x16x128xf32>
    %cst_6 = arith.constant dense<0.000000e+00> : vector<8x128xf32>
    %19 = vector.multi_reduction <add>, %18, %cst_6 [1] : vector<8x16x128xf32> to vector<8x128xf32>
    %c0_7 = arith.constant 0 : index
    %c0_8 = arith.constant 0 : index
    %20 = vector.load %arg3[%c0_7, %c0_8] : memref<8x1xi32, #tpu.memory_space<vmem>>, vector<8x1xi32>
    %c0_9 = arith.constant 0 : index
    %c0_10 = arith.constant 0 : index
    %21 = vector.load %arg2[%c0_9, %c0_10] : memref<8x1xi32, #tpu.memory_space<vmem>>, vector<8x1xi32>
    %22 = arith.subi %20, %21 : vector<8x1xi32>
    %c1_i32 = arith.constant 1 : i32
    %23 = vector.broadcast %c1_i32 : i32 to vector<8x1xi32>
    %24 = arith.maxsi %22, %23 : vector<8x1xi32>
    %25 = arith.sitofp %24 : vector<8x1xi32> to vector<8x1xf32>
    %26 = vector.broadcast %25 : vector<8x1xf32> to vector<8x128xf32>
    %27 = arith.divf %19, %26 : vector<8x128xf32>
    %c0_11 = arith.constant 0 : index
    %c0_12 = arith.constant 0 : index
    %c0_13 = arith.constant 0 : index
    %28 = vector.load %arg4[%c0_11, %c0_12, %c0_13] : memref<8x16x128xbf16, #tpu.memory_space<vmem>>, vector<8x16x128xbf16>
    %29 = vector.extract_strided_slice %28 {offsets = [0, 0, 0], sizes = [8, 1, 128], strides = [1, 1, 1]} : vector<8x16x128xbf16> to vector<8x1x128xbf16>
    %30 = vector.shape_cast %29 : vector<8x1x128xbf16> to vector<8x128xbf16>
    %31 = arith.extf %30 : vector<8x128xbf16> to vector<8x128xf32>
    %c0_14 = arith.constant 0 : index
    %c0_15 = arith.constant 0 : index
    %32 = vector.load %arg5[%c0_14, %c0_15] : memref<8x1xi32, #tpu.memory_space<vmem>>, vector<8x1xi32>
    %33 = vector.shape_cast %32 : vector<8x1xi32> to vector<8x1x1xi32>
    %c0_16 = arith.constant 0 : index
    %c0_17 = arith.constant 0 : index
    %34 = vector.load %arg6[%c0_16, %c0_17] : memref<8x1xi32, #tpu.memory_space<vmem>>, vector<8x1xi32>
    %35 = vector.shape_cast %34 : vector<8x1xi32> to vector<8x1x1xi32>
    %36 = tpu.iota {dimensions = array<i32: 1>} : vector<8x16x1xi32>
    %37 = vector.broadcast %33 : vector<8x1x1xi32> to vector<8x16x1xi32>
    %38 = arith.cmpi sge, %36, %37 : vector<8x16x1xi32>
    %39 = vector.broadcast %35 : vector<8x1x1xi32> to vector<8x16x1xi32>
    %40 = arith.cmpi slt, %36, %39 : vector<8x16x1xi32>
    %41 = arith.andi %38, %40 : vector<8x16x1xi1>
    %cst_18 = arith.constant 0.000000e+00 : bf16
    %42 = vector.shape_cast %41 : vector<8x16x1xi1> to vector<8x16x1xi1>
    %43 = vector.broadcast %42 : vector<8x16x1xi1> to vector<8x16x128xi1>
    %44 = vector.broadcast %cst_18 : bf16 to vector<8x16x128xbf16>
    %45 = arith.select %43, %28, %44 : vector<8x16x128xi1>, vector<8x16x128xbf16>
    %46 = arith.extf %45 : vector<8x16x128xbf16> to vector<8x16x128xf32>
    %cst_19 = arith.constant dense<0.000000e+00> : vector<8x128xf32>
    %47 = vector.multi_reduction <add>, %46, %cst_19 [1] : vector<8x16x128xf32> to vector<8x128xf32>
    %c0_20 = arith.constant 0 : index
    %c0_21 = arith.constant 0 : index
    %48 = vector.load %arg6[%c0_20, %c0_21] : memref<8x1xi32, #tpu.memory_space<vmem>>, vector<8x1xi32>
    %c0_22 = arith.constant 0 : index
    %c0_23 = arith.constant 0 : index
    %49 = vector.load %arg5[%c0_22, %c0_23] : memref<8x1xi32, #tpu.memory_space<vmem>>, vector<8x1xi32>
    %50 = arith.subi %48, %49 : vector<8x1xi32>
    %c1_i32_24 = arith.constant 1 : i32
    %51 = vector.broadcast %c1_i32_24 : i32 to vector<8x1xi32>
    %52 = arith.maxsi %50, %51 : vector<8x1xi32>
    %53 = arith.sitofp %52 : vector<8x1xi32> to vector<8x1xf32>
    %54 = vector.broadcast %53 : vector<8x1xf32> to vector<8x128xf32>
    %55 = arith.divf %47, %54 : vector<8x128xf32>
    %c0_25 = arith.constant 0 : index
    %c0_26 = arith.constant 0 : index
    %56 = vector.load %arg7[%c0_25, %c0_26] : memref<128x128xf32, #tpu.memory_space<vmem>>, vector<128x128xf32>
    %cst_27 = arith.constant dense<0.000000e+00> : vector<8x128xf32>
    %57 = tpu.matmul %3, %56, %cst_27 {dimension_numbers = #tpu.dot_dimension_numbers<[1], [0], [0], [1], [0, 0, 1, 1], [], []>} : vector<8x128xf32>, vector<128x128xf32>, vector<8x128xf32> -> vector<8x128xf32>
    %c0_28 = arith.constant 0 : index
    %c0_29 = arith.constant 0 : index
    %58 = vector.load %arg8[%c0_28, %c0_29] : memref<128x128xf32, #tpu.memory_space<vmem>>, vector<128x128xf32>
    %cst_30 = arith.constant dense<0.000000e+00> : vector<8x128xf32>
    %59 = tpu.matmul %27, %58, %cst_30 {dimension_numbers = #tpu.dot_dimension_numbers<[1], [0], [0], [1], [0, 0, 1, 1], [], []>} : vector<8x128xf32>, vector<128x128xf32>, vector<8x128xf32> -> vector<8x128xf32>
    %60 = arith.addf %57, %59 : vector<8x128xf32>
    %c0_31 = arith.constant 0 : index
    %c0_32 = arith.constant 0 : index
    %61 = vector.load %arg9[%c0_31, %c0_32] : memref<128x128xf32, #tpu.memory_space<vmem>>, vector<128x128xf32>
    %cst_33 = arith.constant dense<0.000000e+00> : vector<8x128xf32>
    %62 = tpu.matmul %31, %61, %cst_33 {dimension_numbers = #tpu.dot_dimension_numbers<[1], [0], [0], [1], [0, 0, 1, 1], [], []>} : vector<8x128xf32>, vector<128x128xf32>, vector<8x128xf32> -> vector<8x128xf32>
    %63 = arith.addf %60, %62 : vector<8x128xf32>
    %c0_34 = arith.constant 0 : index
    %c0_35 = arith.constant 0 : index
    %64 = vector.load %arg10[%c0_34, %c0_35] : memref<128x128xf32, #tpu.memory_space<vmem>>, vector<128x128xf32>
    %cst_36 = arith.constant dense<0.000000e+00> : vector<8x128xf32>
    %65 = tpu.matmul %55, %64, %cst_36 {dimension_numbers = #tpu.dot_dimension_numbers<[1], [0], [0], [1], [0, 0, 1, 1], [], []>} : vector<8x128xf32>, vector<128x128xf32>, vector<8x128xf32> -> vector<8x128xf32>
    %66 = arith.addf %63, %65 : vector<8x128xf32>
    %c0_37 = arith.constant 0 : index
    %c0_38 = arith.constant 0 : index
    %67 = vector.load %arg11[%c0_37, %c0_38] : memref<1x128xf32, #tpu.memory_space<vmem>>, vector<1x128xf32>
    %68 = vector.broadcast %67 : vector<1x128xf32> to vector<8x128xf32>
    %69 = arith.addf %66, %68 : vector<8x128xf32>
    %cst_39 = arith.constant 0.000000e+00 : f32
    %70 = vector.broadcast %cst_39 : f32 to vector<8x128xf32>
    %71 = arith.maximumf %69, %70 : vector<8x128xf32>
    %c0_40 = arith.constant 0 : index
    %c0_41 = arith.constant 0 : index
    %72 = vector.load %arg12[%c0_40, %c0_41] : memref<128x128xf32, #tpu.memory_space<vmem>>, vector<128x128xf32>
    %cst_42 = arith.constant dense<0.000000e+00> : vector<8x128xf32>
    %73 = tpu.matmul %71, %72, %cst_42 {dimension_numbers = #tpu.dot_dimension_numbers<[1], [0], [0], [1], [0, 0, 1, 1], [], []>} : vector<8x128xf32>, vector<128x128xf32>, vector<8x128xf32> -> vector<8x128xf32>
    %c0_43 = arith.constant 0 : index
    %c0_44 = arith.constant 0 : index
    %74 = vector.load %arg13[%c0_43, %c0_44] : memref<1x128xf32, #tpu.memory_space<vmem>>, vector<1x128xf32>
    %75 = vector.broadcast %74 : vector<1x128xf32> to vector<8x128xf32>
    %76 = arith.addf %73, %75 : vector<8x128xf32>
    %77 = math.tanh %76 : vector<8x128xf32>
    %c0_45 = arith.constant 0 : index
    %c0_46 = arith.constant 0 : index
    %78 = vector.load %arg14[%c0_45, %c0_46] : memref<128x128xf32, #tpu.memory_space<vmem>>, vector<128x128xf32>
    %cst_47 = arith.constant dense<0.000000e+00> : vector<8x128xf32>
    %79 = tpu.matmul %77, %78, %cst_47 {dimension_numbers = #tpu.dot_dimension_numbers<[1], [0], [0], [1], [0, 0, 1, 1], [], []>} : vector<8x128xf32>, vector<128x128xf32>, vector<8x128xf32> -> vector<8x128xf32>
    %c0_48 = arith.constant 0 : index
    %c0_49 = arith.constant 0 : index
    %80 = vector.load %arg15[%c0_48, %c0_49] : memref<1x128xf32, #tpu.memory_space<vmem>>, vector<1x128xf32>
    %81 = vector.broadcast %80 : vector<1x128xf32> to vector<8x128xf32>
    %82 = arith.addf %79, %81 : vector<8x128xf32>
    %c0_50 = arith.constant 0 : index
    %c0_51 = arith.constant 0 : index
    %83 = vector.load %arg16[%c0_50, %c0_51] : memref<8x128xf32, #tpu.memory_space<vmem>>, vector<8x128xf32>
    tpu.vector_store %arg16[%c0_50, %c0_51], %82 {strides = array<i32>} : memref<8x128xf32, #tpu.memory_space<vmem>>, vector<8x128xf32>,
    return
  }
  func.func @transform_0(%arg0: i32) -> (i32, i32, i32) {
    %c0_i32 = arith.constant 0 : i32
    %c0_i32_0 = arith.constant 0 : i32
    %c0_i32_1 = arith.constant 0 : i32
    return %arg0, %c0_i32, %c0_i32_0 : i32, i32, i32
  }
  func.func @transform_1(%arg0: i32) -> (i32, i32) {
    %c0_i32 = arith.constant 0 : i32
    %c0_i32_0 = arith.constant 0 : i32
    return %arg0, %c0_i32 : i32, i32
  }
  func.func @transform_2(%arg0: i32) -> (i32, i32) {
    %c0_i32 = arith.constant 0 : i32
    %c0_i32_0 = arith.constant 0 : i32
    return %arg0, %c0_i32 : i32, i32
  }
  func.func @transform_3(%arg0: i32) -> (i32, i32, i32) {
    %c0_i32 = arith.constant 0 : i32
    %c0_i32_0 = arith.constant 0 : i32
    %c0_i32_1 = arith.constant 0 : i32
    return %arg0, %c0_i32, %c0_i32_0 : i32, i32, i32
  }
  func.func @transform_4(%arg0: i32) -> (i32, i32) {
    %c0_i32 = arith.constant 0 : i32
    %c0_i32_0 = arith.constant 0 : i32
    return %arg0, %c0_i32 : i32, i32
  }
  func.func @transform_5(%arg0: i32) -> (i32, i32) {
    %c0_i32 = arith.constant 0 : i32
    %c0_i32_0 = arith.constant 0 : i32
    return %arg0, %c0_i32 : i32, i32
  }
  func.func @transform_6(%arg0: i32) -> (i32, i32) {
    %c0_i32 = arith.constant 0 : i32
    %c0_i32_0 = arith.constant 0 : i32
    %c0_i32_1 = arith.constant 0 : i32
    return %c0_i32, %c0_i32_0 : i32, i32
  }
  func.func @transform_7(%arg0: i32) -> (i32, i32) {
    %c0_i32 = arith.constant 0 : i32
    %c0_i32_0 = arith.constant 0 : i32
    %c0_i32_1 = arith.constant 0 : i32
    return %c0_i32, %c0_i32_0 : i32, i32
  }
  func.func @transform_8(%arg0: i32) -> (i32, i32) {
    %c0_i32 = arith.constant 0 : i32
    %c0_i32_0 = arith.constant 0 : i32
    %c0_i32_1 = arith.constant 0 : i32
    return %c0_i32, %c0_i32_0 : i32, i32
  }
  func.func @transform_9(%arg0: i32) -> (i32, i32) {
    %c0_i32 = arith.constant 0 : i32
    %c0_i32_0 = arith.constant 0 : i32
    %c0_i32_1 = arith.constant 0 : i32
    return %c0_i32, %c0_i32_0 : i32, i32
  }
  func.func @transform_10(%arg0: i32) -> (i32, i32) {
    %c0_i32 = arith.constant 0 : i32
    %c0_i32_0 = arith.constant 0 : i32
    %c0_i32_1 = arith.constant 0 : i32
    return %c0_i32, %c0_i32_0 : i32, i32
  }
  func.func @transform_11(%arg0: i32) -> (i32, i32) {
    %c0_i32 = arith.constant 0 : i32
    %c0_i32_0 = arith.constant 0 : i32
    %c0_i32_1 = arith.constant 0 : i32
    return %c0_i32, %c0_i32_0 : i32, i32
  }
  func.func @transform_12(%arg0: i32) -> (i32, i32) {
    %c0_i32 = arith.constant 0 : i32
    %c0_i32_0 = arith.constant 0 : i32
    %c0_i32_1 = arith.constant 0 : i32
    return %c0_i32, %c0_i32_0 : i32, i32
  }
  func.func @transform_13(%arg0: i32) -> (i32, i32) {
    %c0_i32 = arith.constant 0 : i32
    %c0_i32_0 = arith.constant 0 : i32
    %c0_i32_1 = arith.constant 0 : i32
    return %c0_i32, %c0_i32_0 : i32, i32
  }
  func.func @transform_14(%arg0: i32) -> (i32, i32) {
    %c0_i32 = arith.constant 0 : i32
    %c0_i32_0 = arith.constant 0 : i32
    %c0_i32_1 = arith.constant 0 : i32
    return %c0_i32, %c0_i32_0 : i32, i32
  }
  func.func @transform_15(%arg0: i32) -> (i32, i32) {
    %c0_i32 = arith.constant 0 : i32
    %c0_i32_0 = arith.constant 0 : i32
    return %arg0, %c0_i32 : i32, i32
  }
}

</mosaic_0001>

<bundles_post_ra>
// kernel: tpu_custom_call.1
= control target key start
LH: loop header
LB: loop body
LE: loop exit
PB: predicated region body
PF: predicated region fallthrough
CT: control target
= control target key end

     0   :  { %s4160_s0 = inlined_call_operand.hbm [shape: bf16[16,16,128], index: 0, kind: input, shape index: {}]   ;;  %s4161_s1 = inlined_call_operand.vmem [shape: s32[16,1], index: 1, kind: input, shape index: {}]   ;;  %s4162_s2 = inlined_call_operand.vmem [shape: s32[16,1], index: 2, kind: input, shape index: {}]   ;;  %s4163_s3 = inlined_call_operand.hbm [shape: bf16[16,16,128], index: 3, kind: input, shape index: {}]   ;;  %s4164_s4 = inlined_call_operand.vmem [shape: s32[16,1], index: 4, kind: input, shape index: {}]   ;;  %s4165_s5 = inlined_call_operand.vmem [shape: s32[16,1], index: 5, kind: input, shape index: {}]   ;;  %s4166_s6 = inlined_call_operand.hbm [shape: f32[128,128], index: 6, kind: input, shape index: {}]   ;;  %s4167_s7 = inlined_call_operand.hbm [shape: f32[128,128], index: 7, kind: input, shape index: {}]   ;;  %s4168_s8 = inlined_call_operand.hbm [shape: f32[128,128], index: 8, kind: input, shape index: {}]   ;;  %s4169_s9 = inlined_call_operand.hbm [shape: f32[128,128], index: 9, kind: input, shape index: {}]   ;;  %s4170_s10 = inlined_call_operand.vmem [shape: f32[1,128], index: 10, kind: input, shape index: {}]   ;;  %s4171_s11 = inlined_call_operand.hbm [shape: f32[128,128], index: 11, kind: input, shape index: {}]   ;;  %s4172_s12 = inlined_call_operand.vmem [shape: f32[1,128], index: 12, kind: input, shape index: {}]   ;;  %s4173_s13 = inlined_call_operand.hbm [shape: f32[128,128], index: 13, kind: input, shape index: {}]   ;;  %s4174_s14 = inlined_call_operand.vmem [shape: f32[1,128], index: 14, kind: input, shape index: {}]   ;;  %s4175_s15 = inlined_call_operand.hbm [shape: f32[16,128], index: 15, kind: output, shape index: {}]  }
   0x1   :  { %4183 = sst [smem:[#allocation28_spill]] %s4160_s0 }
   0x2   :  { %4184 = sst [smem:[#allocation29_spill]] %s4166_s6 }
   0x3   :  { %4185 = sst [smem:[#allocation30_spill]] %s4167_s7 }
   0x4   :  { %4186 = sst [smem:[#allocation31_spill]] %s4168_s8 }
   0x5   :  { %4187 = sst [smem:[#allocation32_spill]] %s4169_s9 }
   0x6   :  { %4188 = sst [smem:[#allocation33_spill]] %s4171_s11 }
   0x7   :  { %4189 = sst [smem:[#allocation34_spill]] %s4172_s12 }
   0x8   :  { %4190 = sst [smem:[#allocation35_spill]] %s4173_s13 }
   0x9   :  { %4191 = sst [smem:[#allocation36_spill]] %s4174_s14 }
   0xa   :  { %4192 = sst [smem:[#allocation37_spill]] %s4175_s15 }
   0xb   :  { %20 = vsyncpa [#allocation3], 0 }
   0xc   :  { %22 = vsyncpa [#allocation3 + $0x1], 0 }
   0xd   :  { %23 = vsyncpa [#allocation6], 0 }
   0xe   :  { %25 = vsyncpa [#allocation6 + $0x1], 0 }
   0xf   :  { %26 = vsyncpa [#allocation9], 0 }
  0x10   :  { %27 = vsyncpa [#allocation12], 0 }
  0x11   :  { %28 = vsyncpa [#allocation15], 0 }
  0x12   :  { %29 = vsyncpa [#allocation4], 0 }
  0x13   :  { %31 = vsyncpa [#allocation4 + $0x1], 0  ;;  %s2756_s18 = smov 0   ;;  %s2758_s19 = smov 0  }
  0x14   :  { %s2760_s20 = smov 0   ;;  %s2762_s21 = smov 0  }
  0x15 LB: > { %4193 = sst [smem:[#allocation24_spill]] %s2659_s20  ;;  %s2780_s25 = sadd.s32 4294967295, %s2663_s21   ;;  %s2663_s21 = sphi %s2762_s21, %s4336_s21   ;;  %s2659_s20 = sphi %s2760_s20, %s4338_s20   ;;  %s2655_s19 = sphi %s2758_s19, %s4340_s19   ;;  %s2651_s18 = sphi %s2756_s18, %s4339_s18  }
  0x16   : > { %s4194_s6 = sld [smem:[#allocation29_spill]]  ;;  %p2142_p0 = scmp.ge.s32.totalorder %s2663_s21, 1 }
  0x17   : > { %p58_p1 = scmp.eq.s32.totalorder %s2780_s25, 0  ;;  %p413_p2 = scmp.lt.s32.totalorder %s2663_s21, 3 }
  0x18   : > { %s2665_s27 = smov [#allocation7]   ;;  %s4196_s7 = sld [smem:[#allocation30_spill]] }
  0x19   : > { %p2785_p3 = pnand %p2142_p0, %p413_p2  ;;  %s426_s28 = sshll.u32 %s2665_s27, 4  ;;  %s427_s28 = int_to_ptr.vmem [resolvable:$true] %s426_s28 }
  0x1a   : > { %s4198_s9 = sld [smem:[#allocation32_spill]]  ;;  %s2667_s15 = smov 128  }
  0x1b   : > { %p2210_p4 = pneg %p2785_p3  ;;  %s2668_s12 = smov 8  }
  0x1c   : > { %s424_s24 = sshll.u32 %s4194_s6, 4  ;;  %s2666_s6 = smov [#allocation8]   ;;  %s425_s24 = int_to_ptr.hbm [resolvable:$true] %s424_s24 }
  0x1d   : > { %p2797_p6 = pnand %p2210_p4, %p58_p1  ;;  %s440_s14 = sshll.u32 %s2666_s6, 4  ;;  %s441_s14 = int_to_ptr.vmem [resolvable:$true] %s440_s14 }
  0x1e   : > { %s438_s16 = sshll.u32 %s4196_s7, 4  ;;  %s4199_s8 = sld [smem:[#allocation31_spill]]  ;;  %s439_s16 = int_to_ptr.hbm [resolvable:$true] %s438_s16 }
  0x1f   : > { %2213 = dma.hbm_to_vmem [thread:$0]  (!%p2797_p6), %s425_s24, 2048, %s427_s28, [#allocation6], %s2667_s15, %s2667_s15, %s2668_s12  }
  0x20   : > { %s466_s27 = sshll.u32 %s4198_s9, 4  ;;  %s2669_s6 = smov [#allocation11]   ;;  %s467_s27 = int_to_ptr.hbm [resolvable:$true] %s466_s27 }
  0x21   : > { %2216 = dma.hbm_to_vmem [thread:$0]  (!%p2797_p6), %s439_s16, 2048, %s441_s14, [#allocation9], %s2667_s15, %s2667_s15, %s2668_s12  }
  0x22   : > { %s468_s23 = sshll.u32 %s2669_s6, 4  ;;  %s2670_s24 = smov [#allocation10]   ;;  %s469_s23 = int_to_ptr.vmem [resolvable:$true] %s468_s23 }
  0x23   : > { %2222 = dma.hbm_to_vmem [thread:$0]  (!%p2797_p6), %s467_s27, 2048, %s469_s23, [#allocation12], %s2667_s15, %s2667_s15, %s2668_s12  }
  0x24   : > { %s452_s22 = sshll.u32 %s4199_s8, 4  ;;  %s454_s28 = sshll.u32 %s2670_s24, 4  ;;  %s453_s22 = int_to_ptr.hbm [resolvable:$true] %s452_s22  ;;  %s455_s28 = int_to_ptr.vmem [resolvable:$true] %s454_s28 }
  0x25   : > { %s4200_s11 = sld [smem:[#allocation33_spill]]  ;;  %s2671_s6 = smov [#allocation13]  }
  0x26   : > { %2219 = dma.hbm_to_vmem [thread:$0]  (!%p2797_p6), %s453_s22, 2048, %s455_s28, [#allocation9], %s2667_s15, %s2667_s15, %s2668_s12  }
  0x27   : > { %s4201_s13 = sld [smem:[#allocation35_spill]]  ;;  %s485_s7 = sshll.u32 %s2671_s6, 4  ;;  %s486_s7 = int_to_ptr.vmem [resolvable:$true] %s485_s7 }
  0x28   : > { %s2672_s22 = smov [#allocation14]   ;;  %s2141_s24 = sadd.s32 4294967294, %s2663_s21  }
  0x29   : > { %s502_s23 = sshll.u32 %s2672_s22, 4  ;;  %s2845_s28 = sadd.s32 1, %s2663_s21   ;;  %s503_s23 = int_to_ptr.vmem [resolvable:$true] %s502_s23 }
  0x2a   : > { %4202 = sst [smem:[#allocation25_spill]] %s2845_s28  ;;  %s41_s14 = ssub.s32 %s2663_s21, %s2845_s28 }
  0x2b   : > { %s483_s16 = sshll.u32 %s4200_s11, 4  ;;  %s44_s29 = sadd.s32 1, %s2659_s20  ;;  %s484_s16 = int_to_ptr.hbm [resolvable:$true] %s483_s16 }
  0x2c   : > { %2225 = dma.hbm_to_vmem [thread:$0]  (!%p2797_p6), %s484_s16, 2048, %s486_s7, [#allocation12], %s2667_s15, %s2667_s15, %s2668_s12  }
  0x2d   : > { %s500_s30 = sshll.u32 %s4201_s13, 4  ;;  %p42_p7 = scmp.eq.s32.totalorder %s41_s14, 0  ;;  %s501_s30 = int_to_ptr.hbm [resolvable:$true] %s500_s30 }
  0x2e   : > { %2228 = dma.hbm_to_vmem [thread:$0]  (!%p2797_p6), %s501_s30, 2048, %s503_s23, [#allocation15], %s2667_s15, %s2667_s15, %s2668_s12  }
  0x2f   : > { %p51_p8 = scmp.ne.s32.totalorder %s2659_s20, %s2655_s19  ;;  %p52_p9 = scmp.eq.s32.totalorder %s2663_s21, 0 }
  0x30   : > { %p57_p10 = scmp.ne.s32.totalorder %s2655_s19, %s2651_s18  ;;  %p400_p13 = scmp.eq.s32.totalorder %s2780_s25, 1 }
  0x31   : > { %s2856_s16 = scalar_select %p42_p7, %s2659_s20, %s44_s29  }
  0x32   : > { %p2858_p11 = por %p52_p9, %p51_p8  ;;  %p2864_p12 = por %p58_p1, %p57_p10 }
  0x33   : > { %4203 = sst [smem:[#allocation26_spill]] %s2856_s16  ;;  %p406_p0 = scmp.eq.s32.totalorder %s2141_s24, 1 }
  0x34   : > { %p2246_p2 = scmp.lt.s32.totalorder %s2663_s21, 2  ;;  %s519_s15 = sand.u32 1, %s2659_s20  }
  0x35   : > { %p2871_p4 = por %p400_p13, %p51_p8  ;;  %p2875_p6 = por %p406_p0, %p57_p10 }
  0x36   : > { %s2879_s6 = sshll.u32 %s519_s15, 6  ;;  %s4177_s7 = sshll.u32 %s2663_s21, 6 }
  0x37   : > { %s4207_s30 = scalar_select %p2875_p6, 1, 0 }
  0x38   : > { %s4209_s0 = sld [smem:[#allocation28_spill]]  ;;  %s523_s24 = scalar_lea.vmem [#allocation2], %s2879_s6 }
  0x39   : > { %4208 = sst [smem:[#allocation27_spill]] %s4207_s30  ;;  %s532_s29 = sshll.u32 %s523_s24, 4  ;;  %s533_s29 = int_to_ptr.vmem [resolvable:$true] %s532_s29 }
  0x3a   : > { %p2890_p7 = pnand %p2246_p2, %p2858_p11  ;;  %s520_s11 = scalar_lea.sflag [#allocation3], %s519_s15 }
  0x3c   : > { %p2521_p9 = pneg %p2890_p7 }
  0x3e   : > { %s529_s14 = scalar_lea.hbm %s4209_s0, %s4177_s7  ;;  %s2524_s17 = scalar_lea.hbm %s4209_s0, 128 }
  0x3f   : > { %s530_s8 = sshll.u32 %s529_s14, 4  ;;  %s531_s8 = int_to_ptr.hbm [resolvable:$true] %s530_s8 }
  0x40   : > { %s2517_s13 = sshra.s32 %s531_s8, 4  ;;  %s2518_s13 = int_to_ptr.hbm [resolvable:$true] %s2517_s13 }
  0x41   : > { %s2519_s16 = scalar_lea.hbm %s2518_s13, 64  ;;  %p2525_p11 = scmp.lt.s32.totalorder %s2518_s13, %s4209_s0 }
  0x42   : > { %p2520_p8 = scmp.ne.s32.totalorder %s2518_s13, %s2519_s16  ;;  %p2526_p0 = scmp.lt.s32.totalorder %s2524_s17, %s2519_s16 }
  0x44   : > { %p2522_p10 = pnand %p2521_p9, %p2520_p8  ;;  %p2527_p2 = por %p2526_p0, %p2525_p11 }
  0x46   : > { %p2523_p13 = pneg %p2522_p10 }
  0x48   : > { %p2528_p5 = pnand %p2527_p2, %p2523_p13 }
  0x4a   : > { %2531 = shalt.err (!%p2528_p5)
}
  0x4b   : > { %s2673_s15 = smov 64   ;;  %s2674_s7 = smov 4  }
  0x4c   : > { %2232 = dma.hbm_to_vmem [thread:$0]  (!%p2890_p7), %s531_s8, 1024, %s533_s29, %s520_s11, %s2673_s15, %s2673_s15, %s2674_s7  }
  0x4d   : > { %s4211_s20 = sshll.u32 %s2663_s21, 6  ;;  %s560_s14 = scalar_lea.vmem [#allocation5], %s2879_s6 }
  0x4e   : > { %s566_s28 = scalar_lea.hbm %s4163_s3, %s4211_s20  ;;  %s569_s13 = sshll.u32 %s560_s14, 4  ;;  %s570_s13 = int_to_ptr.vmem [resolvable:$true] %s569_s13 }
  0x4f   : > { %s567_s16 = sshll.u32 %s566_s28, 4  ;;  %s556_s17 = sand.u32 1, %s2663_s21   ;;  %s568_s16 = int_to_ptr.hbm [resolvable:$true] %s567_s16 }
  0x50   : > { %s557_s24 = scalar_lea.sflag [#allocation6], %s556_s17  ;;  %s2547_s0 = sshra.s32 %s568_s16, 4  ;;  %s2548_s0 = int_to_ptr.hbm [resolvable:$true] %s2547_s0 }
  0x51   : > { %s2549_s30 = scalar_lea.hbm %s2548_s0, 64  ;;  %s2554_s29 = scalar_lea.hbm %s4163_s3, 128 }
  0x52   : > { %p2550_p5 = scmp.ne.s32.totalorder %s2548_s0, %s2549_s30  ;;  %p2555_p13 = scmp.lt.s32.totalorder %s2548_s0, %s4163_s3 }
  0x53   : > { %p2556_p11 = scmp.lt.s32.totalorder %s2554_s29, %s2549_s30 }
  0x54   : > { %p2552_p8 = pnand %p2550_p5, %p2521_p9 }
  0x55   : > { %p2557_p0 = por %p2556_p11, %p2555_p13 }
  0x56   : > { %p2553_p10 = pneg %p2552_p8 }
  0x58   : > { %p2558_p2 = pnand %p2557_p0, %p2553_p10 }
  0x5a   : > { %2561 = shalt.err (!%p2558_p2)
}
  0x5b   : > { %2235 = dma.hbm_to_vmem [thread:$0]  (!%p2890_p7), %s568_s16, 1024, %s570_s13, %s557_s24, %s2673_s15, %s2673_s15, %s2674_s7  }
  0x5c   : > { %595 = sbr.rel (%p2785_p3) target bundleno = 772 (0x304), region = 80  ;;  %s2928_s28 = sand.u32 (!%p2785_p3), 1, %s2655_s19  }
  0x5d   : > { %s2159_s22 = sshll.u32 (!%p2785_p3), %s2928_s28, 6  ;;  %s598_s23 = scalar_lea.sflag (!%p2785_p3), [#allocation3], %s2928_s28 }
  0x5e   : > { %s2932_s14 = scalar_lea.vmem (!%p2785_p3), [#allocation2], %s2159_s22 }
  0x61   : > { %2622 = dma.done.wait (%p2864_p12), %s598_s23, 1024  }
  0x62   : > { %2624 = vsyncadd (%p2864_p12), %s598_s23, 4294966272  ;;  %s607_s0 = sand.u32 1, %s2780_s25   ;;  %s2939_s26 = scalar_lea.vmem [#allocation5], %s2159_s22 }
  0x63   : > { %s608_s9 = scalar_lea.sflag [#allocation6], %s607_s0 }
  0x64   : > { %2626 = dma.done.wait (%p2864_p12), %s608_s9, 1024  }
  0x65   : > { %2628 = vsyncadd (%p2864_p12), %s608_s9, 4294966272 }
  0x66   : > { %2630 = dma.done.wait (%p58_p1), [#allocation6], 2048  }
  0x67   : > { %2632 = vsyncadd (%p58_p1), [#allocation6], 4294965248 }
  0x68   : > { %2634 = dma.done.wait (%p58_p1), [#allocation9], 4096  }
  0x69   : > { %2636 = vsyncadd (%p58_p1), [#allocation9], 4294963200 }
  0x6a   : > { %2638 = dma.done.wait (%p58_p1), [#allocation12], 4096  }
  0x6b   : > { %2640 = vsyncadd (%p58_p1), [#allocation12], 4294963200 }
  0x6c   : > { %2642 = dma.done.wait (%p58_p1), [#allocation15], 2048  }
  0x6d   : > { %2644 = vsyncadd (%p58_p1), [#allocation15], 4294965248  ;;  %p711_p3 = scmp.lt.s32.totalorder %s2780_s25, 1  ;;  %v769_v0 = vlaneseq  ;;  %v2675_v1 = vmov 0   ;;  %s4333_s8 = sld [smem:[#allocation36_spill]] }
  0x6e   : > { %2297 = vset.pattern.permute.xlu1 %v2675_v1  ;;  %2299 = vset.pattern.permute.xlu2 %v2675_v1  ;;  %s1928_s6 = scalar_lea.sflag [#allocation4], %s2928_s28 }
  0x6f   : > { %2298 = vset.pattern.permute.xlu0 %v2675_v1  ;;  %s712_s12 = scalar_select %p711_p3, %s2780_s25, 1  ;;  %v2966_v2 = vshrl.u32 %v769_v0, 7 }
  0x71   : > { %s2168_s30 = sshll.u32 %s712_s12, 3  ;;  %v2985_v5 = vadd.s32 8, %v2966_v2  ;;  %s2167_s12 = sshll.u32 %s2928_s28, 3 }
  0x72   : > { %s723_s13 = scalar_lea.vmem %s4164_s4, %s2168_s30  ;;  %s727_s24 = scalar_lea.vmem %s4165_s5, %s2168_s30 }
  0x73   : > { %s714_s29 = scalar_lea.vmem %s4161_s1, %s2168_s30  ;;  %s718_s22 = scalar_lea.vmem %s4162_s2, %s2168_s30  ;;  %v2980_v3 = vld [vmem:[%s723_s13] sm:$0xff] }
  0x74   : > { %v2982_v4 = vld [vmem:[%s727_s24] sm:$0xff]  ;;  %v1189_v8 = vrot.slane %v2980_v3, 2  ;;  %v1188_v10 = vrot.slane %v2980_v3, 1  ;;  %v1203_v26 = vperm.slane %v2980_v3, 0  ;;  %v1190_v31 = vrot.slane %v2980_v3, 3  ;;  %s2173_s30 = sshll.u32 %s2780_s25, 3 }
  0x75   : > { %v2987_v6 = vld [vmem:[%s714_s29] sm:$0xff]  ;;  %v1451_v7 = vsub.s32 %v2982_v4, %v2980_v3  ;;  %v1197_v9 = vrot.slane %v2982_v4, 2  ;;  %v1196_v12 = vrot.slane %v2982_v4, 1  ;;  %v1227_v27 = vperm.slane %v2982_v4, 0  ;;  %s4332_s13 = sld [smem:[#allocation37_spill]]  ;;  %s709_s11 = scalar_lea.vmem [#allocation16], %s2167_s12 }
  0x76   : > { %v2994_v11 = vld [vmem:[%s718_s22] sm:$0xff]  ;;  %v754_v13 = vrot.slane %v2987_v6, 1  ;;  %v1205_v15 = vperm.slane %v1189_v8, 0  ;;  %v1204_v17 = vperm.slane %v1188_v10, 0  ;;  %v1198_v32 = vrot.slane %v2982_v4, 3  ;;  %s1940_s29 = sshll.u32 %s709_s11, 4  ;;  %s1941_s29 = int_to_ptr.vmem [resolvable:$true] %s1940_s29 }
  0x77   : > { %v762_v14 = vrot.slane %v2994_v11, 1  ;;  %vm1452_vm0 = vcmp.gt.s32.totalorder %v1451_v7, 1  ;;  %v1229_v16 = vperm.slane %v1197_v9, 0  ;;  %v1228_v19 = vperm.slane %v1196_v12, 0  ;;  %v731_v9 = vld [vmem:[%s2932_s14 + $0x8] sm:$0xf] }
  0x78   : > { %v1453_v18 = vsel %vm1452_vm0, %v1451_v7, 1  ;;  %v773_v20 = vperm.slane %v754_v13, 0  ;;  %vm1216_vm1 = vcmp.ge.s32.totalorder %v2985_v5, %v1205_v15  ;;  %vm1213_vm3 = vcmp.ge.s32.totalorder %v2966_v2, %v1204_v17 }
  0x79   : > { %v797_v21 = vperm.slane %v762_v14, 0  ;;  %v1454_v22 = vcvt.s32.f32 %v1453_v18  ;;  %vm1240_vm2 = vcmp.lt.s32.totalorder %v2985_v5, %v1229_v16  ;;  %vm1237_vm5 = vcmp.lt.s32.totalorder %v2966_v2, %v1228_v19 }
  0x7a   : > { %vm1256_vm4 = vmand %vm1216_vm1, %vm1240_vm2  ;;  %vm1215_vm6 = vcmp.ge.s32.totalorder %v2966_v2, %v1205_v15  ;;  %vm1239_vm7 = vcmp.lt.s32.totalorder %v2966_v2, %v1229_v16  ;;  %vm782_vm9 = vcmp.ge.s32.totalorder %v2966_v2, %v773_v20  ;;  %vm1214_vm11 = vcmp.ge.s32.totalorder %v2985_v5, %v1204_v17 }
  0x7b   : > { %1457 = vperm.xlu1 %2297, %v1454_v22   ;;  %v1272_v23 = vsel %vm1256_vm4, 1, %v2675_v1  ;;  %vm1253_vm8 = vmand %vm1213_vm3, %vm1237_vm5  ;;  %vm806_vm10 = vcmp.lt.s32.totalorder %v2966_v2, %v797_v21  ;;  %vm1238_vm12 = vcmp.lt.s32.totalorder %v2985_v5, %v1228_v19  ;;  %v1020_v25 = vsub.s32 %v2994_v11, %v2987_v6  ;;  %s1938_s16 = scalar_lea.hbm %s4332_s13, %s2173_s30  ;;  %s2597_s0 = scalar_lea.hbm %s4332_s13, 16 }
  0x7c   : > { %1299 = vperm.xlu2 %2299, %v1272_v23   ;;  %v1269_v24 = vsel %vm1253_vm8, 1, %v2675_v1  ;;  %vm1255_vm13 = vmand %vm1215_vm6, %vm1239_vm7  ;;  %vm783_vm1 = vcmp.ge.s32.totalorder %v2985_v5, %v773_v20  ;;  %vm807_vm2 = vcmp.lt.s32.totalorder %v2985_v5, %v797_v21  ;;  %vm1211_vm3 = vcmp.ge.s32.totalorder %v2966_v2, %v1203_v26  ;;  %s1942_s20 = sshll.u32 %s1938_s16, 4  ;;  %s1943_s20 = int_to_ptr.hbm [resolvable:$true] %s1942_s20 }
  0x7d   : > { %1290 = vperm.xlu0 %2298, %v1269_v24   ;;  %vm822_vm14 = vmand %vm782_vm9, %vm806_vm10  ;;  %v1271_v28 = vsel %vm1255_vm13, 1, %v2675_v1  ;;  %vm1021_vm0 = vcmp.gt.s32.totalorder %v1020_v25, 1  ;;  %vm1235_vm4 = vcmp.lt.s32.totalorder %v2966_v2, %v1227_v27  ;;  %v1206_v34 = vperm.slane %v1190_v31, 0  ;;  %s2591_s22 = sshra.s32 %s1943_s20, 4  ;;  %s2592_s22 = int_to_ptr.hbm [resolvable:$true] %s2591_s22 }
  0x7e   : > { %vm1254_vm15 = vmand %vm1214_vm11, %vm1238_vm12  ;;  %v838_v29 = vsel %vm822_vm14, 1, %v2675_v1  ;;  %v1022_v33 = vsel %vm1021_vm0, %v1020_v25, 1  ;;  %v1230_v35 = vperm.slane %v1198_v32, 0  ;;  %v755_v39 = vrot.slane %v2987_v6, 2  ;;  %s2593_s25 = scalar_lea.hbm %s2592_s22, 8  ;;  %p2598_p9 = scmp.lt.s32.totalorder %s2592_s22, %s4332_s13 }
  0x7f   : > { %v1270_v30 = vsel %vm1254_vm15, 1, %v2675_v1  ;;  %vm823_vm5 = vmand %vm783_vm1, %vm807_vm2  ;;  %v1023_v36 = vcvt.s32.f32 %v1022_v33  ;;  %vm1217_vm7 = vcmp.ge.s32.totalorder %v2966_v2, %v1206_v34  ;;  %v763_v40 = vrot.slane %v2994_v11, 2  ;;  %p2594_p1 = scmp.ne.s32.totalorder %s2592_s22, %s2593_s25  ;;  %p2599_p5 = scmp.lt.s32.totalorder %s2597_s0, %s2593_s25 }
  0x80   : > { %vm1251_vm6 = vmand %vm1211_vm3, %vm1235_vm4  ;;  %v839_v37 = vsel %vm823_vm5, 1, %v2675_v1  ;;  %vm1241_vm8 = vcmp.lt.s32.totalorder %v2966_v2, %v1230_v35  ;;  %vm1218_vm9 = vcmp.ge.s32.totalorder %v2985_v5, %v1206_v34  ;;  %vm1242_vm10 = vcmp.lt.s32.totalorder %v2985_v5, %v1230_v35 }
  0x81   : > { %v1267_v38 = vsel %vm1251_vm6, 1, %v2675_v1  ;;  %v1191_v41 = vrot.slane %v2980_v3, 4  ;;  %v1199_v42 = vrot.slane %v2982_v4, 4  ;;  %vm1212_vm11 = vcmp.ge.s32.totalorder %v2985_v5, %v1203_v26  ;;  %vm1257_vm13 = vmand %vm1217_vm7, %vm1241_vm8  ;;  %p2595_p12 = pnand %p2594_p1, %p2871_p4  ;;  %p2600_p8 = por %p2599_p5, %p2598_p9 }
  0x82   : > { %vm1236_vm12 = vcmp.lt.s32.totalorder %v2985_v5, %v1227_v27  ;;  %vm1258_vm14 = vmand %vm1218_vm9, %vm1242_vm10  ;;  %v774_v43 = vperm.slane %v755_v39, 0  ;;  %v798_v44 = vperm.slane %v763_v40, 0  ;;  %v1273_v47 = vsel %vm1257_vm13, 1, %v2675_v1 }
  0x83   : > { %1296 = vperm.xlu1 %2297, %v1271_v28   ;;  %vm1252_vm15 = vmand %vm1212_vm11, %vm1236_vm12  ;;  %v1207_v45 = vperm.slane %v1191_v41, 0  ;;  %v1231_v46 = vperm.slane %v1199_v42, 0  ;;  %v1274_v48 = vsel %vm1258_vm14, 1, %v2675_v1  ;;  %v772_v50 = vperm.slane %v2987_v6, 0  ;;  %p2596_p7 = pneg %p2595_p12 }
  0x84   : > { %859 = vperm.xlu2 %2299, %v838_v29   ;;  %v1268_v49 = vsel %vm1252_vm15, 1, %v2675_v1  ;;  %vm785_vm0 = vcmp.ge.s32.totalorder %v2985_v5, %v774_v43  ;;  %vm809_vm1 = vcmp.lt.s32.totalorder %v2985_v5, %v798_v44  ;;  %vm784_vm4 = vcmp.ge.s32.totalorder %v2966_v2, %v774_v43 }
  0x85   : > { %1293 = vperm.xlu0 %2298, %v1270_v30   ;;  %vm1219_vm2 = vcmp.ge.s32.totalorder %v2966_v2, %v1207_v45  ;;  %vm1243_vm3 = vcmp.lt.s32.totalorder %v2966_v2, %v1231_v46  ;;  %vm808_vm5 = vcmp.lt.s32.totalorder %v2966_v2, %v798_v44  ;;  %vm825_vm6 = vmand %vm785_vm0, %vm809_vm1  ;;  %v796_v51 = vperm.slane %v2994_v11, 0  ;;  %p2601_p10 = pnand %p2600_p8, %p2596_p7 }
  0x86   : > { %v756_v52 = vrot.slane %v2987_v6, 3  ;;  %v764_v53 = vrot.slane %v2994_v11, 3  ;;  %vm1259_vm7 = vmand %vm1219_vm2, %vm1243_vm3  ;;  %v841_v54 = vsel %vm825_vm6, 1, %v2675_v1  ;;  %vm3051_vm9 = vcmp.ge.s32.totalorder %v2966_v2, %v772_v50 }
  0x87   : > { %vm824_vm8 = vmand %vm784_vm4, %vm808_vm5  ;;  %v1192_v56 = vrot.slane %v2980_v3, 5  ;;  %v1200_v57 = vrot.slane %v2982_v4, 5  ;;  %v1275_v58 = vsel %vm1259_vm7, 1, %v2675_v1  ;;  %vm3059_vm10 = vcmp.lt.s32.totalorder %v2966_v2, %v796_v51 }
  0x88   : > { %v775_v60 = vperm.slane %v756_v52, 0  ;;  %v799_v61 = vperm.slane %v764_v53, 0  ;;  %v840_v62 = vsel %vm824_vm8, 1, %v2675_v1  ;;  %vm1220_vm11 = vcmp.ge.s32.totalorder %v2985_v5, %v1207_v45  ;;  %vm820_vm15 = vmand %vm3051_vm9, %vm3059_vm10 }
  0x89   : > { %vm1244_vm12 = vcmp.lt.s32.totalorder %v2985_v5, %v1231_v46  ;;  %vm3067_vm13 = vcmp.ge.s32.totalorder %v2985_v5, %v772_v50  ;;  %vm3072_vm14 = vcmp.lt.s32.totalorder %v2985_v5, %v796_v51  ;;  %v3080_v7 = vperm.slane %v1192_v56, 0 }
  0x8a   : > { %v3082_v8 = vperm.slane %v1200_v57, 0  ;;  %vm3084_vm0 = vmand %vm1220_vm11, %vm1244_vm12  ;;  %vm787_vm1 = vcmp.ge.s32.totalorder %v2985_v5, %v775_v60  ;;  %vm811_vm2 = vcmp.lt.s32.totalorder %v2985_v5, %v799_v61  ;;  %v1194_v10 = vrot.slane %v2980_v3, 7 }
  0x8b   : > { %1026 = vperm.xlu1 %2297, %v1023_v36   ;;  %v1202_v12 = vrot.slane %v2982_v4, 7  ;;  %vm821_vm3 = vmand %vm3067_vm13, %vm3072_vm14  ;;  %vm786_vm4 = vcmp.ge.s32.totalorder %v2966_v2, %v775_v60  ;;  %vm810_vm5 = vcmp.lt.s32.totalorder %v2966_v2, %v799_v61  ;;  %v757_v13 = vrot.slane %v2987_v6, 4  ;;  %v3227_v61 = vld [vmem:[%s2939_s26 + $0x8] sm:$0xf] }
  0x8c   : > { %1284 = vperm.xlu2 %2299, %v1267_v38   ;;  %v765_v14 = vrot.slane %v2994_v11, 4  ;;  %v1210_v15 = vperm.slane %v1194_v10, 0  ;;  %v836_v17 = vsel %vm820_vm15, 1, %v2675_v1  ;;  %vm3106_vm6 = vmand %vm787_vm1, %vm811_vm2  ;;  %vm1221_vm7 = vcmp.ge.s32.totalorder %v2966_v2, %v3080_v7 }
  0x8d   : > { %862 = vperm.xlu0 %2298, %v839_v37   ;;  %v1234_v16 = vperm.slane %v1202_v12, 0  ;;  %vm1245_vm8 = vcmp.lt.s32.totalorder %v2966_v2, %v3082_v8  ;;  %v1276_v19 = vsel %vm3084_vm0, 1, %v2675_v1  ;;  %v837_v20 = vsel %vm821_vm3, 1, %v2675_v1  ;;  %vm3118_vm11 = vmand %vm786_vm4, %vm810_vm5  ;;  %v1163_v12 = vld [vmem:[%s2939_s26] sm:$0xf] }
  0x8e   : > { %vm1225_vm9 = vcmp.ge.s32.totalorder %v2966_v2, %v1210_v15  ;;  %v776_v22 = vperm.slane %v757_v13, 0  ;;  %v800_v23 = vperm.slane %v765_v14, 0  ;;  %vm1226_vm13 = vcmp.ge.s32.totalorder %v2985_v5, %v1210_v15  ;;  %vm1261_vm15 = vmand %vm1221_vm7, %vm1245_vm8  ;;  %v1167_v13 = vld [vmem:[%s2939_s26 + $0x10] sm:$0xf]  ;;  %v1166_v37 = vld [vmem:[%s2939_s26 + $0xc] sm:$0xf] }
  0x8f   : > { %vm1249_vm10 = vcmp.lt.s32.totalorder %v2966_v2, %v1234_v16  ;;  %vm1250_vm14 = vcmp.lt.s32.totalorder %v2985_v5, %v1234_v16  ;;  %v843_v26 = vsel %vm3106_vm6, 1, %v2675_v1  ;;  %v759_v27 = vrot.slane %v2987_v6, 6 }
  0x90   : > { %vm3124_vm12 = vmand %vm1225_vm9, %vm1249_vm10  ;;  %v767_v28 = vrot.slane %v2994_v11, 6  ;;  %vm788_vm1 = vcmp.ge.s32.totalorder %v2966_v2, %v776_v22  ;;  %vm812_vm2 = vcmp.lt.s32.totalorder %v2966_v2, %v800_v23  ;;  %v760_v29 = vrot.slane %v2987_v6, 7 }
  0x91   : > { %vm3130_vm0 = vmand %vm1226_vm13, %vm1250_vm14  ;;  %v768_v30 = vrot.slane %v2994_v11, 7  ;;  %v842_v31 = vsel %vm3118_vm11, 1, %v2675_v1  ;;  %v1277_v32 = vsel %vm1261_vm15, 1, %v2675_v1  ;;  %v778_v33 = vperm.slane %v759_v27, 0 }
  0x92   : > { %v802_v34 = vperm.slane %v767_v28, 0  ;;  %vm789_vm3 = vcmp.ge.s32.totalorder %v2985_v5, %v776_v22  ;;  %vm813_vm4 = vcmp.lt.s32.totalorder %v2985_v5, %v800_v23  ;;  %v779_v35 = vperm.slane %v760_v29, 0  ;;  %vm3149_vm5 = vmand %vm788_vm1, %vm812_vm2 }
  0x93   : > { %1302 = vperm.xlu1 %2297, %v1273_v47   ;;  %v803_v36 = vperm.slane %v768_v30, 0  ;;  %v1193_v38 = vrot.slane %v2980_v3, 6  ;;  %v1201_v39 = vrot.slane %v2982_v4, 6  ;;  %vm793_vm6 = vcmp.ge.s32.totalorder %v2985_v5, %v778_v33 }
  0x94   : > { %1305 = vperm.xlu2 %2299, %v1274_v48   ;;  %vm817_vm7 = vcmp.lt.s32.totalorder %v2985_v5, %v802_v34  ;;  %vm792_vm11 = vcmp.ge.s32.totalorder %v2966_v2, %v778_v33  ;;  %vm816_vm9 = vcmp.lt.s32.totalorder %v2966_v2, %v802_v34  ;;  %vm794_vm10 = vcmp.ge.s32.totalorder %v2966_v2, %v779_v35  ;;  %v1170_v33 = vld [vmem:[%s2939_s26 + $0x1c] sm:$0xf] }
  0x95   : > { %1287 = vperm.xlu0 %2298, %v1268_v49   ;;  %vm3157_vm8 = vmand %vm793_vm6, %vm817_vm7  ;;  %vm818_vm13 = vcmp.lt.s32.totalorder %v2966_v2, %v803_v36  ;;  %v758_v3 = vrot.slane %v2987_v6, 5  ;;  %v766_v4 = vrot.slane %v2994_v11, 5  ;;  %v4234_v41 = vmov 0 }
  0x96   : > { %vm3167_vm14 = vmand %vm792_vm11, %vm816_vm9  ;;  %vm1222_vm15 = vcmp.ge.s32.totalorder %v2985_v5, %v3080_v7  ;;  %vm1246_vm1 = vcmp.lt.s32.totalorder %v2985_v5, %v3082_v8  ;;  %vm795_vm7 = vcmp.ge.s32.totalorder %v2985_v5, %v779_v35  ;;  %vm819_vm11 = vcmp.lt.s32.totalorder %v2985_v5, %v803_v36  ;;  %v1168_v8 = vld [vmem:[%s2939_s26 + $0x14] sm:$0xf] }
  0x97   : > { %v4235_v41 = vsel %vm3167_vm14, 4294967295, %v4234_v41  ;;  %vm3175_vm2 = vmand %vm794_vm10, %vm818_vm13  ;;  %v1209_v6 = vperm.slane %v1193_v38, 0  ;;  %v1233_v11 = vperm.slane %v1201_v39, 0  ;;  %v4238_v43 = vmov 0 }
  0x98   : > { %vm829_vm6 = vmand %vm789_vm3, %vm813_vm4  ;;  %v777_v44 = vperm.slane %v758_v3, 0  ;;  %v801_v45 = vperm.slane %v766_v4, 0  ;;  %v844_v46 = vsel %vm3149_vm5, 1, %v2675_v1  ;;  %v1282_v52 = vsel %vm3130_vm0, 1, %v2675_v1  ;;  %v3292_v4 = vld [vmem:[%s2939_s26 + $0x20] sm:$0xf] }
  0x99   : > { %vm3185_vm9 = vmand %vm795_vm7, %vm819_vm11  ;;  %v845_v47 = vsel %vm829_vm6, 1, %v2675_v1  ;;  %vm1224_vm3 = vcmp.ge.s32.totalorder %v2985_v5, %v1209_v6  ;;  %vm1248_vm4 = vcmp.lt.s32.totalorder %v2985_v5, %v1233_v11  ;;  %v746_v14 = vunpack.c.l.bf16 %v731_v9 }
  0x9a   : > { %v4239_v43 = vsel %vm3185_vm9, 4294967295, %v4238_v43  ;;  %vm1262_vm10 = vmand %vm1222_vm15, %vm1246_vm1  ;;  %vm790_vm13 = vcmp.ge.s32.totalorder %v2966_v2, %v777_v44  ;;  %vm814_vm7 = vcmp.lt.s32.totalorder %v2966_v2, %v801_v45  ;;  %vm1223_vm15 = vcmp.ge.s32.totalorder %v2966_v2, %v1209_v6 }
  0x9b   : > { %868 = vperm.xlu1 %2297, %v841_v54   ;;  %v1278_v48 = vsel %vm1262_vm10, 1, %v2675_v1  ;;  %vm1247_vm1 = vcmp.lt.s32.totalorder %v2966_v2, %v1233_v11  ;;  %vm1264_vm5 = vmand %vm1224_vm3, %vm1248_vm4  ;;  %vm791_vm10 = vcmp.ge.s32.totalorder %v2985_v5, %v777_v44  ;;  %vm815_vm9 = vcmp.lt.s32.totalorder %v2985_v5, %v801_v45 }
  0x9c   : > { %1308 = vperm.xlu2 %2299, %v1275_v58   ;;  %vm830_vm11 = vmand %vm790_vm13, %vm814_vm7  ;;  %v1280_v49 = vsel %vm1264_vm5, 1, %v2675_v1  ;;  %v1281_v2 = vsel %vm3124_vm12, 1, %v2675_v1  ;;  %v849_v5 = vsel %vm3157_vm8, 1, %v2675_v1  ;;  %v850_v54 = vsel %vm3175_vm2, 1, %v2675_v1 }
  0x9d   : > { %865 = vperm.xlu0 %2298, %v840_v62   ;;  %vm1263_vm6 = vmand %vm1223_vm15, %vm1247_vm1  ;;  %v846_v50 = vsel %vm830_vm11, 1, %v2675_v1  ;;  %vm4240_vm12 = vnez %v4235_v41  ;;  %vm4241_vm0 = vnez %v4239_v43  ;;  %v1180_v62 = vunpack.c.l.bf16 %v3227_v61 }
  0x9e   : > { %v1279_v51 = vsel %vm1263_vm6, 1, %v2675_v1  ;;  %vm831_vm14 = vmand %vm791_vm10, %vm815_vm9  ;;  %v848_v55 = vsel %vm4240_vm12, 1, %v2675_v1  ;;  %v851_v56 = vsel %vm4241_vm0, 1, %v2675_v1  ;;  %v1179_v15 = vunpack.c.l.bf16 %v1163_v12 }
  0x9f   : > { %v847_v53 = vsel %vm831_vm14, 1, %v2675_v1  ;;  %v1743_v16 = vrot.slane %v1180_v62, 7  ;;  %vm1635_vm7 = vcmask 1041409   ;;  %v3261_v24 = vrot.slane %v746_v14, 7 }
  0xa0   : > { %vm1638_vm11 = vcmask 1042434   ;;  %v1183_v11 = vunpack.c.l.bf16 %v3292_v4 }
  0xa2   : > { %v3324_v62 = vrot.slane %v1183_v11, 4 }
  0xa3   : > { %853 = vperm.xlu1 %2297, %v836_v17   ;;  %v1181_v17 = vunpack.c.l.bf16 %v1167_v13 }
  0xa4   : > { %856 = vperm.xlu2 %2299, %v837_v20  }
  0xa5   : > { %1311 = vperm.xlu0 %2298, %v1276_v19   ;;  %v1745_v27 = vrot.slane %v1181_v17, 6 }
  0xab   : > { %874 = vperm.xlu1 %2297, %v843_v26   ;;  %v1744_v26 = vsel %vm1635_vm7, %v1743_v16, %v1179_v15 }
  0xac   : > { %1314 = vperm.xlu2 %2299, %v1277_v32   ;;  %v3299_v6 = vsel %vm1638_vm11, %v1745_v27, %v1744_v26 }
  0xad   : > { %871 = vperm.xlu0 %2298, %v842_v31  }
  0xb3   : > { %877 = vperm.xlu1 %2297, %v844_v46  }
  0xb4   : > { %880 = vperm.xlu2 %2299, %v845_v47  }
  0xb5   : > { %1317 = vperm.xlu0 %2298, %v1278_v48  }
  0xbb   : > { %1323 = vperm.xlu1 %2297, %v1280_v49  }
  0xbc   : > { %883 = vperm.xlu2 %2299, %v846_v50  }
  0xbd   : > { %1320 = vperm.xlu0 %2298, %v1279_v51  }
  0xc3   : > { %1326 = vperm.xlu1 %2297, %v1281_v2  }
  0xc4   : > { %1329 = vperm.xlu2 %2299, %v1282_v52  }
  0xc5   : > { %886 = vperm.xlu0 %2298, %v847_v53  }
  0xcb   : > { %892 = vperm.xlu1 %2297, %v849_v5  }
  0xcc   : > { %895 = vperm.xlu2 %2299, %v850_v54  }
  0xcd   : > { %889 = vperm.xlu0 %2298, %v848_v55  }
  0xd5   : > { %898 = vperm.xlu0 %2298, %v851_v56  }
  0xd6   : > { %v1300_v57 = vpop.permute.xlu2 %1299 }
  0xd7   : > { %vm1336_vm8 = vcmp.eq.s32.totalorder %v1300_v57, 1 }
  0xd8   : > { %vm3239_vm2 = vmpackc.low %vm1336_vm8, %vm1336_vm8 }
  0xd9   : > { %v1368_v19 = vsel %vm3239_vm2, %v1168_v8, 0 }
  0xda   : > { %v1384_v29 = vunpack.c.l.bf16 %v1368_v19 }
  0xde   : > { %v860_v58 = vpop.permute.xlu2 %859 }
  0xdf   : > { %vm902_vm14 = vcmp.eq.s32.totalorder %v860_v58, 1 }
  0xe0   : > { %vm3246_vm3 = vmpackc.low %vm902_vm14, %vm902_vm14 }
  0xe1   : > { %v934_v30 = vsel %vm3246_vm3, %v731_v9, 0  ;;  %v1169_v9 = vld [vmem:[%s2939_s26 + $0x18] sm:$0xf] }
  0xe2   : > { %v3294_v41 = vunpack.c.l.bf16 %v934_v30  ;;  %v1182_v14 = vunpack.c.l.bf16 %v1169_v9 }
  0xe6   : > { %v1285_v59 = vpop.permute.xlu2 %1284 }
  0xe7   : > { %vm1331_vm9 = vcmp.eq.s32.totalorder %v1285_v59, 1 }
  0xe8   : > { %vm3252_vm13 = vmpackc.low %vm1331_vm9, %vm1331_vm9 }
  0xe9   : > { %v1363_v31 = vsel %vm3252_vm13, %v1163_v12, 0 }
  0xea   : > { %v3296_v42 = vunpack.c.l.bf16 %v1363_v31 }
  0xed   : > { %v3224_v60 = vpop.permute.xlu1 %1457 }
  0xee   : > { %v1306_v63 = vpop.permute.xlu2 %1305  ;;  %v3231_v0 = vrot.slane %v3224_v60, 2  ;;  %v3234_v7 = vrot.slane %v3224_v60, 1  ;;  %v3257_v21 = vrot.slane %v3224_v60, 3  ;;  %v1483_v50 = vand.u32 2147483647, %v3224_v60 }
  0xef   : > { %v1291_v1 = vpop.permute.xlu0 %1290  ;;  %vm1338_vm15 = vcmp.eq.s32.totalorder %v1306_v63, 1  ;;  %v1485_v19 = vand.u32 2147483648, %v3224_v60 }
  0xf0   : > { %2303 = vrcp.f32 %v3231_v0  ;;  %vm1333_vm4 = vcmp.eq.s32.totalorder %v1291_v1, 1  ;;  %vm3277_vm10 = vmpackc.low %vm1338_vm15, %vm1338_vm15  ;;  %v1515_v44 = vand.u32 2147483648, %v3231_v0  ;;  %vm1509_vm8 = vweird.f32 %v3231_v0 }
  0xf1   : > { %2305 = vrcp.f32 %v3234_v7  ;;  %vm3263_vm1 = vmpackc.low %vm1333_vm4, %vm1333_vm4  ;;  %v1370_v43 = vsel %vm3277_vm10, %v1170_v33, 0  ;;  %v1513_v51 = vand.u32 2147483647, %v3231_v0  ;;  %vm1494_vm14 = vweird.f32 %v3234_v7 }
  0xf2   : > { %2307 = vrcp.f32 %v3257_v21  ;;  %v1365_v39 = vsel %vm3263_vm1, %v3227_v61, 0  ;;  %v3313_v5 = vunpack.c.l.bf16 %v1370_v43  ;;  %v3320_v58 = vor.u32 1.1754944e-38, %v1515_v44 }
  0xf3   : > { %2309 = vrcp.f32 %v3224_v60  ;;  %v1381_v47 = vunpack.c.l.bf16 %v1365_v39  ;;  %v1498_v59 = vand.u32 2147483647, %v3234_v7  ;;  %v1500_v61 = vand.u32 2147483648, %v3234_v7 }
  0xf4   : > { %v1530_v10 = vand.u32 2147483648, %v3257_v21  ;;  %vm3342_vm4 = vcmp.eq.f32.partialorder %v1513_v51, 8.507059e+37  ;;  %v1528_v27 = vand.u32 2147483647, %v3257_v21  ;;  %vm1524_vm10 = vweird.f32 %v3257_v21 }
  0xf5   : > { %v1297_v22 = vpop.permute.xlu1 %1296  ;;  %vm3346_vm13 = vcmp.eq.f32.partialorder %v1498_v59, 8.507059e+37  ;;  %v1501_v25 = vor.u32 1.1754944e-38, %v1500_v61  ;;  %v3376_v11 = vor.u32 1.1754944e-38, %v1485_v19  ;;  %v730_v19 = vld [vmem:[%s2932_s14 + $0x4] sm:$0xf] }
  0xf6   : > { %v3259_v23 = vpop.eup %2303  ;;  %vm1335_vm5 = vcmp.eq.s32.totalorder %v1297_v22, 1  ;;  %v1309_v38 = vpop.permute.xlu2 %1308 }
  0xf7   : > { %v3268_v28 = vpop.eup %2305  ;;  %vm1351_vm6 = vmpackc.low %vm1335_vm5, %vm1335_vm5  ;;  %v1294_v32 = vpop.permute.xlu0 %1293  ;;  %v1505_v35 = vmul.f32 %v3259_v23, %v3231_v0  ;;  %vm1339_vm2 = vcmp.eq.s32.totalorder %v1309_v38, 1  ;;  %vm1510_vm3 = vweird.f32 %v3259_v23 }
  0xf8   : > { %v1367_v36 = vsel %vm1351_vm6, %v1167_v13, 0  ;;  %vm1334_vm12 = vcmp.eq.s32.totalorder %v1294_v32, 1  ;;  %v1490_v3 = vmul.f32 %v3268_v28, %v3234_v7  ;;  %v3311_v53 = vpop.eup %2307  ;;  %v732_v13 = vld [vmem:[%s2932_s14 + $0xc] sm:$0xf]  ;;  %vm1495_vm1 = vweird.f32 %v3268_v28  ;;  %vm3355_vm5 = vmpackc.low %vm1339_vm2, %vm1339_vm2 }
  0xf9   : > { %v1383_v40 = vunpack.c.l.bf16 %v1367_v36  ;;  %vm1350_vm0 = vmpackc.low %vm1334_vm12, %vm1334_vm12  ;;  %v1506_v48 = vsub.f32 1.0, %v1505_v35  ;;  %v3318_v57 = vpop.eup %2309  ;;  %v1520_v15 = vmul.f32 %v3311_v53, %v3257_v21  ;;  %v3359_v32 = vor.u32 1.1754944e-38, %v1530_v10 }
  0xfa   : > { %v1366_v46 = vsel %vm1350_vm0, %v1166_v37, 0  ;;  %v1491_v2 = vsub.f32 1.0, %v1490_v3  ;;  %v3338_v18 = vmul.f32 %v3318_v57, %v3224_v60  ;;  %v3362_v36 = vrot.slane %v1182_v14, 5  ;;  %vm3370_vm6 = vmor %vm1509_vm8, %vm1510_vm3 }
  0xfb   : > { %v1409_v45 = vadd.f32 %v1384_v29, %v1383_v40  ;;  %v1382_v49 = vunpack.c.l.bf16 %v1366_v46  ;;  %v1507_v1 = vmul.f32 %v3259_v23, %v1506_v48  ;;  %v1521_v35 = vsub.f32 1.0, %v1520_v15  ;;  %v1164_v46 = vld [vmem:[%s2939_s26 + $0x4] sm:$0xf]  ;;  %vm3392_vm8 = vmor %vm1494_vm14, %vm1495_vm1 }
  0xfc   : > { %v1492_v12 = vmul.f32 %v3268_v28, %v1491_v2  ;;  %v1476_v3 = vsub.f32 1.0, %v3338_v18  ;;  %v1371_v44 = vsel %vm3355_vm5, %v3292_v4, 0  ;;  %vm1525_vm2 = vweird.f32 %v3311_v53 }
  0xfd   : > { %v3309_v52 = vpop.permute.xlu1 %1026  ;;  %v1410_v54 = vrot.slane %v1409_v45, 4  ;;  %v1402_v55 = vadd.f32 %v1382_v49, %v1381_v47  ;;  %v1508_v29 = vadd.f32 %v3259_v23, %v1507_v1  ;;  %v1522_v2 = vmul.f32 %v3311_v53, %v1521_v35 }
  0xfe   : > { %v3316_v56 = vrot.slane %v3309_v52, 1  ;;  %v3334_v17 = vpop.permute.xlu2 %856  ;;  %v1493_v33 = vadd.f32 %v3268_v28, %v1492_v12  ;;  %vm1480_vm1 = vweird.f32 %v3318_v57  ;;  %vm3418_vm5 = vcmp.eq.f32.partialorder %v1528_v27, 8.507059e+37 }
  0xff   : > { %v863_v63 = vpop.permute.xlu0 %862  ;;  %v1403_v8 = vrot.slane %v1402_v55, 4  ;;  %v1411_v16 = vadd.f32 %v1410_v54, %v1409_v45  ;;  %v1512_v48 = vsel %vm3370_vm6, %v3259_v23, %v1508_v29  ;;  %vm901_vm14 = vcmp.eq.s32.totalorder %v3334_v17, 1 }
 0x100   : > { %2311 = vrcp.f32 %v3316_v56  ;;  %vm903_vm9 = vcmp.eq.s32.totalorder %v863_v63, 1  ;;  %v1523_v12 = vadd.f32 %v3311_v53, %v1522_v2  ;;  %vm1641_vm6 = vcmask 1043459  }
 0x101   : > { %v1404_v26 = vadd.f32 %v1403_v8, %v1402_v55  ;;  %vm919_vm15 = vmpackc.low %vm903_vm9, %vm903_vm9  ;;  %v1412_v40 = vrot.slane %v1411_v16, 2  ;;  %v3401_v55 = vunpack.c.l.bf16 %v1371_v44  ;;  %2313 = vrcp.f32 %v3309_v52 }
 0x102   : > { %v935_v31 = vsel %vm919_vm15, %v732_v13, 0  ;;  %vm1479_vm15 = vweird.f32 %v3224_v60  ;;  %v3423_v15 = vrot.slane %v3309_v52, 2  ;;  %v1477_v29 = vmul.f32 %v3318_v57, %v1476_v3 }
 0x103   : > { %v951_v34 = vunpack.c.l.bf16 %v935_v31  ;;  %v1405_v43 = vrot.slane %v1404_v26, 2  ;;  %v1413_v54 = vadd.f32 %v1412_v40, %v1411_v16  ;;  %v1067_v31 = vand.u32 2147483647, %v3316_v56 }
 0x104   : > { %2315 = vrcp.f32 %v3423_v15 }
 0x105   : > { %v1303_v37 = vpop.permute.xlu1 %1302  ;;  %v971_v45 = vadd.f32 %v951_v34, %v3294_v41  ;;  %v1497_v41 = vsel %vm3392_vm8, %v3268_v28, %v1493_v33  ;;  %v1406_v61 = vadd.f32 %v1405_v43, %v1404_v26  ;;  %v3410_v28 = vsel %vm3342_vm4, %v3320_v58, %v1512_v48  ;;  %vm3430_vm4 = vmpackc.low %vm901_vm14, %vm901_vm14  ;;  %v1173_v48 = vld [vmem:[%s2939_s26 + $0x28] sm:$0xf] }
 0x106   : > { %v3364_v39 = vpop.eup %2311  ;;  %vm1337_vm12 = vcmp.eq.s32.totalorder %v1303_v37, 1  ;;  %v3414_v8 = vsel %vm3346_vm13, %v1501_v25, %v1497_v41  ;;  %v1315_v10 = vpop.permute.xlu2 %1314  ;;  %v1414_v16 = vrot.slane %v1413_v54, 1  ;;  %v734_v25 = vld [vmem:[%s2932_s14 + $0x14] sm:$0xf]  ;;  %v933_v35 = vsel %vm3430_vm4, %v730_v19, 0 }
 0x107   : > { %v1059_v0 = vmul.f32 %v3364_v39, %v3316_v56  ;;  %vm1353_vm0 = vmpackc.low %vm1337_vm12, %vm1337_vm12  ;;  %v1288_v47 = vpop.permute.xlu0 %1287  ;;  %v972_v51 = vrot.slane %v971_v45, 4  ;;  %v1407_v26 = vrot.slane %v1406_v61, 1  ;;  %vm1063_vm12 = vweird.f32 %v3316_v56  ;;  %v3458_v40 = vpop.eup %2313 }
 0x108   : > { %v1369_v4 = vsel %vm1353_vm0, %v1169_v9, 0  ;;  %vm1332_vm9 = vcmp.eq.s32.totalorder %v1288_v47, 1  ;;  %vm1064_vm8 = vweird.f32 %v3364_v39  ;;  %v1415_v3 = vadd.f32 %v1414_v16, %v1413_v54 }
 0x109   : > { %v1385_v23 = vunpack.c.l.bf16 %v1369_v4  ;;  %vm1348_vm3 = vmpackc.low %vm1332_vm9, %vm1332_vm9  ;;  %v1060_v7 = vsub.f32 1.0, %v1059_v0  ;;  %v973_v63 = vadd.f32 %v972_v51, %v971_v45  ;;  %v733_v0 = vld [vmem:[%s2932_s14 + $0x10] sm:$0xf]  ;;  %v1408_v45 = vadd.f32 %v1407_v26, %v1406_v61 }
 0x10a   : > { %v1364_v59 = vsel %vm1348_vm3, %v1164_v46, 0  ;;  %vm3451_vm9 = vmor %vm1524_vm10, %vm1525_vm2  ;;  %vm3466_vm10 = vcmp.eq.f32.partialorder %v1483_v50, 8.507059e+37  ;;  %vm1341_vm2 = vcmp.eq.s32.totalorder %v1315_v10, 1  ;;  %vm3481_vm4 = vcmp.eq.f32.partialorder %v1067_v31, 8.507059e+37  ;;  %v3514_v10 = vpop.eup %2315 }
 0x10b   : > { %v1416_v1 = vadd.f32 %v3313_v5, %v1385_v23  ;;  %v1380_v9 = vunpack.c.l.bf16 %v1364_v59  ;;  %v974_v5 = vrot.slane %v973_v63, 2  ;;  %v1061_v18 = vmul.f32 %v3364_v39, %v1060_v7  ;;  %vm3475_vm3 = vmor %vm1063_vm12, %vm1064_vm8 }
 0x10c   : > { %v1527_v44 = vsel %vm3451_vm9, %v3311_v53, %v1523_v12  ;;  %v1478_v53 = vadd.f32 %v3318_v57, %v1477_v29  ;;  %v1184_v4 = vunpack.c.l.bf16 %v1173_v48  ;;  %vm3489_vm12 = vmpackc.low %vm1341_vm2, %vm1341_vm2  ;;  %v1084_v19 = vand.u32 2147483648, %v3423_v15 }
 0x10d   : > { %v1417_v14 = vrot.slane %v1416_v1, 4  ;;  %v869_v58 = vpop.permute.xlu1 %868  ;;  %v1395_v22 = vadd.f32 %v1380_v9, %v3296_v42  ;;  %v1069_v42 = vand.u32 2147483648, %v3316_v56  ;;  %v975_v34 = vadd.f32 %v974_v5, %v973_v63 }
 0x10e   : > { %vm905_vm13 = vcmp.eq.s32.totalorder %v869_v58, 1  ;;  %v1062_v43 = vadd.f32 %v3364_v39, %v1061_v18  ;;  %v3485_v56 = vunpack.c.l.bf16 %v933_v35  ;;  %v3499_v61 = vsel %vm3418_vm5, %v3359_v32, %v1527_v44  ;;  %v729_v35 = vld [vmem:[%s2932_s14] sm:$0xf] }
 0x10f   : > { %v1418_v27 = vadd.f32 %v1417_v14, %v1416_v1  ;;  %vm3438_vm0 = vmpackc.low %vm905_vm13, %vm905_vm13  ;;  %v866_v17 = vpop.permute.xlu0 %865  ;;  %v1396_v33 = vrot.slane %v1395_v22, 4  ;;  %v1070_v51 = vor.u32 1.1754944e-38, %v1069_v42  ;;  %v976_v2 = vrot.slane %v975_v34, 1 }
 0x110   : > { %v937_v38 = vsel %vm3438_vm0, %v734_v25, 0  ;;  %vm904_vm14 = vcmp.eq.s32.totalorder %v866_v17, 1  ;;  %v1066_v59 = vsel %vm3475_vm3, %v3364_v39, %v1062_v43  ;;  %v3504_v63 = vsel %vm1641_vm6, %v3362_v36, %v3299_v6  ;;  %vm3510_vm0 = vmor %vm1479_vm15, %vm1480_vm1  ;;  %v881_v39 = vpop.permute.xlu2 %880 }
 0x111   : > { %v1419_v47 = vrot.slane %v1418_v27, 2  ;;  %v1397_v49 = vadd.f32 %v1396_v33, %v1395_v22  ;;  %v953_v41 = vunpack.c.l.bf16 %v937_v38  ;;  %vm920_vm13 = vmpackc.low %vm904_vm14, %vm904_vm14  ;;  %v3517_v32 = vmul.f32 %v3410_v28, %v1415_v3  ;;  %v738_v33 = vld [vmem:[%s2932_s14 + $0x24] sm:$0xf] }
 0x112   : > { %v936_v54 = vsel %vm920_vm13, %v733_v0, 0  ;;  %v3520_v5 = vmul.f32 %v3414_v8, %v1408_v45  ;;  %v1482_v36 = vsel %vm3510_vm0, %v3318_v57, %v1478_v53  ;;  %v3525_v14 = vrot.slane %v1184_v4, 3  ;;  %v1610_v4 = vld [vmem:[#allocation8] sm:$0xff] }
 0x113   : > { %v952_v9 = vunpack.c.l.bf16 %v936_v54  ;;  %v1420_v6 = vadd.f32 %v1419_v47, %v1418_v27  ;;  %v1398_v13 = vrot.slane %v1397_v49, 2  ;;  %v1373_v58 = vsel %vm3489_vm12, %v1173_v48, 0 }
 0x114   : > { %v1071_v28 = vsel %vm3481_vm4, %v1070_v51, %v1066_v59  ;;  %v977_v18 = vadd.f32 %v976_v2, %v975_v34  ;;  %vm909_vm15 = vcmp.eq.s32.totalorder %v881_v39, 1  ;;  %v1044_v8 = vmul.f32 %v3458_v40, %v3309_v52 }
 0x115   : > { %v854_v7 = vpop.permute.xlu1 %853  ;;  %v978_v16 = vadd.f32 %v953_v41, %v952_v9  ;;  %v1074_v57 = vmul.f32 %v3514_v10, %v3423_v15  ;;  %v747_v20 = vunpack.c.l.bf16 %v733_v0  ;;  %v1805_v25 = vrot.slane %v3517_v32, 6  ;;  %vm3547_vm1 = vmpackc.low %vm909_vm15, %vm909_vm15  ;;  %v1172_v0 = vld [vmem:[%s2939_s26 + $0x24] sm:$0xf]  ;;  %v1859_v32 = vld [vmem:[#allocation13 + $0x70] sm:$0xff] }
 0x116   : > { %v1803_v26 = vrot.slane %v3520_v5, 7  ;;  %v1421_v27 = vrot.slane %v1420_v6, 1  ;;  %v3541_v29 = vsel %vm3466_vm10, %v3376_v11, %v1482_v36  ;;  %v1399_v30 = vadd.f32 %v1398_v13, %v1397_v49 }
 0x117   : > { %v1312_v12 = vpop.permute.xlu0 %1311  ;;  %v979_v22 = vrot.slane %v978_v16, 4  ;;  %v3543_v17 = vunpack.c.l.bf16 %v1373_v58  ;;  %v1082_v31 = vand.u32 2147483647, %v3423_v15  ;;  %v3552_v37 = vmul.f32 %v1071_v28, %v977_v18  ;;  %v736_v28 = vld [vmem:[%s2932_s14 + $0x1c] sm:$0xf] }
 0x118   : > { %v1045_v38 = vsub.f32 1.0, %v1044_v8  ;;  %vm900_vm5 = vcmp.eq.s32.totalorder %v854_v7, 1  ;;  %v3555_v11 = vrot.slane %v3224_v60, 4  ;;  %v1075_v43 = vsub.f32 1.0, %v1074_v57  ;;  %v884_v2 = vpop.permute.xlu2 %883 }
 0x119   : > { %v980_v42 = vadd.f32 %v979_v22, %v978_v16  ;;  %vm1078_vm8 = vweird.f32 %v3423_v15  ;;  %v3558_v44 = vor.u32 1.1754944e-38, %v1084_v19  ;;  %v3560_v21 = vrot.slane %v747_v20, 6  ;;  %vm916_vm9 = vmpackc.low %vm900_vm5, %vm900_vm5 }
 0x11a   : > { %vm1340_vm10 = vcmp.eq.s32.totalorder %v1312_v12, 1  ;;  %v1422_v45 = vadd.f32 %v1421_v27, %v1420_v6  ;;  %v941_v46 = vsel %vm3547_vm1, %v738_v33, 0  ;;  %v932_v47 = vsel %vm916_vm9, %v729_v35, 0 }
 0x11b   : > { %2317 = vrcp.f32 %v3555_v11  ;;  %vm1356_vm2 = vmpackc.low %vm1340_vm10, %vm1340_vm10  ;;  %v1400_v48 = vrot.slane %v1399_v30, 1  ;;  %v981_v50 = vrot.slane %v980_v42, 2  ;;  %vm1048_vm3 = vweird.f32 %v3309_v52 }
 0x11c   : > { %v948_v49 = vunpack.c.l.bf16 %v932_v47  ;;  %vm1079_vm14 = vweird.f32 %v3514_v10  ;;  %v1046_v41 = vmul.f32 %v3458_v40, %v1045_v38  ;;  %v1372_v51 = vsel %vm1356_vm2, %v1172_v0, 0  ;;  %v3633_v38 = vld [vmem:[%s2932_s14 + $0x18] sm:$0xf] }
 0x11d   : > { %v875_v3 = vpop.permute.xlu1 %874  ;;  %v1076_v23 = vmul.f32 %v3514_v10, %v1075_v43  ;;  %v3571_v54 = vunpack.c.l.bf16 %v941_v46  ;;  %v1388_v59 = vunpack.c.l.bf16 %v1372_v51  ;;  %v3575_v1 = vmul.f32 %v3499_v61, %v1422_v45  ;;  %vm3606_vm1 = vmor %vm1078_vm8, %vm1079_vm14  ;;  %v1794_v45 = vld [vmem:[#allocation11 + $0x78] sm:$0xff]  ;;  %v1793_v46 = vld [vmem:[#allocation11 + $0x70] sm:$0xff] }
 0x11e   : > { %v964_v7 = vadd.f32 %v3485_v56, %v948_v49  ;;  %v1052_v9 = vand.u32 2147483647, %v3309_v52  ;;  %v745_v39 = vunpack.c.l.bf16 %v729_v35  ;;  %vm907_vm4 = vcmp.eq.s32.totalorder %v875_v3, 1  ;;  %v739_v49 = vld [vmem:[%s2932_s14 + $0x28] sm:$0xf]  ;;  %1818 = vmatpush.msra.mxu3 %v1794_v45  ;;  %v1734_v0 = vld [vmem:[#allocation10 + $0x78] sm:$0xff] }
 0x11f   : > { %v872_v53 = vpop.permute.xlu0 %871  ;;  %v1401_v6 = vadd.f32 %v1400_v48, %v1399_v30  ;;  %vm3578_vm13 = vcmp.eq.f32.partialorder %v1082_v31, 8.507059e+37  ;;  %v982_v12 = vadd.f32 %v981_v50, %v980_v42  ;;  %v1423_v58 = vadd.f32 %v1388_v59, %v3401_v55  ;;  %vm3589_vm0 = vmpackc.low %vm907_vm4, %vm907_vm4  ;;  %1758 = vmatpush.msra.mxu2 %v1734_v0 }
 0x120   : > { %v965_v13 = vrot.slane %v964_v7, 4  ;;  %v1047_v56 = vadd.f32 %v3458_v40, %v1046_v41  ;;  %vm1049_vm12 = vweird.f32 %v3458_v40  ;;  %v1054_v61 = vand.u32 2147483648, %v3309_v52  ;;  %1819 = vmatpush.msra.mxu3 %v1793_v46  ;;  %v1176_v46 = vld [vmem:[%s2939_s26 + $0x34] sm:$0xf] }
 0x121   : > { %v3583_v16 = vpop.eup %2317  ;;  %v3594_v8 = vrot.slane %v3309_v52, 3  ;;  %v1077_v55 = vadd.f32 %v3514_v10, %v1076_v23  ;;  %vm910_vm15 = vcmp.eq.s32.totalorder %v884_v2, 1  ;;  %v1807_v22 = vrot.slane %v3575_v1, 5  ;;  %vm3622_vm5 = vmor %vm1048_vm3, %vm1049_vm12  ;;  %v1330_v23 = vpop.permute.xlu2 %1329 }
 0x122   : > { %v966_v19 = vadd.f32 %v965_v13, %v964_v7  ;;  %v1535_v20 = vmul.f32 %v3583_v16, %v3555_v11  ;;  %v1685_v30 = vsel %vm1635_vm7, %v3261_v24, %v745_v39  ;;  %v1424_v31 = vrot.slane %v1423_v58, 4  ;;  %vm3640_vm9 = vmpackc.low %vm910_vm15, %vm910_vm15  ;;  %v1792_v7 = vld [vmem:[#allocation11 + $0x68] sm:$0xff] }
 0x123   : > { %2319 = vrcp.f32 %v3594_v8  ;;  %v3616_v33 = vmul.f32 %v3541_v29, %v1401_v6  ;;  %v983_v34 = vrot.slane %v982_v12, 1  ;;  %vm3626_vm8 = vcmp.eq.f32.partialorder %v1052_v9, 8.507059e+37  ;;  %1820 = vmatpush.msra.mxu3 %v1792_v7 }
 0x124   : > { %v939_v35 = vsel %vm3589_vm0, %v736_v28, 0  ;;  %v1051_v29 = vsel %vm3622_vm5, %v3458_v40, %v1047_v56  ;;  %v1055_v3 = vor.u32 1.1754944e-38, %v1054_v61  ;;  %v1425_v43 = vadd.f32 %v1424_v31, %v1423_v58  ;;  %v1791_v56 = vld [vmem:[#allocation11 + $0x60] sm:$0xff] }
 0x125   : > { %v3596_v57 = vpop.permute.xlu1 %877  ;;  %vm906_vm10 = vcmp.eq.s32.totalorder %v872_v53, 1  ;;  %v1081_v47 = vsel %vm3606_vm1, %v3514_v10, %v1077_v55  ;;  %v967_v48 = vrot.slane %v966_v19, 2  ;;  %v3649_v50 = vsel %vm1638_vm11, %v3560_v21, %v1685_v30  ;;  %v1790_v30 = vld [vmem:[#allocation11 + $0x58] sm:$0xff]  ;;  %1821 = vmatpush.msra.mxu3 %v1791_v56 }
 0x126   : > { %v1536_v40 = vsub.f32 1.0, %v1535_v20  ;;  %vm922_vm2 = vmpackc.low %vm906_vm10, %vm906_vm10  ;;  %v1545_v41 = vand.u32 2147483648, %v3555_v11  ;;  %v750_v51 = vunpack.c.l.bf16 %v739_v49  ;;  %v955_v2 = vunpack.c.l.bf16 %v939_v35  ;;  %v3681_v20 = vld [vmem:[%s2939_s26 + $0x3c] sm:$0xf] }
 0x127   : > { %v3613_v42 = vpop.permute.xlu0 %1317  ;;  %v938_v53 = vsel %vm922_vm2, %v3633_v38, 0  ;;  %v984_v59 = vadd.f32 %v983_v34, %v982_v12  ;;  %v3656_v10 = vsel %vm3626_vm8, %v1055_v3, %v1051_v29  ;;  %v1543_v21 = vand.u32 2147483647, %v3555_v11  ;;  %v3698_v29 = vld [vmem:[%s2932_s14 + $0x20] sm:$0xf]  ;;  %1822 = vmatpush.msra.mxu3 %v1790_v30  ;;  %v1608_v30 = vld [vmem:[#allocation7 + $0x70] sm:$0xff] }
 0x128   : > { %v954_v9 = vunpack.c.l.bf16 %v938_v53  ;;  %v1086_v6 = vsel %vm3578_vm13, %v3558_v44, %v1081_v47  ;;  %vm1539_vm3 = vweird.f32 %v3555_v11  ;;  %v1426_v13 = vrot.slane %v1425_v43, 2  ;;  %v1174_v3 = vld [vmem:[%s2939_s26 + $0x2c] sm:$0xf]  ;;  %v1733_v47 = vld [vmem:[#allocation10 + $0x70] sm:$0xff]  ;;  %v1625_v53 = vld [vmem:[#allocation8 + $0x78] sm:$0xff] }
 0x129   : > { %v3659_v39 = vpop.eup %2319  ;;  %v942_v12 = vsel %vm3640_vm9, %v739_v49, 0  ;;  %v3669_v61 = vadd.f32 %v967_v48, %v966_v19  ;;  %v1537_v28 = vmul.f32 %v3583_v16, %v1536_v40  ;;  %vm1346_vm14 = vcmp.eq.s32.totalorder %v1330_v23, 1  ;;  %1759 = vmatpush.msra.mxu2 %v1733_v47  ;;  %v1609_v23 = vld [vmem:[#allocation7 + $0x78] sm:$0xff]  ;;  %1656 = vmatpush.msra.mxu0 %v1625_v53  ;;  %v1607_v47 = vld [vmem:[#allocation7 + $0x68] sm:$0xff] }
 0x12a   : > { %v1089_v18 = vmul.f32 %v3659_v39, %v3594_v8  ;;  %v3674_v44 = vor.u32 1.1754944e-38, %v1545_v41  ;;  %v3676_v36 = vrot.slane %v750_v51, 3  ;;  %v3678_v55 = vadd.f32 %v955_v2, %v954_v9  ;;  %vm3707_vm0 = vmpackc.low %vm1346_vm14, %vm1346_vm14  ;;  %v1788_v41 = vld [vmem:[#allocation11 + $0x48] sm:$0xff]  ;;  %1699 = vmatpush.msra.mxu1 %v1609_v23  ;;  %v1622_v23 = vld [vmem:[#allocation8 + $0x60] sm:$0xff] }
 0x12b   : > { %v3684_v19 = vrot.slane %v3309_v52, 4  ;;  %v3688_v31 = vmul.f32 %v1086_v6, %v984_v59  ;;  %vm3690_vm4 = vcmp.eq.f32.partialorder %v1543_v21, 8.507059e+37  ;;  %v3694_v15 = vunpack.c.l.bf16 %v942_v12  ;;  %v1732_v6 = vld [vmem:[#allocation10 + $0x68] sm:$0xff] }
 0x12c   : > { %v1090_v24 = vsub.f32 1.0, %v1089_v18  ;;  %v748_v35 = vunpack.c.l.bf16 %v3633_v38  ;;  %vm1540_vm13 = vweird.f32 %v3583_v16  ;;  %v3702_v45 = vadd.f32 %v1426_v13, %v1425_v43  ;;  %v1789_v38 = vld [vmem:[#allocation11 + $0x50] sm:$0xff]  ;;  %v1787_v18 = vld [vmem:[#allocation11 + $0x40] sm:$0xff]  ;;  %1760 = vmatpush.msra.mxu2 %v1732_v6  ;;  %1700 = vmatpush.msra.mxu1 %v1608_v30  ;;  %v1784_v30 = vld [vmem:[#allocation11 + $0x28] sm:$0xff] }
 0x12d   : > { %v3667_v58 = vpop.permute.xlu1 %1323  ;;  %vm1093_vm12 = vweird.f32 %v3594_v8  ;;  %vm908_vm15 = vcmp.eq.s32.totalorder %v3596_v57, 1  ;;  %v969_v48 = vrot.slane %v3669_v61, 1  ;;  %v3714_v40 = vadd.f32 %v3583_v16, %v1537_v28  ;;  %vm3732_vm9 = vmor %vm1539_vm3, %vm1540_vm13  ;;  %1823 = vmatpush.msra.mxu3 %v1789_v38  ;;  %v1624_v13 = vld [vmem:[#allocation8 + $0x70] sm:$0xff]  ;;  %v1623_v38 = vld [vmem:[#allocation8 + $0x68] sm:$0xff] }
 0x12e   : > { %v1097_v43 = vand.u32 2147483647, %v3594_v8  ;;  %vm3717_vm1 = vmpackc.low %vm908_vm15, %vm908_vm15  ;;  %vm1342_vm5 = vcmp.eq.s32.totalorder %v3613_v42, 1  ;;  %v1099_v57 = vand.u32 2147483648, %v3594_v8  ;;  %v986_v51 = vrot.slane %v3678_v55, 4  ;;  %1657 = vmatpush.msra.mxu0 %v1624_v13  ;;  %v1606_v42 = vld [vmem:[#allocation7 + $0x60] sm:$0xff]  ;;  %1701 = vmatpush.msra.mxu1 %v1607_v47 }
 0x12f   : > { %v3686_v27 = vpop.permute.xlu0 %1320  ;;  %2321 = vrcp.f32 %v3684_v19  ;;  %v940_v2 = vsel %vm3717_vm1, %v3698_v29, 0  ;;  %vm1358_vm8 = vmpackc.low %vm1342_vm5, %vm1342_vm5  ;;  %v1091_v7 = vmul.f32 %v3659_v39, %v1090_v24  ;;  %v1688_v59 = vrot.slane %v748_v35, 5  ;;  %1824 = vmatpush.msra.mxu3 %v1788_v41  ;;  %v1730_v41 = vld [vmem:[#allocation10 + $0x58] sm:$0xff]  ;;  %v1729_v6 = vld [vmem:[#allocation10 + $0x50] sm:$0xff] }
 0x130   : > { %v1378_v21 = vsel %vm3707_vm0, %v3681_v20, 0  ;;  %v1374_v9 = vsel %vm1358_vm8, %v1174_v3, 0  ;;  %v1428_v12 = vrot.slane %v3702_v45, 1  ;;  %v956_v11 = vunpack.c.l.bf16 %v940_v2  ;;  %v1731_v20 = vld [vmem:[#allocation10 + $0x60] sm:$0xff]  ;;  %1658 = vmatpush.msra.mxu0 %v1623_v38  ;;  %1702 = vmatpush.msra.mxu1 %v1606_v42  ;;  %v1620_v38 = vld [vmem:[#allocation8 + $0x50] sm:$0xff] }
 0x131   : > { %v1390_v56 = vunpack.c.l.bf16 %v1374_v9  ;;  %vm1344_vm10 = vcmp.eq.s32.totalorder %v3667_v58, 1  ;;  %v970_v35 = vadd.f32 %v969_v48, %v3669_v61  ;;  %v1542_v3 = vsel %vm3732_vm9, %v3583_v16, %v3714_v40  ;;  %v3765_v16 = vld [vmem:[%s2939_s26 + $0x30] sm:$0xf]  ;;  %1761 = vmatpush.msra.mxu2 %v1731_v20  ;;  %1825 = vmatpush.msra.mxu3 %v1787_v18  ;;  %v740_v18 = vld [vmem:[%s2932_s14 + $0x2c] sm:$0xf] }
 0x132   : > { %vm3750_vm2 = vcmp.eq.f32.partialorder %v1097_v43, 8.507059e+37  ;;  %vm1094_vm3 = vweird.f32 %v3659_v39  ;;  %v3756_v49 = vor.u32 1.1754944e-38, %v1099_v57  ;;  %v3759_v61 = vadd.f32 %v986_v51, %v3678_v55  ;;  %v1786_v43 = vld [vmem:[#allocation11 + $0x38] sm:$0xff]  ;;  %v896_v51 = vpop.permute.xlu2 %895  ;;  %vm3782_vm14 = vmpackc.low %vm1344_vm10, %vm1344_vm10  ;;  %v1785_v9 = vld [vmem:[#allocation11 + $0x30] sm:$0xff]  ;;  %1659 = vmatpush.msra.mxu0 %v1622_v23 }
 0x133   : > { %v3762_v48 = vadd.f32 %v1390_v56, %v3543_v17  ;;  %v3770_v2 = vadd.f32 %v3659_v39, %v1091_v7  ;;  %v3774_v57 = vsel %vm1641_vm6, %v1688_v59, %v3649_v50  ;;  %v3776_v55 = vunpack.c.l.bf16 %v1378_v21  ;;  %v3798_v21 = vld [vmem:[%s2939_s26 + $0x38] sm:$0xf]  ;;  %1762 = vmatpush.msra.mxu2 %v1730_v41  ;;  %1826 = vmatpush.msra.mxu3 %v1786_v43  ;;  %v1604_v47 = vld [vmem:[#allocation7 + $0x50] sm:$0xff]  ;;  %v1727_v43 = vld [vmem:[#allocation10 + $0x40] sm:$0xff]  ;;  %s4331_s26 = sld [smem:[#allocation34_spill]] }
 0x134   : > { %v749_v17 = vunpack.c.l.bf16 %v3698_v29  ;;  %v1547_v50 = vsel %vm3690_vm4, %v3674_v44, %v1542_v3  ;;  %v1429_v29 = vadd.f32 %v1428_v12, %v3702_v45  ;;  %v3793_v59 = vadd.f32 %v3571_v54, %v956_v11  ;;  %vm3807_vm4 = vmor %vm1093_vm12, %vm1094_vm3  ;;  %v1621_v45 = vld [vmem:[#allocation8 + $0x58] sm:$0xff]  ;;  %v1603_v54 = vld [vmem:[#allocation7 + $0x48] sm:$0xff] }
 0x135   : > { %v3742_v28 = vpop.permute.xlu1 %1326  ;;  %v3786_v7 = vpop.eup %2321  ;;  %v1376_v58 = vsel %vm3782_vm14, %v1176_v46, 0  ;;  %v3801_v13 = vmul.f32 %v3656_v10, %v970_v35  ;;  %v1114_v44 = vand.u32 2147483648, %v3684_v19  ;;  %v1431_v34 = vrot.slane %v3762_v48, 4  ;;  %v1605_v10 = vld [vmem:[#allocation7 + $0x58] sm:$0xff]  ;;  %1763 = vmatpush.msra.mxu2 %v1729_v6  ;;  %1827 = vmatpush.msra.mxu3 %v1785_v9  ;;  %v1783_v6 = vld [vmem:[#allocation11 + $0x20] sm:$0xff] }
 0x136   : > { %vm1343_vm13 = vcmp.eq.s32.totalorder %v3686_v27, 1  ;;  %v988_v12 = vrot.slane %v3759_v61, 2  ;;  %v1112_v11 = vand.u32 2147483647, %v3684_v19  ;;  %vm914_vm0 = vcmp.eq.s32.totalorder %v896_v51, 1  ;;  %v1728_v27 = vld [vmem:[#allocation10 + $0x48] sm:$0xff]  ;;  %1660 = vmatpush.msra.mxu0 %v1621_v45  ;;  %1703 = vmatpush.msra.mxu1 %v1605_v10 }
 0x137   : > { %v3767_v40 = vpop.permute.xlu0 %886  ;;  %v1392_v8 = vunpack.c.l.bf16 %v1376_v58  ;;  %vm3816_vm12 = vmpackc.low %vm1343_vm13, %vm1343_vm13  ;;  %v1096_v20 = vsel %vm3807_vm4, %v3659_v39, %v3770_v2  ;;  %v3827_v35 = vmul.f32 %v3786_v7, %v3684_v19  ;;  %v3830_v3 = vld [vmem:[%s2932_s14 + $0x38] sm:$0xf]  ;;  %vm1345_vm15 = vcmp.eq.s32.totalorder %v3742_v28, 1  ;;  %v742_v58 = vld [vmem:[%s2932_s14 + $0x34] sm:$0xf]  ;;  %1764 = vmatpush.msra.mxu2 %v1728_v27  ;;  %1828 = vmatpush.msra.mxu3 %v1784_v30 }
 0x138   : > { %v1375_v46 = vsel %vm3816_vm12, %v3765_v16, 0  ;;  %v3836_v41 = vmul.f32 %v1547_v50, %v1429_v29  ;;  %v993_v39 = vrot.slane %v3793_v59, 4  ;;  %v3839_v2 = vrot.slane %v749_v17, 4  ;;  %vm3841_vm1 = vmpackc.low %vm1345_vm15, %vm1345_vm15  ;;  %v1619_v28 = vld [vmem:[#allocation8 + $0x48] sm:$0xff]  ;;  %1661 = vmatpush.msra.mxu0 %v1620_v38  ;;  %1704 = vmatpush.msra.mxu1 %v1604_v47  ;;  %v1618_v30 = vld [vmem:[#allocation8 + $0x40] sm:$0xff] }
 0x139   : > { %v1391_v53 = vunpack.c.l.bf16 %v1375_v46  ;;  %v3846_v9 = vor.u32 1.1754944e-38, %v1114_v44  ;;  %v3849_v50 = vadd.f32 %v1431_v34, %v3762_v48  ;;  %vm3853_vm5 = vmpackc.low %vm914_vm0, %vm914_vm0  ;;  %v1377_v29 = vsel %vm3841_vm1, %v3798_v21, 0  ;;  %v1726_v44 = vld [vmem:[#allocation10 + $0x38] sm:$0xff]  ;;  %1765 = vmatpush.msra.mxu2 %v1727_v43  ;;  %1829 = vmatpush.msra.mxu3 %v1783_v6  ;;  %v3883_v38 = vld [vmem:[%s2932_s14 + $0x30] sm:$0xf] }
 0x13a   : > { %vm911_vm8 = vcmp.eq.s32.totalorder %v3767_v40, 1  ;;  %v3864_v48 = vsel %vm3750_vm2, %v3756_v49, %v1096_v20  ;;  %v989_v51 = vadd.f32 %v988_v12, %v3759_v61  ;;  %v752_v34 = vunpack.c.l.bf16 %v3830_v3  ;;  %v1782_v40 = vld [vmem:[#allocation11 + $0x18] sm:$0xff]  ;;  %1662 = vmatpush.msra.mxu0 %v1619_v28  ;;  %v1602_v61 = vld [vmem:[#allocation7 + $0x40] sm:$0xff]  ;;  %v1725_v12 = vld [vmem:[#allocation10 + $0x30] sm:$0xff]  ;;  %1705 = vmatpush.msra.mxu1 %v1603_v54 }
 0x13b   : > { %v1437_v45 = vadd.f32 %v1392_v8, %v1391_v53  ;;  %vm3868_vm9 = vmpackc.low %vm911_vm8, %vm911_vm8  ;;  %v1105_v27 = vsub.f32 1.0, %v3827_v35  ;;  %vm1109_vm10 = vweird.f32 %v3786_v7  ;;  %v1393_v0 = vunpack.c.l.bf16 %v1377_v29  ;;  %v1781_v47 = vld [vmem:[#allocation11 + $0x10] sm:$0xff]  ;;  %1766 = vmatpush.msra.mxu2 %v1726_v44  ;;  %1830 = vmatpush.msra.mxu3 %v1782_v40  ;;  %v1780_v6 = vld [vmem:[#allocation11 + $0x8] sm:$0xff] }
 0x13c   : > { %v943_v49 = vsel %vm3868_vm9, %v740_v18, 0  ;;  %v3877_v8 = vadd.f32 %v993_v39, %v3793_v59  ;;  %v946_v20 = vsel %vm3853_vm5, %v3830_v3, 0  ;;  %vm1108_vm14 = vweird.f32 %v3684_v19  ;;  %1663 = vmatpush.msra.mxu0 %v1618_v30  ;;  %1706 = vmatpush.msra.mxu1 %v1602_v61  ;;  %v744_v10 = vld [vmem:[%s2932_s14 + $0x3c] sm:$0xf] }
 0x13d   : > { %v893_v42 = vpop.permute.xlu1 %892  ;;  %v1438_v46 = vrot.slane %v1437_v45, 4  ;;  %v959_v35 = vunpack.c.l.bf16 %v943_v49  ;;  %v1433_v18 = vrot.slane %v3849_v50, 2  ;;  %v1444_v43 = vadd.f32 %v3776_v55, %v1393_v0  ;;  %1767 = vmatpush.msra.mxu2 %v1725_v12  ;;  %1831 = vmatpush.msra.mxu3 %v1781_v47  ;;  %v1601_v0 = vld [vmem:[#allocation7 + $0x38] sm:$0xff]  ;;  %v1724_v49 = vld [vmem:[#allocation10 + $0x28] sm:$0xff]  ;;  %v1616_v47 = vld [vmem:[#allocation8 + $0x30] sm:$0xff] }
 0x13e   : > { %vm913_vm2 = vcmp.eq.s32.totalorder %v893_v42, 1  ;;  %v990_v39 = vrot.slane %v989_v51, 1  ;;  %v1106_v28 = vmul.f32 %v3786_v7, %v1105_v27  ;;  %v1185_v17 = vunpack.c.l.bf16 %v3765_v16  ;;  %v1617_v27 = vld [vmem:[#allocation8 + $0x38] sm:$0xff]  ;;  %1707 = vmatpush.msra.mxu1 %v1601_v0  ;;  %vm3924_vm15 = vmor %vm1108_vm14, %vm1109_vm10 }
 0x13f   : > { %v890_v56 = vpop.permute.xlu0 %889  ;;  %vm929_vm3 = vmpackc.low %vm913_vm2, %vm913_vm2  ;;  %v1439_v53 = vadd.f32 %v1438_v46, %v1437_v45  ;;  %v999_v23 = vadd.f32 %v959_v35, %v3694_v15  ;;  %v1445_v29 = vrot.slane %v1444_v43, 4  ;;  %v1779_v45 = vld [vmem:[#allocation11] sm:$0xff]  ;;  %v3894_v15 = vrot.slane %v3224_v60, 5  ;;  %1832 = vmatpush.msra.mxu3 %v1780_v6  ;;  %1664 = vmatpush.msra.mxu0 %v1617_v27 }
 0x140   : > { %v945_v59 = vsel %vm929_vm3, %v742_v58, 0  ;;  %vm912_vm4 = vcmp.eq.s32.totalorder %v890_v56, 1  ;;  %v995_v56 = vrot.slane %v3877_v8, 2  ;;  %v3898_v40 = vadd.f32 %v1433_v18, %v3849_v50  ;;  %v1600_v50 = vld [vmem:[#allocation7 + $0x30] sm:$0xff]  ;;  %v1723_v18 = vld [vmem:[#allocation10 + $0x20] sm:$0xff]  ;;  %1768 = vmatpush.msra.mxu2 %v1724_v49  ;;  %v1597_v49 = vld [vmem:[#allocation7 + $0x18] sm:$0xff] }
 0x141   : > { %v961_v42 = vunpack.c.l.bf16 %v945_v59  ;;  %vm928_vm13 = vmpackc.low %vm912_vm4, %vm912_vm4  ;;  %v1440_v58 = vrot.slane %v1439_v53, 2  ;;  %v1000_v54 = vrot.slane %v999_v23, 4  ;;  %v1446_v30 = vadd.f32 %v1445_v29, %v1444_v43  ;;  %1833 = vmatpush.msra.mxu3 %v1779_v45  ;;  %1665 = vmatpush.msra.mxu0 %v1616_v47  ;;  %v1598_v45 = vld [vmem:[#allocation7 + $0x20] sm:$0xff] }
 0x142   : > { %v944_v55 = vsel %vm928_vm13, %v3883_v38, 0  ;;  %v3901_v16 = vrot.slane %v3224_v60, 6  ;;  %v991_v61 = vadd.f32 %v990_v39, %v989_v51  ;;  %v1186_v12 = vunpack.c.l.bf16 %v3798_v21  ;;  %v1615_v21 = vld [vmem:[#allocation8 + $0x28] sm:$0xff]  ;;  %1708 = vmatpush.msra.mxu1 %v1600_v50  ;;  %1769 = vmatpush.msra.mxu2 %v1723_v18 }
 0x143   : > { %v960_v44 = vunpack.c.l.bf16 %v944_v55  ;;  %2323 = vrcp.f32 %v3894_v15  ;;  %v3906_v43 = vadd.f32 %v3786_v7, %v1106_v28  ;;  %v962_v59 = vunpack.c.l.bf16 %v946_v20  ;;  %v1599_v51 = vld [vmem:[#allocation7 + $0x28] sm:$0xff]  ;;  %v1614_v20 = vld [vmem:[#allocation8 + $0x20] sm:$0xff]  ;;  %1666 = vmatpush.msra.mxu0 %v1615_v21 }
 0x144   : > { %v3910_v6 = vrot.slane %v752_v34, 1  ;;  %v1441_v39 = vadd.f32 %v1440_v58, %v1439_v53  ;;  %v1001_v29 = vadd.f32 %v1000_v54, %v999_v23  ;;  %v3913_v28 = vadd.f32 %v995_v56, %v3877_v8  ;;  %1709 = vmatpush.msra.mxu1 %v1599_v51  ;;  %v1720_v18 = vld [vmem:[#allocation10 + $0x8] sm:$0xff]  ;;  %v1612_v51 = vld [vmem:[#allocation8 + $0x10] sm:$0xff] }
 0x145   : > { %v1006_v46 = vadd.f32 %v961_v42, %v960_v44  ;;  %v1447_v42 = vrot.slane %v1446_v30, 2  ;;  %v1722_v44 = vld [vmem:[#allocation10 + $0x18] sm:$0xff]  ;;  %v1435_v3 = vrot.slane %v3898_v40, 1  ;;  %2325 = vrcp.f32 %v3901_v16  ;;  %1667 = vmatpush.msra.mxu0 %v1614_v20  ;;  %v1857_v20 = vld [vmem:[#allocation13 + $0x60] sm:$0xff] }
 0x146   : > { %v3918_v53 = vmul.f32 %v3864_v48, %v991_v61  ;;  %v3928_v8 = vrot.slane %v1185_v17, 2  ;;  %v3930_v58 = vrot.slane %v1186_v12, 1  ;;  %v1111_v48 = vsel %vm3924_vm15, %v3786_v7, %v3906_v43  ;;  %1770 = vmatpush.msra.mxu2 %v1722_v44  ;;  %v1613_v17 = vld [vmem:[#allocation8 + $0x18] sm:$0xff]  ;;  %1710 = vmatpush.msra.mxu1 %v1598_v45  ;;  %v1611_v45 = vld [vmem:[#allocation8 + $0x8] sm:$0xff] }
 0x147   : > { %v899_v35 = vpop.permute.xlu0 %898  ;;  %v1007_v55 = vrot.slane %v1006_v46, 4  ;;  %v3937_v27 = vrot.slane %v3224_v60, 7  ;;  %v1558_v0 = vand.u32 2147483647, %v3894_v15  ;;  %v1442_v12 = vrot.slane %v1441_v39, 1  ;;  %1668 = vmatpush.msra.mxu0 %v1613_v17 }
 0x148   : > { %vm915_vm0 = vcmp.eq.s32.totalorder %v899_v35, 1  ;;  %v3942_v35 = vadd.f32 %v1447_v42, %v1446_v30  ;;  %v1002_v47 = vrot.slane %v1001_v29, 2  ;;  %v3946_v60 = vadd.f32 %v1435_v3, %v3898_v40  ;;  %1711 = vmatpush.msra.mxu1 %v1597_v49  ;;  %v1719_v42 = vld [vmem:[#allocation10] sm:$0xff] }
 0x149   : > { %vm931_vm12 = vmpackc.low %vm915_vm0, %vm915_vm0  ;;  %v1008_v56 = vadd.f32 %v1007_v55, %v1006_v46  ;;  %v3940_v61 = vpop.eup %2323  ;;  %v997_v46 = vrot.slane %v3913_v28, 1  ;;  %vm1644_vm1 = vcmask 1044484   ;;  %v1596_v55 = vld [vmem:[#allocation7 + $0x10] sm:$0xff]  ;;  %vm1554_vm5 = vweird.f32 %v3894_v15  ;;  %1669 = vmatpush.msra.mxu0 %v1612_v51 }
 0x14a   : > { %v947_v34 = vsel %vm931_vm12, %v744_v10, 0  ;;  %v1721_v10 = vld [vmem:[#allocation10 + $0x10] sm:$0xff]  ;;  %v1550_v21 = vmul.f32 %v3940_v61, %v3894_v15  ;;  %v1560_v30 = vand.u32 2147483648, %v3894_v15  ;;  %vm3955_vm8 = vcmp.eq.f32.partialorder %v1558_v0, 8.507059e+37  ;;  %1712 = vmatpush.msra.mxu1 %v1596_v55 }
 0x14b   : > { %v963_v54 = vunpack.c.l.bf16 %v947_v34  ;;  %1771 = vmatpush.msra.mxu2 %v1721_v10  ;;  %v3953_v34 = vpop.eup %2325  ;;  %v1009_v40 = vrot.slane %v1008_v56, 2  ;;  %2327 = vrcp.f32 %v3937_v27  ;;  %v3960_v10 = vadd.f32 %v1002_v47, %v1001_v29  ;;  %1670 = vmatpush.msra.mxu0 %v1611_v45 }
 0x14c   : > { %v1551_v3 = vsub.f32 1.0, %v1550_v21  ;;  %v3962_v24 = vadd.f32 %v1442_v12, %v1441_v39  ;;  %v1449_v17 = vrot.slane %v3942_v35, 1  ;;  %v1565_v49 = vmul.f32 %v3953_v34, %v3901_v16  ;;  %v1594_v12 = vld [vmem:[#allocation7] sm:$0xff] }
 0x14d   : > { %v1013_v50 = vadd.f32 %v963_v54, %v962_v59  ;;  %v1573_v59 = vand.u32 2147483647, %v3901_v16  ;;  %1772 = vmatpush.msra.mxu2 %v1720_v18  ;;  %v1595_v54 = vld [vmem:[#allocation7 + $0x8] sm:$0xff]  ;;  %vm1555_vm9 = vweird.f32 %v3940_v61  ;;  %v1575_v18 = vand.u32 2147483648, %v3901_v16  ;;  %1671 = vmatpush.msra.mxu0 %v1610_v4 }
 0x14e   : > { %v1552_v21 = vmul.f32 %v3940_v61, %v1551_v3  ;;  %v1561_v29 = vor.u32 1.1754944e-38, %v1560_v30  ;;  %v1566_v47 = vsub.f32 1.0, %v1565_v49  ;;  %vm1569_vm10 = vweird.f32 %v3901_v16  ;;  %1713 = vmatpush.msra.mxu1 %v1595_v54  ;;  %vm3987_vm14 = vmor %vm1554_vm5, %vm1555_vm9 }
 0x14f   : > { %v1014_v44 = vrot.slane %v1013_v50, 4  ;;  %1773 = vmatpush.msra.mxu2 %v1719_v42  ;;  %vm3971_vm2 = vcmp.eq.f32.partialorder %v1573_v59, 8.507059e+37  ;;  %vm1570_vm3 = vweird.f32 %v3953_v34  ;;  %v1804_v55 = vsel %vm1635_vm7, %v1803_v26, %v3616_v33  ;;  %v1860_v26 = vld [vmem:[#allocation13 + $0x78] sm:$0xff] }
 0x150   : > { %v1553_v51 = vadd.f32 %v3940_v61, %v1552_v21  ;;  %vm1647_vm4 = vcmask 1045509   ;;  %v3995_v30 = vsel %vm1638_vm11, %v1805_v25, %v1804_v55  ;;  %v1750_v5 = vsel %vm1644_vm1, %v3324_v62, %v3504_v63  ;;  %1714 = vmatpush.msra.mxu1 %v1594_v12  ;;  %1865 = vmatpush.msrb.mxu0 %v1860_v26  ;;  %vm4018_vm5 = vmor %vm1569_vm10, %vm1570_vm3  ;;  %v1856_v12 = vld [vmem:[#allocation13 + $0x58] sm:$0xff] }
 0x151   : > { %v1015_v0 = vadd.f32 %v1014_v44, %v1013_v50  ;;  %v3975_v50 = vadd.f32 %v1009_v40, %v1008_v56  ;;  %v1567_v56 = vmul.f32 %v3953_v34, %v1566_v47  ;;  %v2328_v33 = vpop.eup %2327  ;;  %v1576_v42 = vor.u32 1.1754944e-38, %v1575_v18 }
 0x152   : > { %v1557_v59 = vsel %vm3987_vm14, %v3940_v61, %v1553_v51  ;;  %v1752_v40 = vsel %vm1647_vm4, %v3525_v14, %v1750_v5  ;;  %vm4007_vm13 = vcmp.eq.f32.partialorder %v1112_v11, 8.507059e+37  ;;  %v1580_v63 = vmul.f32 %v2328_v33, %v3937_v27  ;;  %v1858_v61 = vld [vmem:[#allocation13 + $0x68] sm:$0xff]  ;;  %1866 = vmatpush.msrb.mxu0 %v1859_v32 }
 0x153   : > { %v1016_v15 = vrot.slane %v1015_v0, 2  ;;  %v1568_v62 = vadd.f32 %v3953_v34, %v1567_v56  ;;  %vm1584_vm0 = vweird.f32 %v3937_v27  ;;  %vm1650_vm12 = vcmask 1046534  }
 0x154   : > { %v1588_v4 = vand.u32 2147483647, %v3937_v27  ;;  %v1590_v19 = vand.u32 2147483648, %v3937_v27  ;;  %vm4182_vm9 = vcmask 1047559   ;;  %v1754_v11 = vsel %vm1650_vm12, %v3928_v8, %v1752_v40  ;;  %1867 = vmatpush.msrb.mxu0 %v1858_v61 }
 0x155   : > { %v1562_v3 = vsel %vm3955_vm8, %v1561_v29, %v1557_v59  ;;  %v1572_v16 = vsel %vm4018_vm5, %v3953_v34, %v1568_v62  ;;  %v1581_v45 = vsub.f32 1.0, %v1580_v63  ;;  %v1756_v54 = vsel %vm4182_vm9, %v3930_v58, %v1754_v11 }
 0x156   : > { %v1017_v49 = vadd.f32 %v1016_v15, %v1015_v0  ;;  %v1563_v21 = vmul.f32 %v1562_v3, %v3946_v60  ;;  %1774 = vmatmul.f32.vlgmr.msra.gmra.mxu2 %v1756_v54  ;;  %v4035_v18 = vrot.slane %v3309_v52, 5  ;;  %v4038_v8 = vrot.slane %v3309_v52, 6  ;;  %1868 = vmatpush.msrb.mxu0 %v1857_v20 }
 0x157   : > { %v1577_v29 = vsel %vm3971_vm2, %v1576_v42, %v1572_v16  ;;  %v1582_v34 = vmul.f32 %v2328_v33, %v1581_v45  ;;  %vm1585_vm8 = vweird.f32 %v2328_v33  ;;  %v4043_v47 = vrot.slane %v3309_v52, 7 }
 0x158   : > { %v998_v58 = vadd.f32 %v997_v46, %v3913_v28  ;;  %v751_v60 = vunpack.c.l.bf16 %v3883_v38  ;;  %v1578_v0 = vmul.f32 %v1577_v29, %v3962_v24  ;;  %2329 = vrcp.f32 %v4035_v18  ;;  %vm1586_vm10 = vmor %vm1584_vm0, %vm1585_vm8  ;;  %1869 = vmatpush.msrb.mxu0 %v1856_v12 }
 0x159   : > { %v1004_v39 = vrot.slane %v3960_v10, 1  ;;  %v1450_v51 = vadd.f32 %v1449_v17, %v3942_v35  ;;  %v1583_v52 = vadd.f32 %v2328_v33, %v1582_v34  ;;  %2331 = vrcp.f32 %v4038_v8 }
 0x15a   : > { %v1011_v55 = vrot.slane %v3975_v50, 1  ;;  %vm1589_vm2 = vcmp.eq.f32.partialorder %v1588_v4, 8.507059e+37  ;;  %v1591_v24 = vor.u32 1.1754944e-38, %v1590_v19  ;;  %v1809_v38 = vrot.slane %v3836_v41, 4 }
 0x15b   : > { %v1018_v28 = vrot.slane %v1017_v49, 1  ;;  %v1587_v46 = vsel %vm1586_vm10, %v2328_v33, %v1583_v52  ;;  %v1811_v44 = vrot.slane %v1563_v21, 3  ;;  %2333 = vrcp.f32 %v4043_v47 }
 0x15c   : > { %v1640_v35 = vrot.slane %v3918_v53, 5  ;;  %v1116_v27 = vsel %vm4007_vm13, %v3846_v9, %v1111_v48  ;;  %v1592_v17 = vsel %vm1589_vm2, %v1591_v24, %v1587_v46  ;;  %v1813_v56 = vrot.slane %v1578_v0, 2  ;;  %v1851_v53 = vld [vmem:[#allocation13 + $0x30] sm:$0xff] }
 0x15d   : > { %v4070_v41 = vmul.f32 %v1116_v27, %v998_v58  ;;  %v1694_v5 = vrot.slane %v751_v60, 2  ;;  %v1593_v26 = vmul.f32 %v1592_v17, %v1450_v51  ;;  %v1808_v33 = vsel %vm1641_vm6, %v1807_v22, %v3995_v30 }
 0x15e   : > { %v2330_v15 = vpop.eup %2329  ;;  %v1005_v23 = vadd.f32 %v1004_v39, %v3960_v10  ;;  %v1810_v7 = vsel %vm1644_vm1, %v1809_v38, %v1808_v33  ;;  %v1012_v43 = vadd.f32 %v1011_v55, %v3975_v50  ;;  %v1691_v9 = vsel %vm1644_vm1, %v3839_v2, %v3774_v57  ;;  %v1852_v33 = vld [vmem:[#allocation13 + $0x38] sm:$0xff] }
 0x15f   : > { %v2332_v48 = vpop.eup %2331  ;;  %v1812_v59 = vsel %vm1647_vm4, %v1811_v44, %v1810_v7  ;;  %v1815_v42 = vrot.slane %v1593_v26, 1  ;;  %v1019_v40 = vadd.f32 %v1018_v28, %v1017_v49  ;;  %v1119_v1 = vmul.f32 %v2330_v15, %v4035_v18  ;;  %v1853_v26 = vld [vmem:[#allocation13 + $0x40] sm:$0xff]  ;;  %v1847_v7 = vld [vmem:[#allocation13 + $0x10] sm:$0xff] }
 0x160   : > { %v1814_v22 = vsel %vm1650_vm12, %v1813_v56, %v1812_v59  ;;  %v1127_v30 = vand.u32 2147483647, %v4035_v18  ;;  %v1134_v10 = vmul.f32 %v2332_v48, %v4038_v8  ;;  %v4328_v50 = vrot.slane %v3552_v37, 7  ;;  %v1900_v59 = vld [vmem:[#allocation14 + $0x70] sm:$0xff] }
 0x161   : > { %v2334_v25 = vpop.eup %2333  ;;  %v1816_v57 = vsel %vm4182_vm9, %v1815_v42, %v1814_v22  ;;  %v1120_v2 = vsub.f32 1.0, %v1119_v1  ;;  %v1129_v62 = vand.u32 2147483648, %v4035_v18  ;;  %v1693_v63 = vsel %vm1647_vm4, %v3676_v36, %v1691_v9  ;;  %v1845_v9 = vld [vmem:[#allocation13] sm:$0xff]  ;;  %v1899_v42 = vld [vmem:[#allocation14 + $0x68] sm:$0xff]  ;;  %v1897_v1 = vld [vmem:[#allocation14 + $0x58] sm:$0xff] }
 0x162   : > { %v1636_v32 = vsel %vm1635_vm7, %v4328_v50, %v3801_v13  ;;  %1834 = vmatmul.f32.vlgmr.msra.gmra.mxu3 %v1816_v57  ;;  %v1135_v14 = vsub.f32 1.0, %v1134_v10  ;;  %v1142_v4 = vand.u32 2147483647, %v4038_v8  ;;  %v1149_v19 = vmul.f32 %v2334_v25, %v4043_v47  ;;  %v1896_v22 = vld [vmem:[#allocation14 + $0x50] sm:$0xff]  ;;  %v1894_v10 = vld [vmem:[#allocation14 + $0x40] sm:$0xff]  ;;  %v1893_v50 = vld [vmem:[#allocation14 + $0x38] sm:$0xff] }
 0x163   : > { %v1695_v11 = vsel %vm1650_vm12, %v1694_v5, %v1693_v63  ;;  %v1121_v37 = vmul.f32 %v2330_v15, %v1120_v2  ;;  %vm1124_vm15 = vweird.f32 %v2330_v15  ;;  %v1144_v13 = vand.u32 2147483648, %v4038_v8  ;;  %v1854_v5 = vld [vmem:[#allocation13 + $0x48] sm:$0xff] }
 0x164   : > { %v1697_v61 = vsel %vm4182_vm9, %v3910_v6, %v1695_v11  ;;  %vm1123_vm7 = vweird.f32 %v4035_v18  ;;  %v1136_v3 = vmul.f32 %v2332_v48, %v1135_v14  ;;  %vm1139_vm3 = vweird.f32 %v2332_v48 }
 0x165   : > { %v1150_v36 = vsub.f32 1.0, %v1149_v19  ;;  %1715 = vmatmul.f32.vlgmr.msra.gmra.mxu1 %v1697_v61  ;;  %v1122_v16 = vadd.f32 %v2330_v15, %v1121_v37  ;;  %v1130_v45 = vor.u32 1.1754944e-38, %v1129_v62  ;;  %vm1138_vm14 = vweird.f32 %v4038_v8  ;;  %vm1125_vm13 = vmor %vm1123_vm7, %vm1124_vm15  ;;  %v1890_v61 = vld [vmem:[#allocation14 + $0x20] sm:$0xff] }
 0x166   : > { %v1159_v54 = vand.u32 2147483648, %v4043_v47  ;;  %v1137_v49 = vadd.f32 %v2332_v48, %v1136_v3  ;;  %vm1154_vm0 = vweird.f32 %v2334_v25  ;;  %v1157_v20 = vand.u32 2147483647, %v4043_v47  ;;  %vm1140_vm8 = vmor %vm1138_vm14, %vm1139_vm3  ;;  %v1889_v3 = vld [vmem:[#allocation14 + $0x18] sm:$0xff] }
 0x167   : > { %v1151_v21 = vmul.f32 %v2334_v25, %v1150_v36  ;;  %v1126_v29 = vsel %vm1125_vm13, %v2330_v15, %v1122_v16  ;;  %vm1128_vm5 = vcmp.eq.f32.partialorder %v1127_v30, 8.507059e+37  ;;  %vm1143_vm10 = vcmp.eq.f32.partialorder %v1142_v4, 8.507059e+37  ;;  %v1849_v15 = vld [vmem:[#allocation13 + $0x20] sm:$0xff]  ;;  %v1895_v30 = vld [vmem:[#allocation14 + $0x48] sm:$0xff]  ;;  %v1888_v36 = vld [vmem:[#allocation14 + $0x10] sm:$0xff] }
 0x168   : > { %v1145_v6 = vor.u32 1.1754944e-38, %v1144_v13  ;;  %v1131_v18 = vsel %vm1128_vm5, %v1130_v45, %v1126_v29  ;;  %v1141_v34 = vsel %vm1140_vm8, %v2332_v48, %v1137_v49  ;;  %vm1153_vm2 = vweird.f32 %v4043_v47  ;;  %v1901_v48 = vld [vmem:[#allocation14 + $0x78] sm:$0xff]  ;;  %v2300_v4 = vld [vmem:[%s4170_s10] ss:$0 sm:$0xff]  ;;  %v1887_v16 = vld [vmem:[#allocation14 + $0x8] sm:$0xff] }
 0x169   : > { %v1152_v58 = vadd.f32 %v2334_v25, %v1151_v21  ;;  %v1132_v60 = vmul.f32 %v1131_v18, %v1005_v23  ;;  %vm1155_vm9 = vmor %vm1153_vm2, %vm1154_vm0  ;;  %v1160_v0 = vor.u32 1.1754944e-38, %v1159_v54  ;;  %v1643_v12 = vrot.slane %v4070_v41, 4  ;;  %v1848_v23 = vld [vmem:[#allocation13 + $0x18] sm:$0xff]  ;;  %1906 = vmatpush.msrb.mxu1 %v1901_v48  ;;  %v1886_v45 = vld [vmem:[#allocation14] sm:$0xff] }
 0x16a   : > { %v1146_v8 = vsel %vm1143_vm10, %v1145_v6, %v1141_v34  ;;  %vm1158_vm15 = vcmp.eq.f32.partialorder %v1157_v20, 8.507059e+37  ;;  %v4329_v55 = vrot.slane %v3688_v31, 6  ;;  %v1855_v31 = vld [vmem:[#allocation13 + $0x50] sm:$0xff]  ;;  %v2301_v54 = vld [vmem:[%s4331_s26] ss:$0 sm:$0xff] }
 0x16b   : > { %v1147_v39 = vmul.f32 %v1146_v8, %v1012_v43  ;;  %v1156_v51 = vsel %vm1155_vm9, %v2334_v25, %v1152_v58  ;;  %v1646_v38 = vrot.slane %v1132_v60, 3  ;;  %vm4330_vm9 = vcmask 1047559   ;;  %1870 = vmatpush.msrb.mxu0 %v1855_v31  ;;  %v1846_v43 = vld [vmem:[#allocation13 + $0x8] sm:$0xff]  ;;  %1907 = vmatpush.msrb.mxu1 %v1900_v59  ;;  %v2302_v29 = vld [vmem:[%s4333_s8] ss:$0 sm:$0xff] }
 0x16c   : > { %v1161_v52 = vsel %vm1158_vm15, %v1160_v0, %v1156_v51  ;;  %v1639_v24 = vsel %vm1638_vm11, %v4329_v55, %v1636_v32  ;;  %v1892_v32 = vld [vmem:[#allocation14 + $0x30] sm:$0xff]  ;;  %v1891_v25 = vld [vmem:[#allocation14 + $0x28] sm:$0xff] }
 0x16d   : > { %v1162_v28 = vmul.f32 %v1161_v52, %v1019_v40  ;;  %v1642_v47 = vsel %vm1641_vm6, %v1640_v35, %v1639_v24  ;;  %v1649_v46 = vrot.slane %v1147_v39, 2  ;;  %1871 = vmatpush.msrb.mxu0 %v1854_v5  ;;  %v1850_v35 = vld [vmem:[#allocation13 + $0x28] sm:$0xff]  ;;  %v1898_v40 = vld [vmem:[#allocation14 + $0x60] sm:$0xff]  ;;  %1908 = vmatpush.msrb.mxu1 %v1899_v42 }
 0x16e   : > { %v1645_v44 = vsel %vm1644_vm1, %v1643_v12, %v1642_v47 }
 0x16f   : > { %v1648_v27 = vsel %vm1647_vm4, %v1646_v38, %v1645_v44  ;;  %v1652_v17 = vrot.slane %v1162_v28, 1  ;;  %1872 = vmatpush.msrb.mxu0 %v1853_v26  ;;  %1909 = vmatpush.msrb.mxu1 %v1898_v40 }
 0x170   : > { %v1651_v56 = vsel %vm1650_vm12, %v1649_v46, %v1648_v27 }
 0x171   : > { %v1654_v41 = vsel %vm4330_vm9, %v1652_v17, %v1651_v56  ;;  %1873 = vmatpush.msrb.mxu0 %v1852_v33  ;;  %1910 = vmatpush.msrb.mxu1 %v1897_v1 }
 0x172   : > { %1672 = vmatmul.f32.vlgmr.msra.gmra.mxu0 %v1654_v41 }
 0x173   : > { %1874 = vmatpush.msrb.mxu0 %v1851_v53  ;;  %1911 = vmatpush.msrb.mxu1 %v1896_v22 }
 0x175   : > { %1875 = vmatpush.msrb.mxu0 %v1850_v35  ;;  %1912 = vmatpush.msrb.mxu1 %v1895_v30 }
 0x177   : > { %1876 = vmatpush.msrb.mxu0 %v1849_v15  ;;  %1913 = vmatpush.msrb.mxu1 %v1894_v10 }
 0x179   : > { %1877 = vmatpush.msrb.mxu0 %v1848_v23  ;;  %1914 = vmatpush.msrb.mxu1 %v1893_v50 }
 0x17b   : > { %1878 = vmatpush.msrb.mxu0 %v1847_v7  ;;  %1915 = vmatpush.msrb.mxu1 %v1892_v32 }
 0x17d   : > { %1879 = vmatpush.msrb.mxu0 %v1846_v43  ;;  %1916 = vmatpush.msrb.mxu1 %v1891_v25 }
 0x17f   : > { %1880 = vmatpush.msrb.mxu0 %v1845_v9  ;;  %1917 = vmatpush.msrb.mxu1 %v1890_v61 }
 0x181   : > { %1918 = vmatpush.msrb.mxu1 %v1889_v3 }
 0x183   : > { %1919 = vmatpush.msrb.mxu1 %v1888_v36 }
 0x185   : > { %1920 = vmatpush.msrb.mxu1 %v1887_v16 }
 0x187   : > { %1921 = vmatpush.msrb.mxu1 %v1886_v45 }
 0x1d9   : > { %v1775_v62 = vpop.f32.mrf.mxu2 }
 0x1e2   : > { %v1716_v57 = vpop.f32.mrf.mxu1 }
 0x1e5   : > { %v1835_v19 = vpop.f32.mrf.mxu3 }
 0x1ef   : > { %v1673_v2 = vpop.f32.mrf.mxu0 }
 0x1f0   : > { %v1717_v63 = vadd.f32 %v1716_v57, %v1673_v2 }
 0x1f2   : > { %v1778_v14 = vadd.f32 %v1775_v62, %v1717_v63 }
 0x1f4   : > { %v1838_v11 = vadd.f32 %v1835_v19, %v1778_v14 }
 0x1f6   : > { %v1843_v37 = vadd.f32 %v2300_v4, %v1838_v11 }
 0x1f8   : > { %v1844_v13 = vmax.f32 %v1843_v37, 0.0 }
 0x1fa   : > { %1881 = vmatmul.f32.vlgmr.msrb.gmra.mxu0 %v1844_v13 }
 0x277   : > { %v1882_v49 = vpop.f32.mrf.mxu0 }
 0x278   : > { %v1883_v21 = vadd.f32 %v2301_v54, %v1882_v49 }
 0x27a   : > { %2335 = vtanh.f32 %v1883_v21 }
 0x280   : > { %v2336_v20 = vpop.eup %2335 }
 0x281   : > { %1922 = vmatmul.f32.vlgmr.msrb.gmra.mxu1 %v2336_v20 }
 0x2fe   : > { %v1923_v6 = vpop.f32.mrf.mxu1 }
 0x2ff   : > { %v1924_v18 = vadd.f32 %v2302_v29, %v1923_v6 }
 0x301   : > { %1926 = vst [vmem:[%s709_s11] sm:$0xff] %v1924_v18 }
 0x302   : > { %2604 = shalt.err (!%p2601_p10)
}
 0x303   : > { %2208 = dma.vmem_to_hbm [thread:$0]  (%p2871_p4), %s1941_s29, 128, %s1943_s20, %s1928_s6  }
 0x304 PF: > { %s1954_s12 = sand.u32 1, %s2651_s18   ;;  %p4335_p13 = scmp.ge.s32.totalorder %s2663_s21, 2 }
 0x305   : > { %s1955_s30 = scalar_lea.sflag [#allocation4], %s1954_s12 }
 0x306   : > { %p2237_p11 = pnand %p4335_p13, %p2875_p6 }
 0x308   : > { %p2238_p0 = pneg %p2237_p11 }
 0x30a   : > { %2646 = dma.done.wait (%p2238_p0), %s1955_s30, 128  }
 0x30b   : > { %2648 = vsyncadd (%p2238_p0), %s1955_s30, 4294967168  ;;  %s4336_s21 = sld [smem:[#allocation25_spill]]  ;;  %s4339_s18 = smov %s2655_s19 }
 0x30c   : > { %s4337_s7 = sld [smem:[#allocation24_spill]] }
 0x30d   : > { %s4338_s20 = sld [smem:[#allocation26_spill]] }
 0x311   : > { %p34_p2 = scmp.ge.s32.totalorder %s4336_s21, 4  }
 0x312   : > { %s4340_s19 = smov %s4337_s7 }
 0x313   :  { %36 = sbr.rel (!%p34_p2) target bundleno = 21 (0x15), region = 174 }
 0x318   :  { %1961 = vsyncpa [#allocation3], 1 }
 0x319   :  { %1963 = vsyncpa [#allocation3 + $0x1], 1 }
 0x31a   :  { %1964 = vsyncpa [#allocation6], 1 }
 0x31b   :  { %1966 = vsyncpa [#allocation6 + $0x1], 1 }
 0x31c   :  { %1967 = vsyncpa [#allocation9], 1 }
 0x31d   :  { %1968 = vsyncpa [#allocation12], 1 }
 0x31e   :  { %1969 = vsyncpa [#allocation15], 1 }
 0x31f   :  { %1970 = vsyncpa [#allocation4], 1 }
 0x320   :  { %1972 = vsyncpa [#allocation4 + $0x1], 1 }

// kernel: tpu_custom_call.1
= control target key start
LH: loop header
LB: loop body
LE: loop exit
PB: predicated region body
PF: predicated region fallthrough
CT: control target
= control target key end

     0   :  { %s4160_s0 = inlined_call_operand.hbm [shape: bf16[16,16,128], index: 0, kind: input, shape index: {}]   ;;  %s4161_s1 = inlined_call_operand.vmem [shape: s32[16,1], index: 1, kind: input, shape index: {}]   ;;  %s4162_s2 = inlined_call_operand.vmem [shape: s32[16,1], index: 2, kind: input, shape index: {}]   ;;  %s4163_s3 = inlined_call_operand.hbm [shape: bf16[16,16,128], index: 3, kind: input, shape index: {}]   ;;  %s4164_s4 = inlined_call_operand.vmem [shape: s32[16,1], index: 4, kind: input, shape index: {}]   ;;  %s4165_s5 = inlined_call_operand.vmem [shape: s32[16,1], index: 5, kind: input, shape index: {}]   ;;  %s4166_s6 = inlined_call_operand.hbm [shape: f32[128,128], index: 6, kind: input, shape index: {}]   ;;  %s4167_s7 = inlined_call_operand.hbm [shape: f32[128,128], index: 7, kind: input, shape index: {}]   ;;  %s4168_s8 = inlined_call_operand.hbm [shape: f32[128,128], index: 8, kind: input, shape index: {}]   ;;  %s4169_s9 = inlined_call_operand.hbm [shape: f32[128,128], index: 9, kind: input, shape index: {}]   ;;  %s4170_s10 = inlined_call_operand.vmem [shape: f32[1,128], index: 10, kind: input, shape index: {}]   ;;  %s4171_s11 = inlined_call_operand.hbm [shape: f32[128,128], index: 11, kind: input, shape index: {}]   ;;  %s4172_s12 = inlined_call_operand.vmem [shape: f32[1,128], index: 12, kind: input, shape index: {}]   ;;  %s4173_s13 = inlined_call_operand.hbm [shape: f32[128,128], index: 13, kind: input, shape index: {}]   ;;  %s4174_s14 = inlined_call_operand.vmem [shape: f32[1,128], index: 14, kind: input, shape index: {}]   ;;  %s4175_s15 = inlined_call_operand.hbm [shape: f32[16,128], index: 15, kind: output, shape index: {}]  }
   0x1   :  { %4183 = sst [smem:[#allocation28_spill]] %s4160_s0 }
   0x2   :  { %4184 = sst [smem:[#allocation29_spill]] %s4166_s6 }
   0x3   :  { %4185 = sst [smem:[#allocation30_spill]] %s4167_s7 }
   0x4   :  { %4186 = sst [smem:[#allocation31_spill]] %s4168_s8 }
   0x5   :  { %4187 = sst [smem:[#allocation32_spill]] %s4169_s9 }
   0x6   :  { %4188 = sst [smem:[#allocation33_spill]] %s4171_s11 }
   0x7   :  { %4189 = sst [smem:[#allocation34_spill]] %s4172_s12 }
   0x8   :  { %4190 = sst [smem:[#allocation35_spill]] %s4173_s13 }
   0x9   :  { %4191 = sst [smem:[#allocation36_spill]] %s4174_s14 }
   0xa   :  { %4192 = sst [smem:[#allocation37_spill]] %s4175_s15 }
   0xb   :  { %20 = vsyncpa [#allocation3], 0 }
   0xc   :  { %22 = vsyncpa [#allocation3 + $0x1], 0 }
   0xd   :  { %23 = vsyncpa [#allocation6], 0 }
   0xe   :  { %25 = vsyncpa [#allocation6 + $0x1], 0 }
   0xf   :  { %26 = vsyncpa [#allocation9], 0 }
  0x10   :  { %27 = vsyncpa [#allocation12], 0 }
  0x11   :  { %28 = vsyncpa [#allocation15], 0 }
  0x12   :  { %29 = vsyncpa [#allocation4], 0 }
  0x13   :  { %31 = vsyncpa [#allocation4 + $0x1], 0  ;;  %s2756_s18 = smov 0   ;;  %s2758_s19 = smov 0  }
  0x14   :  { %s2760_s20 = smov 0   ;;  %s2762_s21 = smov 0  }
  0x15 LB: > { %4193 = sst [smem:[#allocation24_spill]] %s2659_s20  ;;  %s2780_s25 = sadd.s32 4294967295, %s2663_s21   ;;  %s2663_s21 = sphi %s2762_s21, %s4336_s21   ;;  %s2659_s20 = sphi %s2760_s20, %s4338_s20   ;;  %s2655_s19 = sphi %s2758_s19, %s4340_s19   ;;  %s2651_s18 = sphi %s2756_s18, %s4339_s18  }
  0x16   : > { %s4194_s6 = sld [smem:[#allocation29_spill]]  ;;  %p2142_p0 = scmp.ge.s32.totalorder %s2663_s21, 1 }
  0x17   : > { %p58_p1 = scmp.eq.s32.totalorder %s2780_s25, 0  ;;  %p413_p2 = scmp.lt.s32.totalorder %s2663_s21, 3 }
  0x18   : > { %s2665_s27 = smov [#allocation7]   ;;  %s4196_s7 = sld [smem:[#allocation30_spill]] }
  0x19   : > { %p2785_p3 = pnand %p2142_p0, %p413_p2  ;;  %s426_s28 = sshll.u32 %s2665_s27, 4  ;;  %s427_s28 = int_to_ptr.vmem [resolvable:$true] %s426_s28 }
  0x1a   : > { %s4198_s9 = sld [smem:[#allocation32_spill]]  ;;  %s2667_s15 = smov 128  }
  0x1b   : > { %p2210_p4 = pneg %p2785_p3  ;;  %s2668_s12 = smov 8  }
  0x1c   : > { %s424_s24 = sshll.u32 %s4194_s6, 4  ;;  %s2666_s6 = smov [#allocation8]   ;;  %s425_s24 = int_to_ptr.hbm [resolvable:$true] %s424_s24 }
  0x1d   : > { %p2797_p6 = pnand %p2210_p4, %p58_p1  ;;  %s440_s14 = sshll.u32 %s2666_s6, 4  ;;  %s441_s14 = int_to_ptr.vmem [resolvable:$true] %s440_s14 }
  0x1e   : > { %s438_s16 = sshll.u32 %s4196_s7, 4  ;;  %s4199_s8 = sld [smem:[#allocation31_spill]]  ;;  %s439_s16 = int_to_ptr.hbm [resolvable:$true] %s438_s16 }
  0x1f   : > { %2213 = dma.hbm_to_vmem [thread:$0]  (!%p2797_p6), %s425_s24, 2048, %s427_s28, [#allocation6], %s2667_s15, %s2667_s15, %s2668_s12  }
  0x20   : > { %s466_s27 = sshll.u32 %s4198_s9, 4  ;;  %s2669_s6 = smov [#allocation11]   ;;  %s467_s27 = int_to_ptr.hbm [resolvable:$true] %s466_s27 }
  0x21   : > { %2216 = dma.hbm_to_vmem [thread:$0]  (!%p2797_p6), %s439_s16, 2048, %s441_s14, [#allocation9], %s2667_s15, %s2667_s15, %s2668_s12  }
  0x22   : > { %s468_s23 = sshll.u32 %s2669_s6, 4  ;;  %s2670_s24 = smov [#allocation10]   ;;  %s469_s23 = int_to_ptr.vmem [resolvable:$true] %s468_s23 }
  0x23   : > { %2222 = dma.hbm_to_vmem [thread:$0]  (!%p2797_p6), %s467_s27, 2048, %s469_s23, [#allocation12], %s2667_s15, %s2667_s15, %s2668_s12  }
  0x24   : > { %s452_s22 = sshll.u32 %s4199_s8, 4  ;;  %s454_s28 = sshll.u32 %s2670_s24, 4  ;;  %s453_s22 = int_to_ptr.hbm [resolvable:$true] %s452_s22  ;;  %s455_s28 = int_to_ptr.vmem [resolvable:$true] %s454_s28 }
  0x25   : > { %s4200_s11 = sld [smem:[#allocation33_spill]]  ;;  %s2671_s6 = smov [#allocation13]  }
  0x26   : > { %2219 = dma.hbm_to_vmem [thread:$0]  (!%p2797_p6), %s453_s22, 2048, %s455_s28, [#allocation9], %s2667_s15, %s2667_s15, %s2668_s12  }
  0x27   : > { %s4201_s13 = sld [smem:[#allocation35_spill]]  ;;  %s485_s7 = sshll.u32 %s2671_s6, 4  ;;  %s486_s7 = int_to_ptr.vmem [resolvable:$true] %s485_s7 }
  0x28   : > { %s2672_s22 = smov [#allocation14]   ;;  %s2141_s24 = sadd.s32 4294967294, %s2663_s21  }
  0x29   : > { %s502_s23 = sshll.u32 %s2672_s22, 4  ;;  %s2845_s28 = sadd.s32 1, %s2663_s21   ;;  %s503_s23 = int_to_ptr.vmem [resolvable:$true] %s502_s23 }
  0x2a   : > { %4202 = sst [smem:[#allocation25_spill]] %s2845_s28  ;;  %s41_s14 = ssub.s32 %s2663_s21, %s2845_s28 }
  0x2b   : > { %s483_s16 = sshll.u32 %s4200_s11, 4  ;;  %s44_s29 = sadd.s32 1, %s2659_s20  ;;  %s484_s16 = int_to_ptr.hbm [resolvable:$true] %s483_s16 }
  0x2c   : > { %2225 = dma.hbm_to_vmem [thread:$0]  (!%p2797_p6), %s484_s16, 2048, %s486_s7, [#allocation12], %s2667_s15, %s2667_s15, %s2668_s12  }
  0x2d   : > { %s500_s30 = sshll.u32 %s4201_s13, 4  ;;  %p42_p7 = scmp.eq.s32.totalorder %s41_s14, 0  ;;  %s501_s30 = int_to_ptr.hbm [resolvable:$true] %s500_s30 }
  0x2e   : > { %2228 = dma.hbm_to_vmem [thread:$0]  (!%p2797_p6), %s501_s30, 2048, %s503_s23, [#allocation15], %s2667_s15, %s2667_s15, %s2668_s12  }
  0x2f   : > { %p51_p8 = scmp.ne.s32.totalorder %s2659_s20, %s2655_s19  ;;  %p52_p9 = scmp.eq.s32.totalorder %s2663_s21, 0 }
  0x30   : > { %p57_p10 = scmp.ne.s32.totalorder %s2655_s19, %s2651_s18  ;;  %p400_p13 = scmp.eq.s32.totalorder %s2780_s25, 1 }
  0x31   : > { %s2856_s16 = scalar_select %p42_p7, %s2659_s20, %s44_s29  }
  0x32   : > { %p2858_p11 = por %p52_p9, %p51_p8  ;;  %p2864_p12 = por %p58_p1, %p57_p10 }
  0x33   : > { %4203 = sst [smem:[#allocation26_spill]] %s2856_s16  ;;  %p406_p0 = scmp.eq.s32.totalorder %s2141_s24, 1 }
  0x34   : > { %p2246_p2 = scmp.lt.s32.totalorder %s2663_s21, 2  ;;  %s519_s15 = sand.u32 1, %s2659_s20  }
  0x35   : > { %p2871_p4 = por %p400_p13, %p51_p8  ;;  %p2875_p6 = por %p406_p0, %p57_p10 }
  0x36   : > { %s2879_s6 = sshll.u32 %s519_s15, 6  ;;  %s4177_s7 = sshll.u32 %s2663_s21, 6 }
  0x37   : > { %s4207_s30 = scalar_select %p2875_p6, 1, 0 }
  0x38   : > { %s4209_s0 = sld [smem:[#allocation28_spill]]  ;;  %s523_s24 = scalar_lea.vmem [#allocation2], %s2879_s6 }
  0x39   : > { %4208 = sst [smem:[#allocation27_spill]] %s4207_s30  ;;  %s532_s29 = sshll.u32 %s523_s24, 4  ;;  %s533_s29 = int_to_ptr.vmem [resolvable:$true] %s532_s29 }
  0x3a   : > { %p2890_p7 = pnand %p2246_p2, %p2858_p11  ;;  %s520_s11 = scalar_lea.sflag [#allocation3], %s519_s15 }
  0x3c   : > { %p2521_p9 = pneg %p2890_p7 }
  0x3e   : > { %s529_s14 = scalar_lea.hbm %s4209_s0, %s4177_s7  ;;  %s2524_s17 = scalar_lea.hbm %s4209_s0, 128 }
  0x3f   : > { %s530_s8 = sshll.u32 %s529_s14, 4  ;;  %s531_s8 = int_to_ptr.hbm [resolvable:$true] %s530_s8 }
  0x40   : > { %s2517_s13 = sshra.s32 %s531_s8, 4  ;;  %s2518_s13 = int_to_ptr.hbm [resolvable:$true] %s2517_s13 }
  0x41   : > { %s2519_s16 = scalar_lea.hbm %s2518_s13, 64  ;;  %p2525_p11 = scmp.lt.s32.totalorder %s2518_s13, %s4209_s0 }
  0x42   : > { %p2520_p8 = scmp.ne.s32.totalorder %s2518_s13, %s2519_s16  ;;  %p2526_p0 = scmp.lt.s32.totalorder %s2524_s17, %s2519_s16 }
  0x44   : > { %p2522_p10 = pnand %p2521_p9, %p2520_p8  ;;  %p2527_p2 = por %p2526_p0, %p2525_p11 }
  0x46   : > { %p2523_p13 = pneg %p2522_p10 }
  0x48   : > { %p2528_p5 = pnand %p2527_p2, %p2523_p13 }
  0x4a   : > { %2531 = shalt.err (!%p2528_p5)
}
  0x4b   : > { %s2673_s15 = smov 64   ;;  %s2674_s7 = smov 4  }
  0x4c   : > { %2232 = dma.hbm_to_vmem [thread:$0]  (!%p2890_p7), %s531_s8, 1024, %s533_s29, %s520_s11, %s2673_s15, %s2673_s15, %s2674_s7  }
  0x4d   : > { %s4211_s20 = sshll.u32 %s2663_s21, 6  ;;  %s560_s14 = scalar_lea.vmem [#allocation5], %s2879_s6 }
  0x4e   : > { %s566_s28 = scalar_lea.hbm %s4163_s3, %s4211_s20  ;;  %s569_s13 = sshll.u32 %s560_s14, 4  ;;  %s570_s13 = int_to_ptr.vmem [resolvable:$true] %s569_s13 }
  0x4f   : > { %s567_s16 = sshll.u32 %s566_s28, 4  ;;  %s556_s17 = sand.u32 1, %s2663_s21   ;;  %s568_s16 = int_to_ptr.hbm [resolvable:$true] %s567_s16 }
  0x50   : > { %s557_s24 = scalar_lea.sflag [#allocation6], %s556_s17  ;;  %s2547_s0 = sshra.s32 %s568_s16, 4  ;;  %s2548_s0 = int_to_ptr.hbm [resolvable:$true] %s2547_s0 }
  0x51   : > { %s2549_s30 = scalar_lea.hbm %s2548_s0, 64  ;;  %s2554_s29 = scalar_lea.hbm %s4163_s3, 128 }
  0x52   : > { %p2550_p5 = scmp.ne.s32.totalorder %s2548_s0, %s2549_s30  ;;  %p2555_p13 = scmp.lt.s32.totalorder %s2548_s0, %s4163_s3 }
  0x53   : > { %p2556_p11 = scmp.lt.s32.totalorder %s2554_s29, %s2549_s30 }
  0x54   : > { %p2552_p8 = pnand %p2550_p5, %p2521_p9 }
  0x55   : > { %p2557_p0 = por %p2556_p11, %p2555_p13 }
  0x56   : > { %p2553_p10 = pneg %p2552_p8 }
  0x58   : > { %p2558_p2 = pnand %p2557_p0, %p2553_p10 }
  0x5a   : > { %2561 = shalt.err (!%p2558_p2)
}
  0x5b   : > { %2235 = dma.hbm_to_vmem [thread:$0]  (!%p2890_p7), %s568_s16, 1024, %s570_s13, %s557_s24, %s2673_s15, %s2673_s15, %s2674_s7  }
  0x5c   : > { %595 = sbr.rel (%p2785_p3) target bundleno = 772 (0x304), region = 80  ;;  %s2928_s28 = sand.u32 (!%p2785_p3), 1, %s2655_s19  }
  0x5d   : > { %s2159_s22 = sshll.u32 (!%p2785_p3), %s2928_s28, 6  ;;  %s598_s23 = scalar_lea.sflag (!%p2785_p3), [#allocation3], %s2928_s28 }
  0x5e   : > { %s2932_s14 = scalar_lea.vmem (!%p2785_p3), [#allocation2], %s2159_s22 }
  0x61   : > { %2622 = dma.done.wait (%p2864_p12), %s598_s23, 1024  }
  0x62   : > { %2624 = vsyncadd (%p2864_p12), %s598_s23, 4294966272  ;;  %s607_s0 = sand.u32 1, %s2780_s25   ;;  %s2939_s26 = scalar_lea.vmem [#allocation5], %s2159_s22 }
  0x63   : > { %s608_s9 = scalar_lea.sflag [#allocation6], %s607_s0 }
  0x64   : > { %2626 = dma.done.wait (%p2864_p12), %s608_s9, 1024  }
  0x65   : > { %2628 = vsyncadd (%p2864_p12), %s608_s9, 4294966272 }
  0x66   : > { %2630 = dma.done.wait (%p58_p1), [#allocation6], 2048  }
  0x67   : > { %2632 = vsyncadd (%p58_p1), [#allocation6], 4294965248 }
  0x68   : > { %2634 = dma.done.wait (%p58_p1), [#allocation9], 4096  }
  0x69   : > { %2636 = vsyncadd (%p58_p1), [#allocation9], 4294963200 }
  0x6a   : > { %2638 = dma.done.wait (%p58_p1), [#allocation12], 4096  }
  0x6b   : > { %2640 = vsyncadd (%p58_p1), [#allocation12], 4294963200 }
  0x6c   : > { %2642 = dma.done.wait (%p58_p1), [#allocation15], 2048  }
  0x6d   : > { %2644 = vsyncadd (%p58_p1), [#allocation15], 4294965248  ;;  %p711_p3 = scmp.lt.s32.totalorder %s2780_s25, 1  ;;  %v769_v0 = vlaneseq  ;;  %v2675_v1 = vmov 0   ;;  %s4333_s8 = sld [smem:[#allocation36_spill]] }
  0x6e   : > { %2297 = vset.pattern.permute.xlu1 %v2675_v1  ;;  %2299 = vset.pattern.permute.xlu2 %v2675_v1  ;;  %s1928_s6 = scalar_lea.sflag [#allocation4], %s2928_s28 }
  0x6f   : > { %2298 = vset.pattern.permute.xlu0 %v2675_v1  ;;  %s712_s12 = scalar_select %p711_p3, %s2780_s25, 1  ;;  %v2966_v2 = vshrl.u32 %v769_v0, 7 }
  0x71   : > { %s2168_s30 = sshll.u32 %s712_s12, 3  ;;  %v2985_v5 = vadd.s32 8, %v2966_v2  ;;  %s2167_s12 = sshll.u32 %s2928_s28, 3 }
  0x72   : > { %s723_s13 = scalar_lea.vmem %s4164_s4, %s2168_s30  ;;  %s727_s24 = scalar_lea.vmem %s4165_s5, %s2168_s30 }
  0x73   : > { %s714_s29 = scalar_lea.vmem %s4161_s1, %s2168_s30  ;;  %s718_s22 = scalar_lea.vmem %s4162_s2, %s2168_s30  ;;  %v2980_v3 = vld [vmem:[%s723_s13] sm:$0xff] }
  0x74   : > { %v2982_v4 = vld [vmem:[%s727_s24] sm:$0xff]  ;;  %v1189_v8 = vrot.slane %v2980_v3, 2  ;;  %v1188_v10 = vrot.slane %v2980_v3, 1  ;;  %v1203_v26 = vperm.slane %v2980_v3, 0  ;;  %v1190_v31 = vrot.slane %v2980_v3, 3  ;;  %s2173_s30 = sshll.u32 %s2780_s25, 3 }
  0x75   : > { %v2987_v6 = vld [vmem:[%s714_s29] sm:$0xff]  ;;  %v1451_v7 = vsub.s32 %v2982_v4, %v2980_v3  ;;  %v1197_v9 = vrot.slane %v2982_v4, 2  ;;  %v1196_v12 = vrot.slane %v2982_v4, 1  ;;  %v1227_v27 = vperm.slane %v2982_v4, 0  ;;  %s4332_s13 = sld [smem:[#allocation37_spill]]  ;;  %s709_s11 = scalar_lea.vmem [#allocation16], %s2167_s12 }
  0x76   : > { %v2994_v11 = vld [vmem:[%s718_s22] sm:$0xff]  ;;  %v754_v13 = vrot.slane %v2987_v6, 1  ;;  %v1205_v15 = vperm.slane %v1189_v8, 0  ;;  %v1204_v17 = vperm.slane %v1188_v10, 0  ;;  %v1198_v32 = vrot.slane %v2982_v4, 3  ;;  %s1940_s29 = sshll.u32 %s709_s11, 4  ;;  %s1941_s29 = int_to_ptr.vmem [resolvable:$true] %s1940_s29 }
  0x77   : > { %v762_v14 = vrot.slane %v2994_v11, 1  ;;  %vm1452_vm0 = vcmp.gt.s32.totalorder %v1451_v7, 1  ;;  %v1229_v16 = vperm.slane %v1197_v9, 0  ;;  %v1228_v19 = vperm.slane %v1196_v12, 0  ;;  %v731_v9 = vld [vmem:[%s2932_s14 + $0x8] sm:$0xf] }
  0x78   : > { %v1453_v18 = vsel %vm1452_vm0, %v1451_v7, 1  ;;  %v773_v20 = vperm.slane %v754_v13, 0  ;;  %vm1216_vm1 = vcmp.ge.s32.totalorder %v2985_v5, %v1205_v15  ;;  %vm1213_vm3 = vcmp.ge.s32.totalorder %v2966_v2, %v1204_v17 }
  0x79   : > { %v797_v21 = vperm.slane %v762_v14, 0  ;;  %v1454_v22 = vcvt.s32.f32 %v1453_v18  ;;  %vm1240_vm2 = vcmp.lt.s32.totalorder %v2985_v5, %v1229_v16  ;;  %vm1237_vm5 = vcmp.lt.s32.totalorder %v2966_v2, %v1228_v19 }
  0x7a   : > { %vm1256_vm4 = vmand %vm1216_vm1, %vm1240_vm2  ;;  %vm1215_vm6 = vcmp.ge.s32.totalorder %v2966_v2, %v1205_v15  ;;  %vm1239_vm7 = vcmp.lt.s32.totalorder %v2966_v2, %v1229_v16  ;;  %vm782_vm9 = vcmp.ge.s32.totalorder %v2966_v2, %v773_v20  ;;  %vm1214_vm11 = vcmp.ge.s32.totalorder %v2985_v5, %v1204_v17 }
  0x7b   : > { %1457 = vperm.xlu1 %2297, %v1454_v22   ;;  %v1272_v23 = vsel %vm1256_vm4, 1, %v2675_v1  ;;  %vm1253_vm8 = vmand %vm1213_vm3, %vm1237_vm5  ;;  %vm806_vm10 = vcmp.lt.s32.totalorder %v2966_v2, %v797_v21  ;;  %vm1238_vm12 = vcmp.lt.s32.totalorder %v2985_v5, %v1228_v19  ;;  %v1020_v25 = vsub.s32 %v2994_v11, %v2987_v6  ;;  %s1938_s16 = scalar_lea.hbm %s4332_s13, %s2173_s30  ;;  %s2597_s0 = scalar_lea.hbm %s4332_s13, 16 }
  0x7c   : > { %1299 = vperm.xlu2 %2299, %v1272_v23   ;;  %v1269_v24 = vsel %vm1253_vm8, 1, %v2675_v1  ;;  %vm1255_vm13 = vmand %vm1215_vm6, %vm1239_vm7  ;;  %vm783_vm1 = vcmp.ge.s32.totalorder %v2985_v5, %v773_v20  ;;  %vm807_vm2 = vcmp.lt.s32.totalorder %v2985_v5, %v797_v21  ;;  %vm1211_vm3 = vcmp.ge.s32.totalorder %v2966_v2, %v1203_v26  ;;  %s1942_s20 = sshll.u32 %s1938_s16, 4  ;;  %s1943_s20 = int_to_ptr.hbm [resolvable:$true] %s1942_s20 }
  0x7d   : > { %1290 = vperm.xlu0 %2298, %v1269_v24   ;;  %vm822_vm14 = vmand %vm782_vm9, %vm806_vm10  ;;  %v1271_v28 = vsel %vm1255_vm13, 1, %v2675_v1  ;;  %vm1021_vm0 = vcmp.gt.s32.totalorder %v1020_v25, 1  ;;  %vm1235_vm4 = vcmp.lt.s32.totalorder %v2966_v2, %v1227_v27  ;;  %v1206_v34 = vperm.slane %v1190_v31, 0  ;;  %s2591_s22 = sshra.s32 %s1943_s20, 4  ;;  %s2592_s22 = int_to_ptr.hbm [resolvable:$true] %s2591_s22 }
  0x7e   : > { %vm1254_vm15 = vmand %vm1214_vm11, %vm1238_vm12  ;;  %v838_v29 = vsel %vm822_vm14, 1, %v2675_v1  ;;  %v1022_v33 = vsel %vm1021_vm0, %v1020_v25, 1  ;;  %v1230_v35 = vperm.slane %v1198_v32, 0  ;;  %v755_v39 = vrot.slane %v2987_v6, 2  ;;  %s2593_s25 = scalar_lea.hbm %s2592_s22, 8  ;;  %p2598_p9 = scmp.lt.s32.totalorder %s2592_s22, %s4332_s13 }
  0x7f   : > { %v1270_v30 = vsel %vm1254_vm15, 1, %v2675_v1  ;;  %vm823_vm5 = vmand %vm783_vm1, %vm807_vm2  ;;  %v1023_v36 = vcvt.s32.f32 %v1022_v33  ;;  %vm1217_vm7 = vcmp.ge.s32.totalorder %v2966_v2, %v1206_v34  ;;  %v763_v40 = vrot.slane %v2994_v11, 2  ;;  %p2594_p1 = scmp.ne.s32.totalorder %s2592_s22, %s2593_s25  ;;  %p2599_p5 = scmp.lt.s32.totalorder %s2597_s0, %s2593_s25 }
  0x80   : > { %vm1251_vm6 = vmand %vm1211_vm3, %vm1235_vm4  ;;  %v839_v37 = vsel %vm823_vm5, 1, %v2675_v1  ;;  %vm1241_vm8 = vcmp.lt.s32.totalorder %v2966_v2, %v1230_v35  ;;  %vm1218_vm9 = vcmp.ge.s32.totalorder %v2985_v5, %v1206_v34  ;;  %vm1242_vm10 = vcmp.lt.s32.totalorder %v2985_v5, %v1230_v35 }
  0x81   : > { %v1267_v38 = vsel %vm1251_vm6, 1, %v2675_v1  ;;  %v1191_v41 = vrot.slane %v2980_v3, 4  ;;  %v1199_v42 = vrot.slane %v2982_v4, 4  ;;  %vm1212_vm11 = vcmp.ge.s32.totalorder %v2985_v5, %v1203_v26  ;;  %vm1257_vm13 = vmand %vm1217_vm7, %vm1241_vm8  ;;  %p2595_p12 = pnand %p2594_p1, %p2871_p4  ;;  %p2600_p8 = por %p2599_p5, %p2598_p9 }
  0x82   : > { %vm1236_vm12 = vcmp.lt.s32.totalorder %v2985_v5, %v1227_v27  ;;  %vm1258_vm14 = vmand %vm1218_vm9, %vm1242_vm10  ;;  %v774_v43 = vperm.slane %v755_v39, 0  ;;  %v798_v44 = vperm.slane %v763_v40, 0  ;;  %v1273_v47 = vsel %vm1257_vm13, 1, %v2675_v1 }
  0x83   : > { %1296 = vperm.xlu1 %2297, %v1271_v28   ;;  %vm1252_vm15 = vmand %vm1212_vm11, %vm1236_vm12  ;;  %v1207_v45 = vperm.slane %v1191_v41, 0  ;;  %v1231_v46 = vperm.slane %v1199_v42, 0  ;;  %v1274_v48 = vsel %vm1258_vm14, 1, %v2675_v1  ;;  %v772_v50 = vperm.slane %v2987_v6, 0  ;;  %p2596_p7 = pneg %p2595_p12 }
  0x84   : > { %859 = vperm.xlu2 %2299, %v838_v29   ;;  %v1268_v49 = vsel %vm1252_vm15, 1, %v2675_v1  ;;  %vm785_vm0 = vcmp.ge.s32.totalorder %v2985_v5, %v774_v43  ;;  %vm809_vm1 = vcmp.lt.s32.totalorder %v2985_v5, %v798_v44  ;;  %vm784_vm4 = vcmp.ge.s32.totalorder %v2966_v2, %v774_v43 }
  0x85   : > { %1293 = vperm.xlu0 %2298, %v1270_v30   ;;  %vm1219_vm2 = vcmp.ge.s32.totalorder %v2966_v2, %v1207_v45  ;;  %vm1243_vm3 = vcmp.lt.s32.totalorder %v2966_v2, %v1231_v46  ;;  %vm808_vm5 = vcmp.lt.s32.totalorder %v2966_v2, %v798_v44  ;;  %vm825_vm6 = vmand %vm785_vm0, %vm809_vm1  ;;  %v796_v51 = vperm.slane %v2994_v11, 0  ;;  %p2601_p10 = pnand %p2600_p8, %p2596_p7 }
  0x86   : > { %v756_v52 = vrot.slane %v2987_v6, 3  ;;  %v764_v53 = vrot.slane %v2994_v11, 3  ;;  %vm1259_vm7 = vmand %vm1219_vm2, %vm1243_vm3  ;;  %v841_v54 = vsel %vm825_vm6, 1, %v2675_v1  ;;  %vm3051_vm9 = vcmp.ge.s32.totalorder %v2966_v2, %v772_v50 }
  0x87   : > { %vm824_vm8 = vmand %vm784_vm4, %vm808_vm5  ;;  %v1192_v56 = vrot.slane %v2980_v3, 5  ;;  %v1200_v57 = vrot.slane %v2982_v4, 5  ;;  %v1275_v58 = vsel %vm1259_vm7, 1, %v2675_v1  ;;  %vm3059_vm10 = vcmp.lt.s32.totalorder %v2966_v2, %v796_v51 }
  0x88   : > { %v775_v60 = vperm.slane %v756_v52, 0  ;;  %v799_v61 = vperm.slane %v764_v53, 0  ;;  %v840_v62 = vsel %vm824_vm8, 1, %v2675_v1  ;;  %vm1220_vm11 = vcmp.ge.s32.totalorder %v2985_v5, %v1207_v45  ;;  %vm820_vm15 = vmand %vm3051_vm9, %vm3059_vm10 }
  0x89   : > { %vm1244_vm12 = vcmp.lt.s32.totalorder %v2985_v5, %v1231_v46  ;;  %vm3067_vm13 = vcmp.ge.s32.totalorder %v2985_v5, %v772_v50  ;;  %vm3072_vm14 = vcmp.lt.s32.totalorder %v2985_v5, %v796_v51  ;;  %v3080_v7 = vperm.slane %v1192_v56, 0 }
  0x8a   : > { %v3082_v8 = vperm.slane %v1200_v57, 0  ;;  %vm3084_vm0 = vmand %vm1220_vm11, %vm1244_vm12  ;;  %vm787_vm1 = vcmp.ge.s32.totalorder %v2985_v5, %v775_v60  ;;  %vm811_vm2 = vcmp.lt.s32.totalorder %v2985_v5, %v799_v61  ;;  %v1194_v10 = vrot.slane %v2980_v3, 7 }
  0x8b   : > { %1026 = vperm.xlu1 %2297, %v1023_v36   ;;  %v1202_v12 = vrot.slane %v2982_v4, 7  ;;  %vm821_vm3 = vmand %vm3067_vm13, %vm3072_vm14  ;;  %vm786_vm4 = vcmp.ge.s32.totalorder %v2966_v2, %v775_v60  ;;  %vm810_vm5 = vcmp.lt.s32.totalorder %v2966_v2, %v799_v61  ;;  %v757_v13 = vrot.slane %v2987_v6, 4  ;;  %v3227_v61 = vld [vmem:[%s2939_s26 + $0x8] sm:$0xf] }
  0x8c   : > { %1284 = vperm.xlu2 %2299, %v1267_v38   ;;  %v765_v14 = vrot.slane %v2994_v11, 4  ;;  %v1210_v15 = vperm.slane %v1194_v10, 0  ;;  %v836_v17 = vsel %vm820_vm15, 1, %v2675_v1  ;;  %vm3106_vm6 = vmand %vm787_vm1, %vm811_vm2  ;;  %vm1221_vm7 = vcmp.ge.s32.totalorder %v2966_v2, %v3080_v7 }
  0x8d   : > { %862 = vperm.xlu0 %2298, %v839_v37   ;;  %v1234_v16 = vperm.slane %v1202_v12, 0  ;;  %vm1245_vm8 = vcmp.lt.s32.totalorder %v2966_v2, %v3082_v8  ;;  %v1276_v19 = vsel %vm3084_vm0, 1, %v2675_v1  ;;  %v837_v20 = vsel %vm821_vm3, 1, %v2675_v1  ;;  %vm3118_vm11 = vmand %vm786_vm4, %vm810_vm5  ;;  %v1163_v12 = vld [vmem:[%s2939_s26] sm:$0xf] }
  0x8e   : > { %vm1225_vm9 = vcmp.ge.s32.totalorder %v2966_v2, %v1210_v15  ;;  %v776_v22 = vperm.slane %v757_v13, 0  ;;  %v800_v23 = vperm.slane %v765_v14, 0  ;;  %vm1226_vm13 = vcmp.ge.s32.totalorder %v2985_v5, %v1210_v15  ;;  %vm1261_vm15 = vmand %vm1221_vm7, %vm1245_vm8  ;;  %v1167_v13 = vld [vmem:[%s2939_s26 + $0x10] sm:$0xf]  ;;  %v1166_v37 = vld [vmem:[%s2939_s26 + $0xc] sm:$0xf] }
  0x8f   : > { %vm1249_vm10 = vcmp.lt.s32.totalorder %v2966_v2, %v1234_v16  ;;  %vm1250_vm14 = vcmp.lt.s32.totalorder %v2985_v5, %v1234_v16  ;;  %v843_v26 = vsel %vm3106_vm6, 1, %v2675_v1  ;;  %v759_v27 = vrot.slane %v2987_v6, 6 }
  0x90   : > { %vm3124_vm12 = vmand %vm1225_vm9, %vm1249_vm10  ;;  %v767_v28 = vrot.slane %v2994_v11, 6  ;;  %vm788_vm1 = vcmp.ge.s32.totalorder %v2966_v2, %v776_v22  ;;  %vm812_vm2 = vcmp.lt.s32.totalorder %v2966_v2, %v800_v23  ;;  %v760_v29 = vrot.slane %v2987_v6, 7 }
  0x91   : > { %vm3130_vm0 = vmand %vm1226_vm13, %vm1250_vm14  ;;  %v768_v30 = vrot.slane %v2994_v11, 7  ;;  %v842_v31 = vsel %vm3118_vm11, 1, %v2675_v1  ;;  %v1277_v32 = vsel %vm1261_vm15, 1, %v2675_v1  ;;  %v778_v33 = vperm.slane %v759_v27, 0 }
  0x92   : > { %v802_v34 = vperm.slane %v767_v28, 0  ;;  %vm789_vm3 = vcmp.ge.s32.totalorder %v2985_v5, %v776_v22  ;;  %vm813_vm4 = vcmp.lt.s32.totalorder %v2985_v5, %v800_v23  ;;  %v779_v35 = vperm.slane %v760_v29, 0  ;;  %vm3149_vm5 = vmand %vm788_vm1, %vm812_vm2 }
  0x93   : > { %1302 = vperm.xlu1 %2297, %v1273_v47   ;;  %v803_v36 = vperm.slane %v768_v30, 0  ;;  %v1193_v38 = vrot.slane %v2980_v3, 6  ;;  %v1201_v39 = vrot.slane %v2982_v4, 6  ;;  %vm793_vm6 = vcmp.ge.s32.totalorder %v2985_v5, %v778_v33 }
  0x94   : > { %1305 = vperm.xlu2 %2299, %v1274_v48   ;;  %vm817_vm7 = vcmp.lt.s32.totalorder %v2985_v5, %v802_v34  ;;  %vm792_vm11 = vcmp.ge.s32.totalorder %v2966_v2, %v778_v33  ;;  %vm816_vm9 = vcmp.lt.s32.totalorder %v2966_v2, %v802_v34  ;;  %vm794_vm10 = vcmp.ge.s32.totalorder %v2966_v2, %v779_v35  ;;  %v1170_v33 = vld [vmem:[%s2939_s26 + $0x1c] sm:$0xf] }
  0x95   : > { %1287 = vperm.xlu0 %2298, %v1268_v49   ;;  %vm3157_vm8 = vmand %vm793_vm6, %vm817_vm7  ;;  %vm818_vm13 = vcmp.lt.s32.totalorder %v2966_v2, %v803_v36  ;;  %v758_v3 = vrot.slane %v2987_v6, 5  ;;  %v766_v4 = vrot.slane %v2994_v11, 5  ;;  %v4234_v41 = vmov 0 }
  0x96   : > { %vm3167_vm14 = vmand %vm792_vm11, %vm816_vm9  ;;  %vm1222_vm15 = vcmp.ge.s32.totalorder %v2985_v5, %v3080_v7  ;;  %vm1246_vm1 = vcmp.lt.s32.totalorder %v2985_v5, %v3082_v8  ;;  %vm795_vm7 = vcmp.ge.s32.totalorder %v2985_v5, %v779_v35  ;;  %vm819_vm11 = vcmp.lt.s32.totalorder %v2985_v5, %v803_v36  ;;  %v1168_v8 = vld [vmem:[%s2939_s26 + $0x14] sm:$0xf] }
  0x97   : > { %v4235_v41 = vsel %vm3167_vm14, 4294967295, %v4234_v41  ;;  %vm3175_vm2 = vmand %vm794_vm10, %vm818_vm13  ;;  %v1209_v6 = vperm.slane %v1193_v38, 0  ;;  %v1233_v11 = vperm.slane %v1201_v39, 0  ;;  %v4238_v43 = vmov 0 }
  0x98   : > { %vm829_vm6 = vmand %vm789_vm3, %vm813_vm4  ;;  %v777_v44 = vperm.slane %v758_v3, 0  ;;  %v801_v45 = vperm.slane %v766_v4, 0  ;;  %v844_v46 = vsel %vm3149_vm5, 1, %v2675_v1  ;;  %v1282_v52 = vsel %vm3130_vm0, 1, %v2675_v1  ;;  %v3292_v4 = vld [vmem:[%s2939_s26 + $0x20] sm:$0xf] }
  0x99   : > { %vm3185_vm9 = vmand %vm795_vm7, %vm819_vm11  ;;  %v845_v47 = vsel %vm829_vm6, 1, %v2675_v1  ;;  %vm1224_vm3 = vcmp.ge.s32.totalorder %v2985_v5, %v1209_v6  ;;  %vm1248_vm4 = vcmp.lt.s32.totalorder %v2985_v5, %v1233_v11  ;;  %v746_v14 = vunpack.c.l.bf16 %v731_v9 }
  0x9a   : > { %v4239_v43 = vsel %vm3185_vm9, 4294967295, %v4238_v43  ;;  %vm1262_vm10 = vmand %vm1222_vm15, %vm1246_vm1  ;;  %vm790_vm13 = vcmp.ge.s32.totalorder %v2966_v2, %v777_v44  ;;  %vm814_vm7 = vcmp.lt.s32.totalorder %v2966_v2, %v801_v45  ;;  %vm1223_vm15 = vcmp.ge.s32.totalorder %v2966_v2, %v1209_v6 }
  0x9b   : > { %868 = vperm.xlu1 %2297, %v841_v54   ;;  %v1278_v48 = vsel %vm1262_vm10, 1, %v2675_v1  ;;  %vm1247_vm1 = vcmp.lt.s32.totalorder %v2966_v2, %v1233_v11  ;;  %vm1264_vm5 = vmand %vm1224_vm3, %vm1248_vm4  ;;  %vm791_vm10 = vcmp.ge.s32.totalorder %v2985_v5, %v777_v44  ;;  %vm815_vm9 = vcmp.lt.s32.totalorder %v2985_v5, %v801_v45 }
  0x9c   : > { %1308 = vperm.xlu2 %2299, %v1275_v58   ;;  %vm830_vm11 = vmand %vm790_vm13, %vm814_vm7  ;;  %v1280_v49 = vsel %vm1264_vm5, 1, %v2675_v1  ;;  %v1281_v2 = vsel %vm3124_vm12, 1, %v2675_v1  ;;  %v849_v5 = vsel %vm3157_vm8, 1, %v2675_v1  ;;  %v850_v54 = vsel %vm3175_vm2, 1, %v2675_v1 }
  0x9d   : > { %865 = vperm.xlu0 %2298, %v840_v62   ;;  %vm1263_vm6 = vmand %vm1223_vm15, %vm1247_vm1  ;;  %v846_v50 = vsel %vm830_vm11, 1, %v2675_v1  ;;  %vm4240_vm12 = vnez %v4235_v41  ;;  %vm4241_vm0 = vnez %v4239_v43  ;;  %v1180_v62 = vunpack.c.l.bf16 %v3227_v61 }
  0x9e   : > { %v1279_v51 = vsel %vm1263_vm6, 1, %v2675_v1  ;;  %vm831_vm14 = vmand %vm791_vm10, %vm815_vm9  ;;  %v848_v55 = vsel %vm4240_vm12, 1, %v2675_v1  ;;  %v851_v56 = vsel %vm4241_vm0, 1, %v2675_v1  ;;  %v1179_v15 = vunpack.c.l.bf16 %v1163_v12 }
  0x9f   : > { %v847_v53 = vsel %vm831_vm14, 1, %v2675_v1  ;;  %v1743_v16 = vrot.slane %v1180_v62, 7  ;;  %vm1635_vm7 = vcmask 1041409   ;;  %v3261_v24 = vrot.slane %v746_v14, 7 }
  0xa0   : > { %vm1638_vm11 = vcmask 1042434   ;;  %v1183_v11 = vunpack.c.l.bf16 %v3292_v4 }
  0xa2   : > { %v3324_v62 = vrot.slane %v1183_v11, 4 }
  0xa3   : > { %853 = vperm.xlu1 %2297, %v836_v17   ;;  %v1181_v17 = vunpack.c.l.bf16 %v1167_v13 }
  0xa4   : > { %856 = vperm.xlu2 %2299, %v837_v20  }
  0xa5   : > { %1311 = vperm.xlu0 %2298, %v1276_v19   ;;  %v1745_v27 = vrot.slane %v1181_v17, 6 }
  0xab   : > { %874 = vperm.xlu1 %2297, %v843_v26   ;;  %v1744_v26 = vsel %vm1635_vm7, %v1743_v16, %v1179_v15 }
  0xac   : > { %1314 = vperm.xlu2 %2299, %v1277_v32   ;;  %v3299_v6 = vsel %vm1638_vm11, %v1745_v27, %v1744_v26 }
  0xad   : > { %871 = vperm.xlu0 %2298, %v842_v31  }
  0xb3   : > { %877 = vperm.xlu1 %2297, %v844_v46  }
  0xb4   : > { %880 = vperm.xlu2 %2299, %v845_v47  }
  0xb5   : > { %1317 = vperm.xlu0 %2298, %v1278_v48  }
  0xbb   : > { %1323 = vperm.xlu1 %2297, %v1280_v49  }
  0xbc   : > { %883 = vperm.xlu2 %2299, %v846_v50  }
  0xbd   : > { %1320 = vperm.xlu0 %2298, %v1279_v51  }
  0xc3   : > { %1326 = vperm.xlu1 %2297, %v1281_v2  }
  0xc4   : > { %1329 = vperm.xlu2 %2299, %v1282_v52  }
  0xc5   : > { %886 = vperm.xlu0 %2298, %v847_v53  }
  0xcb   : > { %892 = vperm.xlu1 %2297, %v849_v5  }
  0xcc   : > { %895 = vperm.xlu2 %2299, %v850_v54  }
  0xcd   : > { %889 = vperm.xlu0 %2298, %v848_v55  }
  0xd5   : > { %898 = vperm.xlu0 %2298, %v851_v56  }
  0xd6   : > { %v1300_v57 = vpop.permute.xlu2 %1299 }
  0xd7   : > { %vm1336_vm8 = vcmp.eq.s32.totalorder %v1300_v57, 1 }
  0xd8   : > { %vm3239_vm2 = vmpackc.low %vm1336_vm8, %vm1336_vm8 }
  0xd9   : > { %v1368_v19 = vsel %vm3239_vm2, %v1168_v8, 0 }
  0xda   : > { %v1384_v29 = vunpack.c.l.bf16 %v1368_v19 }
  0xde   : > { %v860_v58 = vpop.permute.xlu2 %859 }
  0xdf   : > { %vm902_vm14 = vcmp.eq.s32.totalorder %v860_v58, 1 }
  0xe0   : > { %vm3246_vm3 = vmpackc.low %vm902_vm14, %vm902_vm14 }
  0xe1   : > { %v934_v30 = vsel %vm3246_vm3, %v731_v9, 0  ;;  %v1169_v9 = vld [vmem:[%s2939_s26 + $0x18] sm:$0xf] }
  0xe2   : > { %v3294_v41 = vunpack.c.l.bf16 %v934_v30  ;;  %v1182_v14 = vunpack.c.l.bf16 %v1169_v9 }
  0xe6   : > { %v1285_v59 = vpop.permute.xlu2 %1284 }
  0xe7   : > { %vm1331_vm9 = vcmp.eq.s32.totalorder %v1285_v59, 1 }
  0xe8   : > { %vm3252_vm13 = vmpackc.low %vm1331_vm9, %vm1331_vm9 }
  0xe9   : > { %v1363_v31 = vsel %vm3252_vm13, %v1163_v12, 0 }
  0xea   : > { %v3296_v42 = vunpack.c.l.bf16 %v1363_v31 }
  0xed   : > { %v3224_v60 = vpop.permute.xlu1 %1457 }
  0xee   : > { %v1306_v63 = vpop.permute.xlu2 %1305  ;;  %v3231_v0 = vrot.slane %v3224_v60, 2  ;;  %v3234_v7 = vrot.slane %v3224_v60, 1  ;;  %v3257_v21 = vrot.slane %v3224_v60, 3  ;;  %v1483_v50 = vand.u32 2147483647, %v3224_v60 }
  0xef   : > { %v1291_v1 = vpop.permute.xlu0 %1290  ;;  %vm1338_vm15 = vcmp.eq.s32.totalorder %v1306_v63, 1  ;;  %v1485_v19 = vand.u32 2147483648, %v3224_v60 }
  0xf0   : > { %2303 = vrcp.f32 %v3231_v0  ;;  %vm1333_vm4 = vcmp.eq.s32.totalorder %v1291_v1, 1  ;;  %vm3277_vm10 = vmpackc.low %vm1338_vm15, %vm1338_vm15  ;;  %v1515_v44 = vand.u32 2147483648, %v3231_v0  ;;  %vm1509_vm8 = vweird.f32 %v3231_v0 }
  0xf1   : > { %2305 = vrcp.f32 %v3234_v7  ;;  %vm3263_vm1 = vmpackc.low %vm1333_vm4, %vm1333_vm4  ;;  %v1370_v43 = vsel %vm3277_vm10, %v1170_v33, 0  ;;  %v1513_v51 = vand.u32 2147483647, %v3231_v0  ;;  %vm1494_vm14 = vweird.f32 %v3234_v7 }
  0xf2   : > { %2307 = vrcp.f32 %v3257_v21  ;;  %v1365_v39 = vsel %vm3263_vm1, %v3227_v61, 0  ;;  %v3313_v5 = vunpack.c.l.bf16 %v1370_v43  ;;  %v3320_v58 = vor.u32 1.1754944e-38, %v1515_v44 }
  0xf3   : > { %2309 = vrcp.f32 %v3224_v60  ;;  %v1381_v47 = vunpack.c.l.bf16 %v1365_v39  ;;  %v1498_v59 = vand.u32 2147483647, %v3234_v7  ;;  %v1500_v61 = vand.u32 2147483648, %v3234_v7 }
  0xf4   : > { %v1530_v10 = vand.u32 2147483648, %v3257_v21  ;;  %vm3342_vm4 = vcmp.eq.f32.partialorder %v1513_v51, 8.507059e+37  ;;  %v1528_v27 = vand.u32 2147483647, %v3257_v21  ;;  %vm1524_vm10 = vweird.f32 %v3257_v21 }
  0xf5   : > { %v1297_v22 = vpop.permute.xlu1 %1296  ;;  %vm3346_vm13 = vcmp.eq.f32.partialorder %v1498_v59, 8.507059e+37  ;;  %v1501_v25 = vor.u32 1.1754944e-38, %v1500_v61  ;;  %v3376_v11 = vor.u32 1.1754944e-38, %v1485_v19  ;;  %v730_v19 = vld [vmem:[%s2932_s14 + $0x4] sm:$0xf] }
  0xf6   : > { %v3259_v23 = vpop.eup %2303  ;;  %vm1335_vm5 = vcmp.eq.s32.totalorder %v1297_v22, 1  ;;  %v1309_v38 = vpop.permute.xlu2 %1308 }
  0xf7   : > { %v3268_v28 = vpop.eup %2305  ;;  %vm1351_vm6 = vmpackc.low %vm1335_vm5, %vm1335_vm5  ;;  %v1294_v32 = vpop.permute.xlu0 %1293  ;;  %v1505_v35 = vmul.f32 %v3259_v23, %v3231_v0  ;;  %vm1339_vm2 = vcmp.eq.s32.totalorder %v1309_v38, 1  ;;  %vm1510_vm3 = vweird.f32 %v3259_v23 }
  0xf8   : > { %v1367_v36 = vsel %vm1351_vm6, %v1167_v13, 0  ;;  %vm1334_vm12 = vcmp.eq.s32.totalorder %v1294_v32, 1  ;;  %v1490_v3 = vmul.f32 %v3268_v28, %v3234_v7  ;;  %v3311_v53 = vpop.eup %2307  ;;  %v732_v13 = vld [vmem:[%s2932_s14 + $0xc] sm:$0xf]  ;;  %vm1495_vm1 = vweird.f32 %v3268_v28  ;;  %vm3355_vm5 = vmpackc.low %vm1339_vm2, %vm1339_vm2 }
  0xf9   : > { %v1383_v40 = vunpack.c.l.bf16 %v1367_v36  ;;  %vm1350_vm0 = vmpackc.low %vm1334_vm12, %vm1334_vm12  ;;  %v1506_v48 = vsub.f32 1.0, %v1505_v35  ;;  %v3318_v57 = vpop.eup %2309  ;;  %v1520_v15 = vmul.f32 %v3311_v53, %v3257_v21  ;;  %v3359_v32 = vor.u32 1.1754944e-38, %v1530_v10 }
  0xfa   : > { %v1366_v46 = vsel %vm1350_vm0, %v1166_v37, 0  ;;  %v1491_v2 = vsub.f32 1.0, %v1490_v3  ;;  %v3338_v18 = vmul.f32 %v3318_v57, %v3224_v60  ;;  %v3362_v36 = vrot.slane %v1182_v14, 5  ;;  %vm3370_vm6 = vmor %vm1509_vm8, %vm1510_vm3 }
  0xfb   : > { %v1409_v45 = vadd.f32 %v1384_v29, %v1383_v40  ;;  %v1382_v49 = vunpack.c.l.bf16 %v1366_v46  ;;  %v1507_v1 = vmul.f32 %v3259_v23, %v1506_v48  ;;  %v1521_v35 = vsub.f32 1.0, %v1520_v15  ;;  %v1164_v46 = vld [vmem:[%s2939_s26 + $0x4] sm:$0xf]  ;;  %vm3392_vm8 = vmor %vm1494_vm14, %vm1495_vm1 }
  0xfc   : > { %v1492_v12 = vmul.f32 %v3268_v28, %v1491_v2  ;;  %v1476_v3 = vsub.f32 1.0, %v3338_v18  ;;  %v1371_v44 = vsel %vm3355_vm5, %v3292_v4, 0  ;;  %vm1525_vm2 = vweird.f32 %v3311_v53 }
  0xfd   : > { %v3309_v52 = vpop.permute.xlu1 %1026  ;;  %v1410_v54 = vrot.slane %v1409_v45, 4  ;;  %v1402_v55 = vadd.f32 %v1382_v49, %v1381_v47  ;;  %v1508_v29 = vadd.f32 %v3259_v23, %v1507_v1  ;;  %v1522_v2 = vmul.f32 %v3311_v53, %v1521_v35 }
  0xfe   : > { %v3316_v56 = vrot.slane %v3309_v52, 1  ;;  %v3334_v17 = vpop.permute.xlu2 %856  ;;  %v1493_v33 = vadd.f32 %v3268_v28, %v1492_v12  ;;  %vm1480_vm1 = vweird.f32 %v3318_v57  ;;  %vm3418_vm5 = vcmp.eq.f32.partialorder %v1528_v27, 8.507059e+37 }
  0xff   : > { %v863_v63 = vpop.permute.xlu0 %862  ;;  %v1403_v8 = vrot.slane %v1402_v55, 4  ;;  %v1411_v16 = vadd.f32 %v1410_v54, %v1409_v45  ;;  %v1512_v48 = vsel %vm3370_vm6, %v3259_v23, %v1508_v29  ;;  %vm901_vm14 = vcmp.eq.s32.totalorder %v3334_v17, 1 }
 0x100   : > { %2311 = vrcp.f32 %v3316_v56  ;;  %vm903_vm9 = vcmp.eq.s32.totalorder %v863_v63, 1  ;;  %v1523_v12 = vadd.f32 %v3311_v53, %v1522_v2  ;;  %vm1641_vm6 = vcmask 1043459  }
 0x101   : > { %v1404_v26 = vadd.f32 %v1403_v8, %v1402_v55  ;;  %vm919_vm15 = vmpackc.low %vm903_vm9, %vm903_vm9  ;;  %v1412_v40 = vrot.slane %v1411_v16, 2  ;;  %v3401_v55 = vunpack.c.l.bf16 %v1371_v44  ;;  %2313 = vrcp.f32 %v3309_v52 }
 0x102   : > { %v935_v31 = vsel %vm919_vm15, %v732_v13, 0  ;;  %vm1479_vm15 = vweird.f32 %v3224_v60  ;;  %v3423_v15 = vrot.slane %v3309_v52, 2  ;;  %v1477_v29 = vmul.f32 %v3318_v57, %v1476_v3 }
 0x103   : > { %v951_v34 = vunpack.c.l.bf16 %v935_v31  ;;  %v1405_v43 = vrot.slane %v1404_v26, 2  ;;  %v1413_v54 = vadd.f32 %v1412_v40, %v1411_v16  ;;  %v1067_v31 = vand.u32 2147483647, %v3316_v56 }
 0x104   : > { %2315 = vrcp.f32 %v3423_v15 }
 0x105   : > { %v1303_v37 = vpop.permute.xlu1 %1302  ;;  %v971_v45 = vadd.f32 %v951_v34, %v3294_v41  ;;  %v1497_v41 = vsel %vm3392_vm8, %v3268_v28, %v1493_v33  ;;  %v1406_v61 = vadd.f32 %v1405_v43, %v1404_v26  ;;  %v3410_v28 = vsel %vm3342_vm4, %v3320_v58, %v1512_v48  ;;  %vm3430_vm4 = vmpackc.low %vm901_vm14, %vm901_vm14  ;;  %v1173_v48 = vld [vmem:[%s2939_s26 + $0x28] sm:$0xf] }
 0x106   : > { %v3364_v39 = vpop.eup %2311  ;;  %vm1337_vm12 = vcmp.eq.s32.totalorder %v1303_v37, 1  ;;  %v3414_v8 = vsel %vm3346_vm13, %v1501_v25, %v1497_v41  ;;  %v1315_v10 = vpop.permute.xlu2 %1314  ;;  %v1414_v16 = vrot.slane %v1413_v54, 1  ;;  %v734_v25 = vld [vmem:[%s2932_s14 + $0x14] sm:$0xf]  ;;  %v933_v35 = vsel %vm3430_vm4, %v730_v19, 0 }
 0x107   : > { %v1059_v0 = vmul.f32 %v3364_v39, %v3316_v56  ;;  %vm1353_vm0 = vmpackc.low %vm1337_vm12, %vm1337_vm12  ;;  %v1288_v47 = vpop.permute.xlu0 %1287  ;;  %v972_v51 = vrot.slane %v971_v45, 4  ;;  %v1407_v26 = vrot.slane %v1406_v61, 1  ;;  %vm1063_vm12 = vweird.f32 %v3316_v56  ;;  %v3458_v40 = vpop.eup %2313 }
 0x108   : > { %v1369_v4 = vsel %vm1353_vm0, %v1169_v9, 0  ;;  %vm1332_vm9 = vcmp.eq.s32.totalorder %v1288_v47, 1  ;;  %vm1064_vm8 = vweird.f32 %v3364_v39  ;;  %v1415_v3 = vadd.f32 %v1414_v16, %v1413_v54 }
 0x109   : > { %v1385_v23 = vunpack.c.l.bf16 %v1369_v4  ;;  %vm1348_vm3 = vmpackc.low %vm1332_vm9, %vm1332_vm9  ;;  %v1060_v7 = vsub.f32 1.0, %v1059_v0  ;;  %v973_v63 = vadd.f32 %v972_v51, %v971_v45  ;;  %v733_v0 = vld [vmem:[%s2932_s14 + $0x10] sm:$0xf]  ;;  %v1408_v45 = vadd.f32 %v1407_v26, %v1406_v61 }
 0x10a   : > { %v1364_v59 = vsel %vm1348_vm3, %v1164_v46, 0  ;;  %vm3451_vm9 = vmor %vm1524_vm10, %vm1525_vm2  ;;  %vm3466_vm10 = vcmp.eq.f32.partialorder %v1483_v50, 8.507059e+37  ;;  %vm1341_vm2 = vcmp.eq.s32.totalorder %v1315_v10, 1  ;;  %vm3481_vm4 = vcmp.eq.f32.partialorder %v1067_v31, 8.507059e+37  ;;  %v3514_v10 = vpop.eup %2315 }
 0x10b   : > { %v1416_v1 = vadd.f32 %v3313_v5, %v1385_v23  ;;  %v1380_v9 = vunpack.c.l.bf16 %v1364_v59  ;;  %v974_v5 = vrot.slane %v973_v63, 2  ;;  %v1061_v18 = vmul.f32 %v3364_v39, %v1060_v7  ;;  %vm3475_vm3 = vmor %vm1063_vm12, %vm1064_vm8 }
 0x10c   : > { %v1527_v44 = vsel %vm3451_vm9, %v3311_v53, %v1523_v12  ;;  %v1478_v53 = vadd.f32 %v3318_v57, %v1477_v29  ;;  %v1184_v4 = vunpack.c.l.bf16 %v1173_v48  ;;  %vm3489_vm12 = vmpackc.low %vm1341_vm2, %vm1341_vm2  ;;  %v1084_v19 = vand.u32 2147483648, %v3423_v15 }
 0x10d   : > { %v1417_v14 = vrot.slane %v1416_v1, 4  ;;  %v869_v58 = vpop.permute.xlu1 %868  ;;  %v1395_v22 = vadd.f32 %v1380_v9, %v3296_v42  ;;  %v1069_v42 = vand.u32 2147483648, %v3316_v56  ;;  %v975_v34 = vadd.f32 %v974_v5, %v973_v63 }
 0x10e   : > { %vm905_vm13 = vcmp.eq.s32.totalorder %v869_v58, 1  ;;  %v1062_v43 = vadd.f32 %v3364_v39, %v1061_v18  ;;  %v3485_v56 = vunpack.c.l.bf16 %v933_v35  ;;  %v3499_v61 = vsel %vm3418_vm5, %v3359_v32, %v1527_v44  ;;  %v729_v35 = vld [vmem:[%s2932_s14] sm:$0xf] }
 0x10f   : > { %v1418_v27 = vadd.f32 %v1417_v14, %v1416_v1  ;;  %vm3438_vm0 = vmpackc.low %vm905_vm13, %vm905_vm13  ;;  %v866_v17 = vpop.permute.xlu0 %865  ;;  %v1396_v33 = vrot.slane %v1395_v22, 4  ;;  %v1070_v51 = vor.u32 1.1754944e-38, %v1069_v42  ;;  %v976_v2 = vrot.slane %v975_v34, 1 }
 0x110   : > { %v937_v38 = vsel %vm3438_vm0, %v734_v25, 0  ;;  %vm904_vm14 = vcmp.eq.s32.totalorder %v866_v17, 1  ;;  %v1066_v59 = vsel %vm3475_vm3, %v3364_v39, %v1062_v43  ;;  %v3504_v63 = vsel %vm1641_vm6, %v3362_v36, %v3299_v6  ;;  %vm3510_vm0 = vmor %vm1479_vm15, %vm1480_vm1  ;;  %v881_v39 = vpop.permute.xlu2 %880 }
 0x111   : > { %v1419_v47 = vrot.slane %v1418_v27, 2  ;;  %v1397_v49 = vadd.f32 %v1396_v33, %v1395_v22  ;;  %v953_v41 = vunpack.c.l.bf16 %v937_v38  ;;  %vm920_vm13 = vmpackc.low %vm904_vm14, %vm904_vm14  ;;  %v3517_v32 = vmul.f32 %v3410_v28, %v1415_v3  ;;  %v738_v33 = vld [vmem:[%s2932_s14 + $0x24] sm:$0xf] }
 0x112   : > { %v936_v54 = vsel %vm920_vm13, %v733_v0, 0  ;;  %v3520_v5 = vmul.f32 %v3414_v8, %v1408_v45  ;;  %v1482_v36 = vsel %vm3510_vm0, %v3318_v57, %v1478_v53  ;;  %v3525_v14 = vrot.slane %v1184_v4, 3  ;;  %v1610_v4 = vld [vmem:[#allocation8] sm:$0xff] }
 0x113   : > { %v952_v9 = vunpack.c.l.bf16 %v936_v54  ;;  %v1420_v6 = vadd.f32 %v1419_v47, %v1418_v27  ;;  %v1398_v13 = vrot.slane %v1397_v49, 2  ;;  %v1373_v58 = vsel %vm3489_vm12, %v1173_v48, 0 }
 0x114   : > { %v1071_v28 = vsel %vm3481_vm4, %v1070_v51, %v1066_v59  ;;  %v977_v18 = vadd.f32 %v976_v2, %v975_v34  ;;  %vm909_vm15 = vcmp.eq.s32.totalorder %v881_v39, 1  ;;  %v1044_v8 = vmul.f32 %v3458_v40, %v3309_v52 }
 0x115   : > { %v854_v7 = vpop.permute.xlu1 %853  ;;  %v978_v16 = vadd.f32 %v953_v41, %v952_v9  ;;  %v1074_v57 = vmul.f32 %v3514_v10, %v3423_v15  ;;  %v747_v20 = vunpack.c.l.bf16 %v733_v0  ;;  %v1805_v25 = vrot.slane %v3517_v32, 6  ;;  %vm3547_vm1 = vmpackc.low %vm909_vm15, %vm909_vm15  ;;  %v1172_v0 = vld [vmem:[%s2939_s26 + $0x24] sm:$0xf]  ;;  %v1859_v32 = vld [vmem:[#allocation13 + $0x70] sm:$0xff] }
 0x116   : > { %v1803_v26 = vrot.slane %v3520_v5, 7  ;;  %v1421_v27 = vrot.slane %v1420_v6, 1  ;;  %v3541_v29 = vsel %vm3466_vm10, %v3376_v11, %v1482_v36  ;;  %v1399_v30 = vadd.f32 %v1398_v13, %v1397_v49 }
 0x117   : > { %v1312_v12 = vpop.permute.xlu0 %1311  ;;  %v979_v22 = vrot.slane %v978_v16, 4  ;;  %v3543_v17 = vunpack.c.l.bf16 %v1373_v58  ;;  %v1082_v31 = vand.u32 2147483647, %v3423_v15  ;;  %v3552_v37 = vmul.f32 %v1071_v28, %v977_v18  ;;  %v736_v28 = vld [vmem:[%s2932_s14 + $0x1c] sm:$0xf] }
 0x118   : > { %v1045_v38 = vsub.f32 1.0, %v1044_v8  ;;  %vm900_vm5 = vcmp.eq.s32.totalorder %v854_v7, 1  ;;  %v3555_v11 = vrot.slane %v3224_v60, 4  ;;  %v1075_v43 = vsub.f32 1.0, %v1074_v57  ;;  %v884_v2 = vpop.permute.xlu2 %883 }
 0x119   : > { %v980_v42 = vadd.f32 %v979_v22, %v978_v16  ;;  %vm1078_vm8 = vweird.f32 %v3423_v15  ;;  %v3558_v44 = vor.u32 1.1754944e-38, %v1084_v19  ;;  %v3560_v21 = vrot.slane %v747_v20, 6  ;;  %vm916_vm9 = vmpackc.low %vm900_vm5, %vm900_vm5 }
 0x11a   : > { %vm1340_vm10 = vcmp.eq.s32.totalorder %v1312_v12, 1  ;;  %v1422_v45 = vadd.f32 %v1421_v27, %v1420_v6  ;;  %v941_v46 = vsel %vm3547_vm1, %v738_v33, 0  ;;  %v932_v47 = vsel %vm916_vm9, %v729_v35, 0 }
 0x11b   : > { %2317 = vrcp.f32 %v3555_v11  ;;  %vm1356_vm2 = vmpackc.low %vm1340_vm10, %vm1340_vm10  ;;  %v1400_v48 = vrot.slane %v1399_v30, 1  ;;  %v981_v50 = vrot.slane %v980_v42, 2  ;;  %vm1048_vm3 = vweird.f32 %v3309_v52 }
 0x11c   : > { %v948_v49 = vunpack.c.l.bf16 %v932_v47  ;;  %vm1079_vm14 = vweird.f32 %v3514_v10  ;;  %v1046_v41 = vmul.f32 %v3458_v40, %v1045_v38  ;;  %v1372_v51 = vsel %vm1356_vm2, %v1172_v0, 0  ;;  %v3633_v38 = vld [vmem:[%s2932_s14 + $0x18] sm:$0xf] }
 0x11d   : > { %v875_v3 = vpop.permute.xlu1 %874  ;;  %v1076_v23 = vmul.f32 %v3514_v10, %v1075_v43  ;;  %v3571_v54 = vunpack.c.l.bf16 %v941_v46  ;;  %v1388_v59 = vunpack.c.l.bf16 %v1372_v51  ;;  %v3575_v1 = vmul.f32 %v3499_v61, %v1422_v45  ;;  %vm3606_vm1 = vmor %vm1078_vm8, %vm1079_vm14  ;;  %v1794_v45 = vld [vmem:[#allocation11 + $0x78] sm:$0xff]  ;;  %v1793_v46 = vld [vmem:[#allocation11 + $0x70] sm:$0xff] }
 0x11e   : > { %v964_v7 = vadd.f32 %v3485_v56, %v948_v49  ;;  %v1052_v9 = vand.u32 2147483647, %v3309_v52  ;;  %v745_v39 = vunpack.c.l.bf16 %v729_v35  ;;  %vm907_vm4 = vcmp.eq.s32.totalorder %v875_v3, 1  ;;  %v739_v49 = vld [vmem:[%s2932_s14 + $0x28] sm:$0xf]  ;;  %1818 = vmatpush.msra.mxu3 %v1794_v45  ;;  %v1734_v0 = vld [vmem:[#allocation10 + $0x78] sm:$0xff] }
 0x11f   : > { %v872_v53 = vpop.permute.xlu0 %871  ;;  %v1401_v6 = vadd.f32 %v1400_v48, %v1399_v30  ;;  %vm3578_vm13 = vcmp.eq.f32.partialorder %v1082_v31, 8.507059e+37  ;;  %v982_v12 = vadd.f32 %v981_v50, %v980_v42  ;;  %v1423_v58 = vadd.f32 %v1388_v59, %v3401_v55  ;;  %vm3589_vm0 = vmpackc.low %vm907_vm4, %vm907_vm4  ;;  %1758 = vmatpush.msra.mxu2 %v1734_v0 }
 0x120   : > { %v965_v13 = vrot.slane %v964_v7, 4  ;;  %v1047_v56 = vadd.f32 %v3458_v40, %v1046_v41  ;;  %vm1049_vm12 = vweird.f32 %v3458_v40  ;;  %v1054_v61 = vand.u32 2147483648, %v3309_v52  ;;  %1819 = vmatpush.msra.mxu3 %v1793_v46  ;;  %v1176_v46 = vld [vmem:[%s2939_s26 + $0x34] sm:$0xf] }
 0x121   : > { %v3583_v16 = vpop.eup %2317  ;;  %v3594_v8 = vrot.slane %v3309_v52, 3  ;;  %v1077_v55 = vadd.f32 %v3514_v10, %v1076_v23  ;;  %vm910_vm15 = vcmp.eq.s32.totalorder %v884_v2, 1  ;;  %v1807_v22 = vrot.slane %v3575_v1, 5  ;;  %vm3622_vm5 = vmor %vm1048_vm3, %vm1049_vm12  ;;  %v1330_v23 = vpop.permute.xlu2 %1329 }
 0x122   : > { %v966_v19 = vadd.f32 %v965_v13, %v964_v7  ;;  %v1535_v20 = vmul.f32 %v3583_v16, %v3555_v11  ;;  %v1685_v30 = vsel %vm1635_vm7, %v3261_v24, %v745_v39  ;;  %v1424_v31 = vrot.slane %v1423_v58, 4  ;;  %vm3640_vm9 = vmpackc.low %vm910_vm15, %vm910_vm15  ;;  %v1792_v7 = vld [vmem:[#allocation11 + $0x68] sm:$0xff] }
 0x123   : > { %2319 = vrcp.f32 %v3594_v8  ;;  %v3616_v33 = vmul.f32 %v3541_v29, %v1401_v6  ;;  %v983_v34 = vrot.slane %v982_v12, 1  ;;  %vm3626_vm8 = vcmp.eq.f32.partialorder %v1052_v9, 8.507059e+37  ;;  %1820 = vmatpush.msra.mxu3 %v1792_v7 }
 0x124   : > { %v939_v35 = vsel %vm3589_vm0, %v736_v28, 0  ;;  %v1051_v29 = vsel %vm3622_vm5, %v3458_v40, %v1047_v56  ;;  %v1055_v3 = vor.u32 1.1754944e-38, %v1054_v61  ;;  %v1425_v43 = vadd.f32 %v1424_v31, %v1423_v58  ;;  %v1791_v56 = vld [vmem:[#allocation11 + $0x60] sm:$0xff] }
 0x125   : > { %v3596_v57 = vpop.permute.xlu1 %877  ;;  %vm906_vm10 = vcmp.eq.s32.totalorder %v872_v53, 1  ;;  %v1081_v47 = vsel %vm3606_vm1, %v3514_v10, %v1077_v55  ;;  %v967_v48 = vrot.slane %v966_v19, 2  ;;  %v3649_v50 = vsel %vm1638_vm11, %v3560_v21, %v1685_v30  ;;  %v1790_v30 = vld [vmem:[#allocation11 + $0x58] sm:$0xff]  ;;  %1821 = vmatpush.msra.mxu3 %v1791_v56 }
 0x126   : > { %v1536_v40 = vsub.f32 1.0, %v1535_v20  ;;  %vm922_vm2 = vmpackc.low %vm906_vm10, %vm906_vm10  ;;  %v1545_v41 = vand.u32 2147483648, %v3555_v11  ;;  %v750_v51 = vunpack.c.l.bf16 %v739_v49  ;;  %v955_v2 = vunpack.c.l.bf16 %v939_v35  ;;  %v3681_v20 = vld [vmem:[%s2939_s26 + $0x3c] sm:$0xf] }
 0x127   : > { %v3613_v42 = vpop.permute.xlu0 %1317  ;;  %v938_v53 = vsel %vm922_vm2, %v3633_v38, 0  ;;  %v984_v59 = vadd.f32 %v983_v34, %v982_v12  ;;  %v3656_v10 = vsel %vm3626_vm8, %v1055_v3, %v1051_v29  ;;  %v1543_v21 = vand.u32 2147483647, %v3555_v11  ;;  %v3698_v29 = vld [vmem:[%s2932_s14 + $0x20] sm:$0xf]  ;;  %1822 = vmatpush.msra.mxu3 %v1790_v30  ;;  %v1608_v30 = vld [vmem:[#allocation7 + $0x70] sm:$0xff] }
 0x128   : > { %v954_v9 = vunpack.c.l.bf16 %v938_v53  ;;  %v1086_v6 = vsel %vm3578_vm13, %v3558_v44, %v1081_v47  ;;  %vm1539_vm3 = vweird.f32 %v3555_v11  ;;  %v1426_v13 = vrot.slane %v1425_v43, 2  ;;  %v1174_v3 = vld [vmem:[%s2939_s26 + $0x2c] sm:$0xf]  ;;  %v1733_v47 = vld [vmem:[#allocation10 + $0x70] sm:$0xff]  ;;  %v1625_v53 = vld [vmem:[#allocation8 + $0x78] sm:$0xff] }
 0x129   : > { %v3659_v39 = vpop.eup %2319  ;;  %v942_v12 = vsel %vm3640_vm9, %v739_v49, 0  ;;  %v3669_v61 = vadd.f32 %v967_v48, %v966_v19  ;;  %v1537_v28 = vmul.f32 %v3583_v16, %v1536_v40  ;;  %vm1346_vm14 = vcmp.eq.s32.totalorder %v1330_v23, 1  ;;  %1759 = vmatpush.msra.mxu2 %v1733_v47  ;;  %v1609_v23 = vld [vmem:[#allocation7 + $0x78] sm:$0xff]  ;;  %1656 = vmatpush.msra.mxu0 %v1625_v53  ;;  %v1607_v47 = vld [vmem:[#allocation7 + $0x68] sm:$0xff] }
 0x12a   : > { %v1089_v18 = vmul.f32 %v3659_v39, %v3594_v8  ;;  %v3674_v44 = vor.u32 1.1754944e-38, %v1545_v41  ;;  %v3676_v36 = vrot.slane %v750_v51, 3  ;;  %v3678_v55 = vadd.f32 %v955_v2, %v954_v9  ;;  %vm3707_vm0 = vmpackc.low %vm1346_vm14, %vm1346_vm14  ;;  %v1788_v41 = vld [vmem:[#allocation11 + $0x48] sm:$0xff]  ;;  %1699 = vmatpush.msra.mxu1 %v1609_v23  ;;  %v1622_v23 = vld [vmem:[#allocation8 + $0x60] sm:$0xff] }
 0x12b   : > { %v3684_v19 = vrot.slane %v3309_v52, 4  ;;  %v3688_v31 = vmul.f32 %v1086_v6, %v984_v59  ;;  %vm3690_vm4 = vcmp.eq.f32.partialorder %v1543_v21, 8.507059e+37  ;;  %v3694_v15 = vunpack.c.l.bf16 %v942_v12  ;;  %v1732_v6 = vld [vmem:[#allocation10 + $0x68] sm:$0xff] }
 0x12c   : > { %v1090_v24 = vsub.f32 1.0, %v1089_v18  ;;  %v748_v35 = vunpack.c.l.bf16 %v3633_v38  ;;  %vm1540_vm13 = vweird.f32 %v3583_v16  ;;  %v3702_v45 = vadd.f32 %v1426_v13, %v1425_v43  ;;  %v1789_v38 = vld [vmem:[#allocation11 + $0x50] sm:$0xff]  ;;  %v1787_v18 = vld [vmem:[#allocation11 + $0x40] sm:$0xff]  ;;  %1760 = vmatpush.msra.mxu2 %v1732_v6  ;;  %1700 = vmatpush.msra.mxu1 %v1608_v30  ;;  %v1784_v30 = vld [vmem:[#allocation11 + $0x28] sm:$0xff] }
 0x12d   : > { %v3667_v58 = vpop.permute.xlu1 %1323  ;;  %vm1093_vm12 = vweird.f32 %v3594_v8  ;;  %vm908_vm15 = vcmp.eq.s32.totalorder %v3596_v57, 1  ;;  %v969_v48 = vrot.slane %v3669_v61, 1  ;;  %v3714_v40 = vadd.f32 %v3583_v16, %v1537_v28  ;;  %vm3732_vm9 = vmor %vm1539_vm3, %vm1540_vm13  ;;  %1823 = vmatpush.msra.mxu3 %v1789_v38  ;;  %v1624_v13 = vld [vmem:[#allocation8 + $0x70] sm:$0xff]  ;;  %v1623_v38 = vld [vmem:[#allocation8 + $0x68] sm:$0xff] }
 0x12e   : > { %v1097_v43 = vand.u32 2147483647, %v3594_v8  ;;  %vm3717_vm1 = vmpackc.low %vm908_vm15, %vm908_vm15  ;;  %vm1342_vm5 = vcmp.eq.s32.totalorder %v3613_v42, 1  ;;  %v1099_v57 = vand.u32 2147483648, %v3594_v8  ;;  %v986_v51 = vrot.slane %v3678_v55, 4  ;;  %1657 = vmatpush.msra.mxu0 %v1624_v13  ;;  %v1606_v42 = vld [vmem:[#allocation7 + $0x60] sm:$0xff]  ;;  %1701 = vmatpush.msra.mxu1 %v1607_v47 }
 0x12f   : > { %v3686_v27 = vpop.permute.xlu0 %1320  ;;  %2321 = vrcp.f32 %v3684_v19  ;;  %v940_v2 = vsel %vm3717_vm1, %v3698_v29, 0  ;;  %vm1358_vm8 = vmpackc.low %vm1342_vm5, %vm1342_vm5  ;;  %v1091_v7 = vmul.f32 %v3659_v39, %v1090_v24  ;;  %v1688_v59 = vrot.slane %v748_v35, 5  ;;  %1824 = vmatpush.msra.mxu3 %v1788_v41  ;;  %v1730_v41 = vld [vmem:[#allocation10 + $0x58] sm:$0xff]  ;;  %v1729_v6 = vld [vmem:[#allocation10 + $0x50] sm:$0xff] }
 0x130   : > { %v1378_v21 = vsel %vm3707_vm0, %v3681_v20, 0  ;;  %v1374_v9 = vsel %vm1358_vm8, %v1174_v3, 0  ;;  %v1428_v12 = vrot.slane %v3702_v45, 1  ;;  %v956_v11 = vunpack.c.l.bf16 %v940_v2  ;;  %v1731_v20 = vld [vmem:[#allocation10 + $0x60] sm:$0xff]  ;;  %1658 = vmatpush.msra.mxu0 %v1623_v38  ;;  %1702 = vmatpush.msra.mxu1 %v1606_v42  ;;  %v1620_v38 = vld [vmem:[#allocation8 + $0x50] sm:$0xff] }
 0x131   : > { %v1390_v56 = vunpack.c.l.bf16 %v1374_v9  ;;  %vm1344_vm10 = vcmp.eq.s32.totalorder %v3667_v58, 1  ;;  %v970_v35 = vadd.f32 %v969_v48, %v3669_v61  ;;  %v1542_v3 = vsel %vm3732_vm9, %v3583_v16, %v3714_v40  ;;  %v3765_v16 = vld [vmem:[%s2939_s26 + $0x30] sm:$0xf]  ;;  %1761 = vmatpush.msra.mxu2 %v1731_v20  ;;  %1825 = vmatpush.msra.mxu3 %v1787_v18  ;;  %v740_v18 = vld [vmem:[%s2932_s14 + $0x2c] sm:$0xf] }
 0x132   : > { %vm3750_vm2 = vcmp.eq.f32.partialorder %v1097_v43, 8.507059e+37  ;;  %vm1094_vm3 = vweird.f32 %v3659_v39  ;;  %v3756_v49 = vor.u32 1.1754944e-38, %v1099_v57  ;;  %v3759_v61 = vadd.f32 %v986_v51, %v3678_v55  ;;  %v1786_v43 = vld [vmem:[#allocation11 + $0x38] sm:$0xff]  ;;  %v896_v51 = vpop.permute.xlu2 %895  ;;  %vm3782_vm14 = vmpackc.low %vm1344_vm10, %vm1344_vm10  ;;  %v1785_v9 = vld [vmem:[#allocation11 + $0x30] sm:$0xff]  ;;  %1659 = vmatpush.msra.mxu0 %v1622_v23 }
 0x133   : > { %v3762_v48 = vadd.f32 %v1390_v56, %v3543_v17  ;;  %v3770_v2 = vadd.f32 %v3659_v39, %v1091_v7  ;;  %v3774_v57 = vsel %vm1641_vm6, %v1688_v59, %v3649_v50  ;;  %v3776_v55 = vunpack.c.l.bf16 %v1378_v21  ;;  %v3798_v21 = vld [vmem:[%s2939_s26 + $0x38] sm:$0xf]  ;;  %1762 = vmatpush.msra.mxu2 %v1730_v41  ;;  %1826 = vmatpush.msra.mxu3 %v1786_v43  ;;  %v1604_v47 = vld [vmem:[#allocation7 + $0x50] sm:$0xff]  ;;  %v1727_v43 = vld [vmem:[#allocation10 + $0x40] sm:$0xff]  ;;  %s4331_s26 = sld [smem:[#allocation34_spill]] }
 0x134   : > { %v749_v17 = vunpack.c.l.bf16 %v3698_v29  ;;  %v1547_v50 = vsel %vm3690_vm4, %v3674_v44, %v1542_v3  ;;  %v1429_v29 = vadd.f32 %v1428_v12, %v3702_v45  ;;  %v3793_v59 = vadd.f32 %v3571_v54, %v956_v11  ;;  %vm3807_vm4 = vmor %vm1093_vm12, %vm1094_vm3  ;;  %v1621_v45 = vld [vmem:[#allocation8 + $0x58] sm:$0xff]  ;;  %v1603_v54 = vld [vmem:[#allocation7 + $0x48] sm:$0xff] }
 0x135   : > { %v3742_v28 = vpop.permute.xlu1 %1326  ;;  %v3786_v7 = vpop.eup %2321  ;;  %v1376_v58 = vsel %vm3782_vm14, %v1176_v46, 0  ;;  %v3801_v13 = vmul.f32 %v3656_v10, %v970_v35  ;;  %v1114_v44 = vand.u32 2147483648, %v3684_v19  ;;  %v1431_v34 = vrot.slane %v3762_v48, 4  ;;  %v1605_v10 = vld [vmem:[#allocation7 + $0x58] sm:$0xff]  ;;  %1763 = vmatpush.msra.mxu2 %v1729_v6  ;;  %1827 = vmatpush.msra.mxu3 %v1785_v9  ;;  %v1783_v6 = vld [vmem:[#allocation11 + $0x20] sm:$0xff] }
 0x136   : > { %vm1343_vm13 = vcmp.eq.s32.totalorder %v3686_v27, 1  ;;  %v988_v12 = vrot.slane %v3759_v61, 2  ;;  %v1112_v11 = vand.u32 2147483647, %v3684_v19  ;;  %vm914_vm0 = vcmp.eq.s32.totalorder %v896_v51, 1  ;;  %v1728_v27 = vld [vmem:[#allocation10 + $0x48] sm:$0xff]  ;;  %1660 = vmatpush.msra.mxu0 %v1621_v45  ;;  %1703 = vmatpush.msra.mxu1 %v1605_v10 }
 0x137   : > { %v3767_v40 = vpop.permute.xlu0 %886  ;;  %v1392_v8 = vunpack.c.l.bf16 %v1376_v58  ;;  %vm3816_vm12 = vmpackc.low %vm1343_vm13, %vm1343_vm13  ;;  %v1096_v20 = vsel %vm3807_vm4, %v3659_v39, %v3770_v2  ;;  %v3827_v35 = vmul.f32 %v3786_v7, %v3684_v19  ;;  %v3830_v3 = vld [vmem:[%s2932_s14 + $0x38] sm:$0xf]  ;;  %vm1345_vm15 = vcmp.eq.s32.totalorder %v3742_v28, 1  ;;  %v742_v58 = vld [vmem:[%s2932_s14 + $0x34] sm:$0xf]  ;;  %1764 = vmatpush.msra.mxu2 %v1728_v27  ;;  %1828 = vmatpush.msra.mxu3 %v1784_v30 }
 0x138   : > { %v1375_v46 = vsel %vm3816_vm12, %v3765_v16, 0  ;;  %v3836_v41 = vmul.f32 %v1547_v50, %v1429_v29  ;;  %v993_v39 = vrot.slane %v3793_v59, 4  ;;  %v3839_v2 = vrot.slane %v749_v17, 4  ;;  %vm3841_vm1 = vmpackc.low %vm1345_vm15, %vm1345_vm15  ;;  %v1619_v28 = vld [vmem:[#allocation8 + $0x48] sm:$0xff]  ;;  %1661 = vmatpush.msra.mxu0 %v1620_v38  ;;  %1704 = vmatpush.msra.mxu1 %v1604_v47  ;;  %v1618_v30 = vld [vmem:[#allocation8 + $0x40] sm:$0xff] }
 0x139   : > { %v1391_v53 = vunpack.c.l.bf16 %v1375_v46  ;;  %v3846_v9 = vor.u32 1.1754944e-38, %v1114_v44  ;;  %v3849_v50 = vadd.f32 %v1431_v34, %v3762_v48  ;;  %vm3853_vm5 = vmpackc.low %vm914_vm0, %vm914_vm0  ;;  %v1377_v29 = vsel %vm3841_vm1, %v3798_v21, 0  ;;  %v1726_v44 = vld [vmem:[#allocation10 + $0x38] sm:$0xff]  ;;  %1765 = vmatpush.msra.mxu2 %v1727_v43  ;;  %1829 = vmatpush.msra.mxu3 %v1783_v6  ;;  %v3883_v38 = vld [vmem:[%s2932_s14 + $0x30] sm:$0xf] }
 0x13a   : > { %vm911_vm8 = vcmp.eq.s32.totalorder %v3767_v40, 1  ;;  %v3864_v48 = vsel %vm3750_vm2, %v3756_v49, %v1096_v20  ;;  %v989_v51 = vadd.f32 %v988_v12, %v3759_v61  ;;  %v752_v34 = vunpack.c.l.bf16 %v3830_v3  ;;  %v1782_v40 = vld [vmem:[#allocation11 + $0x18] sm:$0xff]  ;;  %1662 = vmatpush.msra.mxu0 %v1619_v28  ;;  %v1602_v61 = vld [vmem:[#allocation7 + $0x40] sm:$0xff]  ;;  %v1725_v12 = vld [vmem:[#allocation10 + $0x30] sm:$0xff]  ;;  %1705 = vmatpush.msra.mxu1 %v1603_v54 }
 0x13b   : > { %v1437_v45 = vadd.f32 %v1392_v8, %v1391_v53  ;;  %vm3868_vm9 = vmpackc.low %vm911_vm8, %vm911_vm8  ;;  %v1105_v27 = vsub.f32 1.0, %v3827_v35  ;;  %vm1109_vm10 = vweird.f32 %v3786_v7  ;;  %v1393_v0 = vunpack.c.l.bf16 %v1377_v29  ;;  %v1781_v47 = vld [vmem:[#allocation11 + $0x10] sm:$0xff]  ;;  %1766 = vmatpush.msra.mxu2 %v1726_v44  ;;  %1830 = vmatpush.msra.mxu3 %v1782_v40  ;;  %v1780_v6 = vld [vmem:[#allocation11 + $0x8] sm:$0xff] }
 0x13c   : > { %v943_v49 = vsel %vm3868_vm9, %v740_v18, 0  ;;  %v3877_v8 = vadd.f32 %v993_v39, %v3793_v59  ;;  %v946_v20 = vsel %vm3853_vm5, %v3830_v3, 0  ;;  %vm1108_vm14 = vweird.f32 %v3684_v19  ;;  %1663 = vmatpush.msra.mxu0 %v1618_v30  ;;  %1706 = vmatpush.msra.mxu1 %v1602_v61  ;;  %v744_v10 = vld [vmem:[%s2932_s14 + $0x3c] sm:$0xf] }
 0x13d   : > { %v893_v42 = vpop.permute.xlu1 %892  ;;  %v1438_v46 = vrot.slane %v1437_v45, 4  ;;  %v959_v35 = vunpack.c.l.bf16 %v943_v49  ;;  %v1433_v18 = vrot.slane %v3849_v50, 2  ;;  %v1444_v43 = vadd.f32 %v3776_v55, %v1393_v0  ;;  %1767 = vmatpush.msra.mxu2 %v1725_v12  ;;  %1831 = vmatpush.msra.mxu3 %v1781_v47  ;;  %v1601_v0 = vld [vmem:[#allocation7 + $0x38] sm:$0xff]  ;;  %v1724_v49 = vld [vmem:[#allocation10 + $0x28] sm:$0xff]  ;;  %v1616_v47 = vld [vmem:[#allocation8 + $0x30] sm:$0xff] }
 0x13e   : > { %vm913_vm2 = vcmp.eq.s32.totalorder %v893_v42, 1  ;;  %v990_v39 = vrot.slane %v989_v51, 1  ;;  %v1106_v28 = vmul.f32 %v3786_v7, %v1105_v27  ;;  %v1185_v17 = vunpack.c.l.bf16 %v3765_v16  ;;  %v1617_v27 = vld [vmem:[#allocation8 + $0x38] sm:$0xff]  ;;  %1707 = vmatpush.msra.mxu1 %v1601_v0  ;;  %vm3924_vm15 = vmor %vm1108_vm14, %vm1109_vm10 }
 0x13f   : > { %v890_v56 = vpop.permute.xlu0 %889  ;;  %vm929_vm3 = vmpackc.low %vm913_vm2, %vm913_vm2  ;;  %v1439_v53 = vadd.f32 %v1438_v46, %v1437_v45  ;;  %v999_v23 = vadd.f32 %v959_v35, %v3694_v15  ;;  %v1445_v29 = vrot.slane %v1444_v43, 4  ;;  %v1779_v45 = vld [vmem:[#allocation11] sm:$0xff]  ;;  %v3894_v15 = vrot.slane %v3224_v60, 5  ;;  %1832 = vmatpush.msra.mxu3 %v1780_v6  ;;  %1664 = vmatpush.msra.mxu0 %v1617_v27 }
 0x140   : > { %v945_v59 = vsel %vm929_vm3, %v742_v58, 0  ;;  %vm912_vm4 = vcmp.eq.s32.totalorder %v890_v56, 1  ;;  %v995_v56 = vrot.slane %v3877_v8, 2  ;;  %v3898_v40 = vadd.f32 %v1433_v18, %v3849_v50  ;;  %v1600_v50 = vld [vmem:[#allocation7 + $0x30] sm:$0xff]  ;;  %v1723_v18 = vld [vmem:[#allocation10 + $0x20] sm:$0xff]  ;;  %1768 = vmatpush.msra.mxu2 %v1724_v49  ;;  %v1597_v49 = vld [vmem:[#allocation7 + $0x18] sm:$0xff] }
 0x141   : > { %v961_v42 = vunpack.c.l.bf16 %v945_v59  ;;  %vm928_vm13 = vmpackc.low %vm912_vm4, %vm912_vm4  ;;  %v1440_v58 = vrot.slane %v1439_v53, 2  ;;  %v1000_v54 = vrot.slane %v999_v23, 4  ;;  %v1446_v30 = vadd.f32 %v1445_v29, %v1444_v43  ;;  %1833 = vmatpush.msra.mxu3 %v1779_v45  ;;  %1665 = vmatpush.msra.mxu0 %v1616_v47  ;;  %v1598_v45 = vld [vmem:[#allocation7 + $0x20] sm:$0xff] }
 0x142   : > { %v944_v55 = vsel %vm928_vm13, %v3883_v38, 0  ;;  %v3901_v16 = vrot.slane %v3224_v60, 6  ;;  %v991_v61 = vadd.f32 %v990_v39, %v989_v51  ;;  %v1186_v12 = vunpack.c.l.bf16 %v3798_v21  ;;  %v1615_v21 = vld [vmem:[#allocation8 + $0x28] sm:$0xff]  ;;  %1708 = vmatpush.msra.mxu1 %v1600_v50  ;;  %1769 = vmatpush.msra.mxu2 %v1723_v18 }
 0x143   : > { %v960_v44 = vunpack.c.l.bf16 %v944_v55  ;;  %2323 = vrcp.f32 %v3894_v15  ;;  %v3906_v43 = vadd.f32 %v3786_v7, %v1106_v28  ;;  %v962_v59 = vunpack.c.l.bf16 %v946_v20  ;;  %v1599_v51 = vld [vmem:[#allocation7 + $0x28] sm:$0xff]  ;;  %v1614_v20 = vld [vmem:[#allocation8 + $0x20] sm:$0xff]  ;;  %1666 = vmatpush.msra.mxu0 %v1615_v21 }
 0x144   : > { %v3910_v6 = vrot.slane %v752_v34, 1  ;;  %v1441_v39 = vadd.f32 %v1440_v58, %v1439_v53  ;;  %v1001_v29 = vadd.f32 %v1000_v54, %v999_v23  ;;  %v3913_v28 = vadd.f32 %v995_v56, %v3877_v8  ;;  %1709 = vmatpush.msra.mxu1 %v1599_v51  ;;  %v1720_v18 = vld [vmem:[#allocation10 + $0x8] sm:$0xff]  ;;  %v1612_v51 = vld [vmem:[#allocation8 + $0x10] sm:$0xff] }
 0x145   : > { %v1006_v46 = vadd.f32 %v961_v42, %v960_v44  ;;  %v1447_v42 = vrot.slane %v1446_v30, 2  ;;  %v1722_v44 = vld [vmem:[#allocation10 + $0x18] sm:$0xff]  ;;  %v1435_v3 = vrot.slane %v3898_v40, 1  ;;  %2325 = vrcp.f32 %v3901_v16  ;;  %1667 = vmatpush.msra.mxu0 %v1614_v20  ;;  %v1857_v20 = vld [vmem:[#allocation13 + $0x60] sm:$0xff] }
 0x146   : > { %v3918_v53 = vmul.f32 %v3864_v48, %v991_v61  ;;  %v3928_v8 = vrot.slane %v1185_v17, 2  ;;  %v3930_v58 = vrot.slane %v1186_v12, 1  ;;  %v1111_v48 = vsel %vm3924_vm15, %v3786_v7, %v3906_v43  ;;  %1770 = vmatpush.msra.mxu2 %v1722_v44  ;;  %v1613_v17 = vld [vmem:[#allocation8 + $0x18] sm:$0xff]  ;;  %1710 = vmatpush.msra.mxu1 %v1598_v45  ;;  %v1611_v45 = vld [vmem:[#allocation8 + $0x8] sm:$0xff] }
 0x147   : > { %v899_v35 = vpop.permute.xlu0 %898  ;;  %v1007_v55 = vrot.slane %v1006_v46, 4  ;;  %v3937_v27 = vrot.slane %v3224_v60, 7  ;;  %v1558_v0 = vand.u32 2147483647, %v3894_v15  ;;  %v1442_v12 = vrot.slane %v1441_v39, 1  ;;  %1668 = vmatpush.msra.mxu0 %v1613_v17 }
 0x148   : > { %vm915_vm0 = vcmp.eq.s32.totalorder %v899_v35, 1  ;;  %v3942_v35 = vadd.f32 %v1447_v42, %v1446_v30  ;;  %v1002_v47 = vrot.slane %v1001_v29, 2  ;;  %v3946_v60 = vadd.f32 %v1435_v3, %v3898_v40  ;;  %1711 = vmatpush.msra.mxu1 %v1597_v49  ;;  %v1719_v42 = vld [vmem:[#allocation10] sm:$0xff] }
 0x149   : > { %vm931_vm12 = vmpackc.low %vm915_vm0, %vm915_vm0  ;;  %v1008_v56 = vadd.f32 %v1007_v55, %v1006_v46  ;;  %v3940_v61 = vpop.eup %2323  ;;  %v997_v46 = vrot.slane %v3913_v28, 1  ;;  %vm1644_vm1 = vcmask 1044484   ;;  %v1596_v55 = vld [vmem:[#allocation7 + $0x10] sm:$0xff]  ;;  %vm1554_vm5 = vweird.f32 %v3894_v15  ;;  %1669 = vmatpush.msra.mxu0 %v1612_v51 }
 0x14a   : > { %v947_v34 = vsel %vm931_vm12, %v744_v10, 0  ;;  %v1721_v10 = vld [vmem:[#allocation10 + $0x10] sm:$0xff]  ;;  %v1550_v21 = vmul.f32 %v3940_v61, %v3894_v15  ;;  %v1560_v30 = vand.u32 2147483648, %v3894_v15  ;;  %vm3955_vm8 = vcmp.eq.f32.partialorder %v1558_v0, 8.507059e+37  ;;  %1712 = vmatpush.msra.mxu1 %v1596_v55 }
 0x14b   : > { %v963_v54 = vunpack.c.l.bf16 %v947_v34  ;;  %1771 = vmatpush.msra.mxu2 %v1721_v10  ;;  %v3953_v34 = vpop.eup %2325  ;;  %v1009_v40 = vrot.slane %v1008_v56, 2  ;;  %2327 = vrcp.f32 %v3937_v27  ;;  %v3960_v10 = vadd.f32 %v1002_v47, %v1001_v29  ;;  %1670 = vmatpush.msra.mxu0 %v1611_v45 }
 0x14c   : > { %v1551_v3 = vsub.f32 1.0, %v1550_v21  ;;  %v3962_v24 = vadd.f32 %v1442_v12, %v1441_v39  ;;  %v1449_v17 = vrot.slane %v3942_v35, 1  ;;  %v1565_v49 = vmul.f32 %v3953_v34, %v3901_v16  ;;  %v1594_v12 = vld [vmem:[#allocation7] sm:$0xff] }
 0x14d   : > { %v1013_v50 = vadd.f32 %v963_v54, %v962_v59  ;;  %v1573_v59 = vand.u32 2147483647, %v3901_v16  ;;  %1772 = vmatpush.msra.mxu2 %v1720_v18  ;;  %v1595_v54 = vld [vmem:[#allocation7 + $0x8] sm:$0xff]  ;;  %vm1555_vm9 = vweird.f32 %v3940_v61  ;;  %v1575_v18 = vand.u32 2147483648, %v3901_v16  ;;  %1671 = vmatpush.msra.mxu0 %v1610_v4 }
 0x14e   : > { %v1552_v21 = vmul.f32 %v3940_v61, %v1551_v3  ;;  %v1561_v29 = vor.u32 1.1754944e-38, %v1560_v30  ;;  %v1566_v47 = vsub.f32 1.0, %v1565_v49  ;;  %vm1569_vm10 = vweird.f32 %v3901_v16  ;;  %1713 = vmatpush.msra.mxu1 %v1595_v54  ;;  %vm3987_vm14 = vmor %vm1554_vm5, %vm1555_vm9 }
 0x14f   : > { %v1014_v44 = vrot.slane %v1013_v50, 4  ;;  %1773 = vmatpush.msra.mxu2 %v1719_v42  ;;  %vm3971_vm2 = vcmp.eq.f32.partialorder %v1573_v59, 8.507059e+37  ;;  %vm1570_vm3 = vweird.f32 %v3953_v34  ;;  %v1804_v55 = vsel %vm1635_vm7, %v1803_v26, %v3616_v33  ;;  %v1860_v26 = vld [vmem:[#allocation13 + $0x78] sm:$0xff] }
 0x150   : > { %v1553_v51 = vadd.f32 %v3940_v61, %v1552_v21  ;;  %vm1647_vm4 = vcmask 1045509   ;;  %v3995_v30 = vsel %vm1638_vm11, %v1805_v25, %v1804_v55  ;;  %v1750_v5 = vsel %vm1644_vm1, %v3324_v62, %v3504_v63  ;;  %1714 = vmatpush.msra.mxu1 %v1594_v12  ;;  %1865 = vmatpush.msrb.mxu0 %v1860_v26  ;;  %vm4018_vm5 = vmor %vm1569_vm10, %vm1570_vm3  ;;  %v1856_v12 = vld [vmem:[#allocation13 + $0x58] sm:$0xff] }
 0x151   : > { %v1015_v0 = vadd.f32 %v1014_v44, %v1013_v50  ;;  %v3975_v50 = vadd.f32 %v1009_v40, %v1008_v56  ;;  %v1567_v56 = vmul.f32 %v3953_v34, %v1566_v47  ;;  %v2328_v33 = vpop.eup %2327  ;;  %v1576_v42 = vor.u32 1.1754944e-38, %v1575_v18 }
 0x152   : > { %v1557_v59 = vsel %vm3987_vm14, %v3940_v61, %v1553_v51  ;;  %v1752_v40 = vsel %vm1647_vm4, %v3525_v14, %v1750_v5  ;;  %vm4007_vm13 = vcmp.eq.f32.partialorder %v1112_v11, 8.507059e+37  ;;  %v1580_v63 = vmul.f32 %v2328_v33, %v3937_v27  ;;  %v1858_v61 = vld [vmem:[#allocation13 + $0x68] sm:$0xff]  ;;  %1866 = vmatpush.msrb.mxu0 %v1859_v32 }
 0x153   : > { %v1016_v15 = vrot.slane %v1015_v0, 2  ;;  %v1568_v62 = vadd.f32 %v3953_v34, %v1567_v56  ;;  %vm1584_vm0 = vweird.f32 %v3937_v27  ;;  %vm1650_vm12 = vcmask 1046534  }
 0x154   : > { %v1588_v4 = vand.u32 2147483647, %v3937_v27  ;;  %v1590_v19 = vand.u32 2147483648, %v3937_v27  ;;  %vm4182_vm9 = vcmask 1047559   ;;  %v1754_v11 = vsel %vm1650_vm12, %v3928_v8, %v1752_v40  ;;  %1867 = vmatpush.msrb.mxu0 %v1858_v61 }
 0x155   : > { %v1562_v3 = vsel %vm3955_vm8, %v1561_v29, %v1557_v59  ;;  %v1572_v16 = vsel %vm4018_vm5, %v3953_v34, %v1568_v62  ;;  %v1581_v45 = vsub.f32 1.0, %v1580_v63  ;;  %v1756_v54 = vsel %vm4182_vm9, %v3930_v58, %v1754_v11 }
 0x156   : > { %v1017_v49 = vadd.f32 %v1016_v15, %v1015_v0  ;;  %v1563_v21 = vmul.f32 %v1562_v3, %v3946_v60  ;;  %1774 = vmatmul.f32.vlgmr.msra.gmra.mxu2 %v1756_v54  ;;  %v4035_v18 = vrot.slane %v3309_v52, 5  ;;  %v4038_v8 = vrot.slane %v3309_v52, 6  ;;  %1868 = vmatpush.msrb.mxu0 %v1857_v20 }
 0x157   : > { %v1577_v29 = vsel %vm3971_vm2, %v1576_v42, %v1572_v16  ;;  %v1582_v34 = vmul.f32 %v2328_v33, %v1581_v45  ;;  %vm1585_vm8 = vweird.f32 %v2328_v33  ;;  %v4043_v47 = vrot.slane %v3309_v52, 7 }
 0x158   : > { %v998_v58 = vadd.f32 %v997_v46, %v3913_v28  ;;  %v751_v60 = vunpack.c.l.bf16 %v3883_v38  ;;  %v1578_v0 = vmul.f32 %v1577_v29, %v3962_v24  ;;  %2329 = vrcp.f32 %v4035_v18  ;;  %vm1586_vm10 = vmor %vm1584_vm0, %vm1585_vm8  ;;  %1869 = vmatpush.msrb.mxu0 %v1856_v12 }
 0x159   : > { %v1004_v39 = vrot.slane %v3960_v10, 1  ;;  %v1450_v51 = vadd.f32 %v1449_v17, %v3942_v35  ;;  %v1583_v52 = vadd.f32 %v2328_v33, %v1582_v34  ;;  %2331 = vrcp.f32 %v4038_v8 }
 0x15a   : > { %v1011_v55 = vrot.slane %v3975_v50, 1  ;;  %vm1589_vm2 = vcmp.eq.f32.partialorder %v1588_v4, 8.507059e+37  ;;  %v1591_v24 = vor.u32 1.1754944e-38, %v1590_v19  ;;  %v1809_v38 = vrot.slane %v3836_v41, 4 }
 0x15b   : > { %v1018_v28 = vrot.slane %v1017_v49, 1  ;;  %v1587_v46 = vsel %vm1586_vm10, %v2328_v33, %v1583_v52  ;;  %v1811_v44 = vrot.slane %v1563_v21, 3  ;;  %2333 = vrcp.f32 %v4043_v47 }
 0x15c   : > { %v1640_v35 = vrot.slane %v3918_v53, 5  ;;  %v1116_v27 = vsel %vm4007_vm13, %v3846_v9, %v1111_v48  ;;  %v1592_v17 = vsel %vm1589_vm2, %v1591_v24, %v1587_v46  ;;  %v1813_v56 = vrot.slane %v1578_v0, 2  ;;  %v1851_v53 = vld [vmem:[#allocation13 + $0x30] sm:$0xff] }
 0x15d   : > { %v4070_v41 = vmul.f32 %v1116_v27, %v998_v58  ;;  %v1694_v5 = vrot.slane %v751_v60, 2  ;;  %v1593_v26 = vmul.f32 %v1592_v17, %v1450_v51  ;;  %v1808_v33 = vsel %vm1641_vm6, %v1807_v22, %v3995_v30 }
 0x15e   : > { %v2330_v15 = vpop.eup %2329  ;;  %v1005_v23 = vadd.f32 %v1004_v39, %v3960_v10  ;;  %v1810_v7 = vsel %vm1644_vm1, %v1809_v38, %v1808_v33  ;;  %v1012_v43 = vadd.f32 %v1011_v55, %v3975_v50  ;;  %v1691_v9 = vsel %vm1644_vm1, %v3839_v2, %v3774_v57  ;;  %v1852_v33 = vld [vmem:[#allocation13 + $0x38] sm:$0xff] }
 0x15f   : > { %v2332_v48 = vpop.eup %2331  ;;  %v1812_v59 = vsel %vm1647_vm4, %v1811_v44, %v1810_v7  ;;  %v1815_v42 = vrot.slane %v1593_v26, 1  ;;  %v1019_v40 = vadd.f32 %v1018_v28, %v1017_v49  ;;  %v1119_v1 = vmul.f32 %v2330_v15, %v4035_v18  ;;  %v1853_v26 = vld [vmem:[#allocation13 + $0x40] sm:$0xff]  ;;  %v1847_v7 = vld [vmem:[#allocation13 + $0x10] sm:$0xff] }
 0x160   : > { %v1814_v22 = vsel %vm1650_vm12, %v1813_v56, %v1812_v59  ;;  %v1127_v30 = vand.u32 2147483647, %v4035_v18  ;;  %v1134_v10 = vmul.f32 %v2332_v48, %v4038_v8  ;;  %v4328_v50 = vrot.slane %v3552_v37, 7  ;;  %v1900_v59 = vld [vmem:[#allocation14 + $0x70] sm:$0xff] }
 0x161   : > { %v2334_v25 = vpop.eup %2333  ;;  %v1816_v57 = vsel %vm4182_vm9, %v1815_v42, %v1814_v22  ;;  %v1120_v2 = vsub.f32 1.0, %v1119_v1  ;;  %v1129_v62 = vand.u32 2147483648, %v4035_v18  ;;  %v1693_v63 = vsel %vm1647_vm4, %v3676_v36, %v1691_v9  ;;  %v1845_v9 = vld [vmem:[#allocation13] sm:$0xff]  ;;  %v1899_v42 = vld [vmem:[#allocation14 + $0x68] sm:$0xff]  ;;  %v1897_v1 = vld [vmem:[#allocation14 + $0x58] sm:$0xff] }
 0x162   : > { %v1636_v32 = vsel %vm1635_vm7, %v4328_v50, %v3801_v13  ;;  %1834 = vmatmul.f32.vlgmr.msra.gmra.mxu3 %v1816_v57  ;;  %v1135_v14 = vsub.f32 1.0, %v1134_v10  ;;  %v1142_v4 = vand.u32 2147483647, %v4038_v8  ;;  %v1149_v19 = vmul.f32 %v2334_v25, %v4043_v47  ;;  %v1896_v22 = vld [vmem:[#allocation14 + $0x50] sm:$0xff]  ;;  %v1894_v10 = vld [vmem:[#allocation14 + $0x40] sm:$0xff]  ;;  %v1893_v50 = vld [vmem:[#allocation14 + $0x38] sm:$0xff] }
 0x163   : > { %v1695_v11 = vsel %vm1650_vm12, %v1694_v5, %v1693_v63  ;;  %v1121_v37 = vmul.f32 %v2330_v15, %v1120_v2  ;;  %vm1124_vm15 = vweird.f32 %v2330_v15  ;;  %v1144_v13 = vand.u32 2147483648, %v4038_v8  ;;  %v1854_v5 = vld [vmem:[#allocation13 + $0x48] sm:$0xff] }
 0x164   : > { %v1697_v61 = vsel %vm4182_vm9, %v3910_v6, %v1695_v11  ;;  %vm1123_vm7 = vweird.f32 %v4035_v18  ;;  %v1136_v3 = vmul.f32 %v2332_v48, %v1135_v14  ;;  %vm1139_vm3 = vweird.f32 %v2332_v48 }
 0x165   : > { %v1150_v36 = vsub.f32 1.0, %v1149_v19  ;;  %1715 = vmatmul.f32.vlgmr.msra.gmra.mxu1 %v1697_v61  ;;  %v1122_v16 = vadd.f32 %v2330_v15, %v1121_v37  ;;  %v1130_v45 = vor.u32 1.1754944e-38, %v1129_v62  ;;  %vm1138_vm14 = vweird.f32 %v4038_v8  ;;  %vm1125_vm13 = vmor %vm1123_vm7, %vm1124_vm15  ;;  %v1890_v61 = vld [vmem:[#allocation14 + $0x20] sm:$0xff] }
 0x166   : > { %v1159_v54 = vand.u32 2147483648, %v4043_v47  ;;  %v1137_v49 = vadd.f32 %v2332_v48, %v1136_v3  ;;  %vm1154_vm0 = vweird.f32 %v2334_v25  ;;  %v1157_v20 = vand.u32 2147483647, %v4043_v47  ;;  %vm1140_vm8 = vmor %vm1138_vm14, %vm1139_vm3  ;;  %v1889_v3 = vld [vmem:[#allocation14 + $0x18] sm:$0xff] }
 0x167   : > { %v1151_v21 = vmul.f32 %v2334_v25, %v1150_v36  ;;  %v1126_v29 = vsel %vm1125_vm13, %v2330_v15, %v1122_v16  ;;  %vm1128_vm5 = vcmp.eq.f32.partialorder %v1127_v30, 8.507059e+37  ;;  %vm1143_vm10 = vcmp.eq.f32.partialorder %v1142_v4, 8.507059e+37  ;;  %v1849_v15 = vld [vmem:[#allocation13 + $0x20] sm:$0xff]  ;;  %v1895_v30 = vld [vmem:[#allocation14 + $0x48] sm:$0xff]  ;;  %v1888_v36 = vld [vmem:[#allocation14 + $0x10] sm:$0xff] }
 0x168   : > { %v1145_v6 = vor.u32 1.1754944e-38, %v1144_v13  ;;  %v1131_v18 = vsel %vm1128_vm5, %v1130_v45, %v1126_v29  ;;  %v1141_v34 = vsel %vm1140_vm8, %v2332_v48, %v1137_v49  ;;  %vm1153_vm2 = vweird.f32 %v4043_v47  ;;  %v1901_v48 = vld [vmem:[#allocation14 + $0x78] sm:$0xff]  ;;  %v2300_v4 = vld [vmem:[%s4170_s10] ss:$0 sm:$0xff]  ;;  %v1887_v16 = vld [vmem:[#allocation14 + $0x8] sm:$0xff] }
 0x169   : > { %v1152_v58 = vadd.f32 %v2334_v25, %v1151_v21  ;;  %v1132_v60 = vmul.f32 %v1131_v18, %v1005_v23  ;;  %vm1155_vm9 = vmor %vm1153_vm2, %vm1154_vm0  ;;  %v1160_v0 = vor.u32 1.1754944e-38, %v1159_v54  ;;  %v1643_v12 = vrot.slane %v4070_v41, 4  ;;  %v1848_v23 = vld [vmem:[#allocation13 + $0x18] sm:$0xff]  ;;  %1906 = vmatpush.msrb.mxu1 %v1901_v48  ;;  %v1886_v45 = vld [vmem:[#allocation14] sm:$0xff] }
 0x16a   : > { %v1146_v8 = vsel %vm1143_vm10, %v1145_v6, %v1141_v34  ;;  %vm1158_vm15 = vcmp.eq.f32.partialorder %v1157_v20, 8.507059e+37  ;;  %v4329_v55 = vrot.slane %v3688_v31, 6  ;;  %v1855_v31 = vld [vmem:[#allocation13 + $0x50] sm:$0xff]  ;;  %v2301_v54 = vld [vmem:[%s4331_s26] ss:$0 sm:$0xff] }
 0x16b   : > { %v1147_v39 = vmul.f32 %v1146_v8, %v1012_v43  ;;  %v1156_v51 = vsel %vm1155_vm9, %v2334_v25, %v1152_v58  ;;  %v1646_v38 = vrot.slane %v1132_v60, 3  ;;  %vm4330_vm9 = vcmask 1047559   ;;  %1870 = vmatpush.msrb.mxu0 %v1855_v31  ;;  %v1846_v43 = vld [vmem:[#allocation13 + $0x8] sm:$0xff]  ;;  %1907 = vmatpush.msrb.mxu1 %v1900_v59  ;;  %v2302_v29 = vld [vmem:[%s4333_s8] ss:$0 sm:$0xff] }
 0x16c   : > { %v1161_v52 = vsel %vm1158_vm15, %v1160_v0, %v1156_v51  ;;  %v1639_v24 = vsel %vm1638_vm11, %v4329_v55, %v1636_v32  ;;  %v1892_v32 = vld [vmem:[#allocation14 + $0x30] sm:$0xff]  ;;  %v1891_v25 = vld [vmem:[#allocation14 + $0x28] sm:$0xff] }
 0x16d   : > { %v1162_v28 = vmul.f32 %v1161_v52, %v1019_v40  ;;  %v1642_v47 = vsel %vm1641_vm6, %v1640_v35, %v1639_v24  ;;  %v1649_v46 = vrot.slane %v1147_v39, 2  ;;  %1871 = vmatpush.msrb.mxu0 %v1854_v5  ;;  %v1850_v35 = vld [vmem:[#allocation13 + $0x28] sm:$0xff]  ;;  %v1898_v40 = vld [vmem:[#allocation14 + $0x60] sm:$0xff]  ;;  %1908 = vmatpush.msrb.mxu1 %v1899_v42 }
 0x16e   : > { %v1645_v44 = vsel %vm1644_vm1, %v1643_v12, %v1642_v47 }
 0x16f   : > { %v1648_v27 = vsel %vm1647_vm4, %v1646_v38, %v1645_v44  ;;  %v1652_v17 = vrot.slane %v1162_v28, 1  ;;  %1872 = vmatpush.msrb.mxu0 %v1853_v26  ;;  %1909 = vmatpush.msrb.mxu1 %v1898_v40 }
 0x170   : > { %v1651_v56 = vsel %vm1650_vm12, %v1649_v46, %v1648_v27 }
 0x171   : > { %v1654_v41 = vsel %vm4330_vm9, %v1652_v17, %v1651_v56  ;;  %1873 = vmatpush.msrb.mxu0 %v1852_v33  ;;  %1910 = vmatpush.msrb.mxu1 %v1897_v1 }
 0x172   : > { %1672 = vmatmul.f32.vlgmr.msra.gmra.mxu0 %v1654_v41 }
 0x173   : > { %1874 = vmatpush.msrb.mxu0 %v1851_v53  ;;  %1911 = vmatpush.msrb.mxu1 %v1896_v22 }
 0x175   : > { %1875 = vmatpush.msrb.mxu0 %v1850_v35  ;;  %1912 = vmatpush.msrb.mxu1 %v1895_v30 }
 0x177   : > { %1876 = vmatpush.msrb.mxu0 %v1849_v15  ;;  %1913 = vmatpush.msrb.mxu1 %v1894_v10 }
 0x179   : > { %1877 = vmatpush.msrb.mxu0 %v1848_v23  ;;  %1914 = vmatpush.msrb.mxu1 %v1893_v50 }
 0x17b   : > { %1878 = vmatpush.msrb.mxu0 %v1847_v7  ;;  %1915 = vmatpush.msrb.mxu1 %v1892_v32 }
 0x17d   : > { %1879 = vmatpush.msrb.mxu0 %v1846_v43  ;;  %1916 = vmatpush.msrb.mxu1 %v1891_v25 }
 0x17f   : > { %1880 = vmatpush.msrb.mxu0 %v1845_v9  ;;  %1917 = vmatpush.msrb.mxu1 %v1890_v61 }
 0x181   : > { %1918 = vmatpush.msrb.mxu1 %v1889_v3 }
 0x183   : > { %1919 = vmatpush.msrb.mxu1 %v1888_v36 }
 0x185   : > { %1920 = vmatpush.msrb.mxu1 %v1887_v16 }
 0x187   : > { %1921 = vmatpush.msrb.mxu1 %v1886_v45 }
 0x1d9   : > { %v1775_v62 = vpop.f32.mrf.mxu2 }
 0x1e2   : > { %v1716_v57 = vpop.f32.mrf.mxu1 }
 0x1e5   : > { %v1835_v19 = vpop.f32.mrf.mxu3 }
 0x1ef   : > { %v1673_v2 = vpop.f32.mrf.mxu0 }
 0x1f0   : > { %v1717_v63 = vadd.f32 %v1716_v57, %v1673_v2 }
 0x1f2   : > { %v1778_v14 = vadd.f32 %v1775_v62, %v1717_v63 }
 0x1f4   : > { %v1838_v11 = vadd.f32 %v1835_v19, %v1778_v14 }
 0x1f6   : > { %v1843_v37 = vadd.f32 %v2300_v4, %v1838_v11 }
 0x1f8   : > { %v1844_v13 = vmax.f32 %v1843_v37, 0.0 }
 0x1fa   : > { %1881 = vmatmul.f32.vlgmr.msrb.gmra.mxu0 %v1844_v13 }
 0x277   : > { %v1882_v49 = vpop.f32.mrf.mxu0 }
 0x278   : > { %v1883_v21 = vadd.f32 %v2301_v54, %v1882_v49 }
 0x27a   : > { %2335 = vtanh.f32 %v1883_v21 }
 0x280   : > { %v2336_v20 = vpop.eup %2335 }
 0x281   : > { %1922 = vmatmul.f32.vlgmr.msrb.gmra.mxu1 %v2336_v20 }
 0x2fe   : > { %v1923_v6 = vpop.f32.mrf.mxu1 }
 0x2ff   : > { %v1924_v18 = vadd.f32 %v2302_v29, %v1923_v6 }
 0x301   : > { %1926 = vst [vmem:[%s709_s11] sm:$0xff] %v1924_v18 }
 0x302   : > { %2604 = shalt.err (!%p2601_p10)
}
 0x303   : > { %2208 = dma.vmem_to_hbm [thread:$0]  (%p2871_p4), %s1941_s29, 128, %s1943_s20, %s1928_s6  }
 0x304 PF: > { %s1954_s12 = sand.u32 1, %s2651_s18   ;;  %p4335_p13 = scmp.ge.s32.totalorder %s2663_s21, 2 }
 0x305   : > { %s1955_s30 = scalar_lea.sflag [#allocation4], %s1954_s12 }
 0x306   : > { %p2237_p11 = pnand %p4335_p13, %p2875_p6 }
 0x308   : > { %p2238_p0 = pneg %p2237_p11 }
 0x30a   : > { %2646 = dma.done.wait (%p2238_p0), %s1955_s30, 128  }
 0x30b   : > { %2648 = vsyncadd (%p2238_p0), %s1955_s30, 4294967168  ;;  %s4336_s21 = sld [smem:[#allocation25_spill]]  ;;  %s4339_s18 = smov %s2655_s19 }
 0x30c   : > { %s4337_s7 = sld [smem:[#allocation24_spill]] }
 0x30d   : > { %s4338_s20 = sld [smem:[#allocation26_spill]] }
 0x311   : > { %p34_p2 = scmp.ge.s32.totalorder %s4336_s21, 4  }
 0x312   : > { %s4340_s19 = smov %s4337_s7 }
 0x313   :  { %36 = sbr.rel (!%p34_p2) target bundleno = 21 (0x15), region = 174 }
 0x318   :  { %1961 = vsyncpa [#allocation3], 1 }
 0x319   :  { %1963 = vsyncpa [#allocation3 + $0x1], 1 }
 0x31a   :  { %1964 = vsyncpa [#allocation6], 1 }
 0x31b   :  { %1966 = vsyncpa [#allocation6 + $0x1], 1 }
 0x31c   :  { %1967 = vsyncpa [#allocation9], 1 }
 0x31d   :  { %1968 = vsyncpa [#allocation12], 1 }
 0x31e   :  { %1969 = vsyncpa [#allocation15], 1 }
 0x31f   :  { %1970 = vsyncpa [#allocation4], 1 }
 0x320   :  { %1972 = vsyncpa [#allocation4 + $0x1], 1 }

</bundles_post_ra>
